<compile_context>
chip_gen: v5e
topology: v5e:2x2
jax: 0.10.0
libtpu: 0.0.40
codegen_flags: <defaults>
</compile_context>

<pallas_src>
import jax
import jax.numpy as jnp
from jax.experimental import pallas as pl
from jax.experimental.pallas import tpu as pltpu

NEG_SLOPE = 0.01  # torch.nn.LeakyReLU default


def _leaky(x):
    return jnp.where(x > 0, x, NEG_SLOPE * x)


# --------------------------------------------------------------------------
# Fused Pallas kernel (factory closes over the static config / shapes)
# --------------------------------------------------------------------------

def make_znn_kernel(B, T, c1, H, layers, ndir, premask):
    n_gru = layers * ndir

    def gru_direction(parts, wih_ref, whh_ref, bih_ref, bhh_ref,
                      gi_ref, y_ref, reverse):
        # parts: list of (T*B, Cin_part) values whose channel-concat is the
        # layer input; project each part separately (avoids any lane concat).
        wih = wih_ref[...]                               # (Cin_total, 3H), loaded once
        gi = bih_ref[...]                                # (1, 3H) -> broadcasts
        off = 0
        for p in parts:
            cin = p.shape[1]
            gi = gi + jnp.dot(p, wih[off:off + cin, :],
                              preferred_element_type=jnp.float32)
            off += cin
        gi_ref[...] = gi                                 # (T*B, 3H) staged in VMEM

        whh = whh_ref[...]                               # (H, 3H), loaded once
        bhh = bhh_ref[...]                               # (1, 3H)
        h = jnp.zeros((B, H), jnp.float32)               # hidden state stays in vregs
        steps = range(T - 1, -1, -1) if reverse else range(T)
        for t in steps:                                  # fully unrolled (T static)
            gi_t = gi_ref[pl.ds(t * B, B), :]            # (B, 3H)
            gh = jnp.dot(h, whh, preferred_element_type=jnp.float32) + bhh
            r = jax.nn.sigmoid(gi_t[:, 0:H] + gh[:, 0:H])
            z = jax.nn.sigmoid(gi_t[:, H:2 * H] + gh[:, H:2 * H])
            n = jnp.tanh(gi_t[:, 2 * H:3 * H] + r * gh[:, 2 * H:3 * H])
            h = (1.0 - z) * n + z * h
            y_ref[pl.ds(t * B, B), :] = h                # time-major output rows

    def kernel(*refs):
        (x_ref, mask_ref, msel_ref, w1_ref, b1_ref, w2_ref, b2_ref) = refs[0:7]
        gru_refs = refs[7:7 + 4 * n_gru]
        w3_ref, b3_ref, w4_ref, b4_ref = refs[7 + 4 * n_gru:11 + 4 * n_gru]
        sums_ref = refs[11 + 4 * n_gru]                  # output (2B, 2)
        hpad_ref = refs[12 + 4 * n_gru]                  # scratch ((T+4)*B, c1)
        gi_ref = refs[13 + 4 * n_gru]                    # scratch (T*B, 3H)
        ybufs = refs[14 + 4 * n_gru:]                    # 2*ndir scratch (T*B, H)

        # ---- cnn1: Conv1d(k=1) -> LeakyReLU -> Conv1d(k=5, padding=2) ----
        x = x_ref[...]                                   # (T*B, n_inputs)
        if premask:                                      # epoch < 5 input gating
            x = x * mask_ref[...]
        h1 = _leaky(jnp.dot(x, w1_ref[...], preferred_element_type=jnp.float32)
                    + b1_ref[...])                       # (T*B, c1)

        # zero-padded time axis (2 steps each side); time shift by d steps is a
        # row shift by d*B in the time-major layout (never mixes batches).
        hpad_ref[...] = jnp.zeros(((T + 4) * B, c1), jnp.float32)
        hpad_ref[pl.ds(2 * B, T * B), :] = h1
        X = jnp.zeros((T * B, c1), jnp.float32) + b2_ref[...]
        for k in range(5):
            v = hpad_ref[pl.ds(k * B, T * B), :]         # h[t + k - 2] (0 if OOR)
            X = X + jnp.dot(v, w2_ref[k], preferred_element_type=jnp.float32)

        # ---- GRU stack (num_layers x directions) ----
        parts = [X]
        for l in range(layers):
            new_parts = []
            for d in range(ndir):
                base = 4 * (l * ndir + d)
                y_ref = ybufs[(l % 2) * ndir + d]        # ping-pong layer buffers
                gru_direction(parts,
                              gru_refs[base], gru_refs[base + 1],
                              gru_refs[base + 2], gru_refs[base + 3],
                              gi_ref, y_ref, reverse=(d == 1))
                new_parts.append(y_ref[...])             # (T*B, H)
            parts = new_parts

        # ---- cnn2 (two 1x1 convs) ----
        w3 = w3_ref[...]
        h2 = b3_ref[...]                                 # (1, c2) -> broadcasts
        off = 0
        for p in parts:                                  # per-direction channel chunks
            cin = p.shape[1]
            h2 = h2 + jnp.dot(p, w3[off:off + cin, :],
                              preferred_element_type=jnp.float32)
            off += cin
        h2 = _leaky(h2)
        o = jnp.dot(h2, w4_ref[...], preferred_element_type=jnp.float32) + b4_ref[...]

        # ---- both masked time-sums as ONE matmul: (2B, T*B) @ (T*B, 2) ----
        sums_ref[...] = jnp.dot(msel_ref[...], o, preferred_element_type=jnp.float32)

    return kernel


# --------------------------------------------------------------------------
# Parameters + full forward
# --------------------------------------------------------------------------

def init_params(key, config):
    ni = config['n_inputs']
    c1 = config['n_units_cnn1']
    H = config['n_units_rnn']
    c2 = config['n_units_cnn2']
    bidir = int(config['rnn_bidir'])
    layers = config['rnn_layers']
    keys = iter(jax.random.split(key, 64))

    def nrm(shape, scale=0.1):
        return (scale * jax.random.normal(next(keys), shape)).astype(jnp.float32)

    params = {
        'w1': nrm((ni, c1)), 'b1': nrm((1, c1)),              # Conv1d(ni->c1, k=1)
        'w2': nrm((5, c1, c1)), 'b2': nrm((1, c1)),           # Conv1d(c1->c1, k=5, pad=2)
        'w3': nrm(((1 + bidir) * H, c2)), 'b3': nrm((1, c2)), # Conv1d(D->c2, k=1)
        'w4': nrm((c2, 2)), 'b4': nrm((1, 2)),                # Conv1d(c2->2, k=1)
        'gru': {},
    }
    for l in range(layers):
        in_size = c1 if l == 0 else (1 + bidir) * H
        for d in range(1 + bidir):
            params['gru'][(l, d)] = dict(
                wihT=nrm((in_size, 3 * H)), whhT=nrm((H, 3 * H)),
                bih=nrm((1, 3 * H)), bhh=nrm((1, 3 * H)))
    return params


def znn_forward(params, config, Z, mask, mask_prev, epoch):
    B, T, ni = Z.shape
    c1 = config['n_units_cnn1']
    H = config['n_units_rnn']
    layers = config['rnn_layers']
    ndir = 1 + int(config['rnn_bidir'])
    premask = epoch < 5

    Zf = Z.astype(jnp.float32)
    mask_f = mask.astype(jnp.float32)
    maskp_f = mask_prev.astype(jnp.float32)

    # time-major flat layout: row r = t*B + b
    x_tm = jnp.transpose(Zf, (1, 0, 2)).reshape(T * B, ni)
    mask_tm = jnp.transpose(mask_f, (1, 0)).reshape(T * B, 1)

    # selection/mask matrix for the in-kernel masked time reductions:
    # msel[b, t*B+b'] = mask[b,t]*(b==b'); rows B..2B-1 use mask_prev.
    eye = jnp.eye(B, dtype=jnp.float32)
    m_out = (mask_f[:, :, None] * eye[:, None, :]).reshape(B, T * B)
    m_prev = (maskp_f[:, :, None] * eye[:, None, :]).reshape(B, T * B)
    msel = jnp.concatenate([m_out, m_prev], axis=0)        # (2B, T*B)

    gru_flat = []
    for l in range(layers):
        for d in range(ndir):
            p = params['gru'][(l, d)]
            gru_flat += [p['wihT'], p['whhT'], p['bih'], p['bhh']]

    kernel = make_znn_kernel(B, T, c1, H, layers, ndir, premask)
    sums = pl.pallas_call(
        kernel,
        out_shape=jax.ShapeDtypeStruct((2 * B, 2), jnp.float32),
        scratch_shapes=(
            [pltpu.VMEM(((T + 4) * B, c1), jnp.float32)]      # padded conv buffer
            + [pltpu.VMEM((T * B, 3 * H), jnp.float32)]       # hoisted GRU input proj
            + [pltpu.VMEM((T * B, H), jnp.float32)] * (2 * ndir)  # layer output ping-pong
        ),
    )(x_tm, mask_tm, msel,
      params['w1'], params['b1'], params['w2'], params['b2'],
      *gru_flat,
      params['w3'], params['b3'], params['w4'], params['b4'])

    out = sums[:B]      # masked sum
    prev = sums[B:]     # mask_prev sum
    if epoch < 5:
        return out

    prev = prev / (jnp.sqrt(jnp.sum(prev ** 2, axis=-1)) + 1e-5)[:, None]
    cos = prev[:, 0]
    sin = prev[:, 1]
    x = out[:, 0] * cos + out[:, 0] * sin   # mirrors the original module exactly (uses out[:,0] twice)
    y = -out[:, 0] * sin + out[:, 1] * cos
    return jnp.concatenate([x[:, None], y[:, None]], axis=-1)


# --------------------------------------------------------------------------
# Pure-jnp reference (mirrors the PyTorch forward) for validation
# --------------------------------------------------------------------------

def _gru_ref(x, wihT, whhT, bih, bhh):
    B, T, _ = x.shape
    H = whhT.shape[0]
    h = jnp.zeros((B, H), jnp.float32)
    ys = []
    for t in range(T):
        gi = x[:, t] @ wihT + bih[0]
        gh = h @ whhT + bhh[0]
        r = jax.nn.sigmoid(gi[:, :H] + gh[:, :H])
        z = jax.nn.sigmoid(gi[:, H:2 * H] + gh[:, H:2 * H])
        n = jnp.tanh(gi[:, 2 * H:] + r * gh[:, 2 * H:])
        h = (1.0 - z) * n + z * h
        ys.append(h)
    return jnp.stack(ys, axis=1)


def znn_forward_ref(params, config, Z, mask, mask_prev, epoch):
    bidir = int(config['rnn_bidir'])
    layers = config['rnn_layers']
    Z = Z.astype(jnp.float32)
    mask_f = mask.astype(jnp.float32)
    maskp_f = mask_prev.astype(jnp.float32)
    x_in = Z * mask_f[:, :, None] if epoch < 5 else Z

    h = _leaky(x_in @ params['w1'] + params['b1'][0])
    T = h.shape[1]
    hp = jnp.pad(h, ((0, 0), (2, 2), (0, 0)))
    X = params['b2'][0] + sum(hp[:, k:k + T] @ params['w2'][k] for k in range(5))

    inp = X
    for l in range(layers):
        outs = []
        for d in range(1 + bidir):
            p = params['gru'][(l, d)]
            xin = inp if d == 0 else inp[:, ::-1, :]
            y = _gru_ref(xin, p['wihT'], p['whhT'], p['bih'], p['bhh'])
            if d == 1:
                y = y[:, ::-1, :]
            outs.append(y)
        inp = jnp.concatenate(outs, axis=-1) if len(outs) > 1 else outs[0]

    o = _leaky(inp @ params['w3'] + params['b3'][0]) @ params['w4'] + params['b4'][0]
    out = jnp.sum(o * mask_f[:, :, None], axis=1)
    prev = jnp.sum(o * maskp_f[:, :, None], axis=1)
    if epoch < 5:
        return out
    prev = prev / (jnp.sqrt(jnp.sum(prev ** 2, axis=-1)) + 1e-5)[:, None]
    cos = prev[:, 0]
    sin = prev[:, 1]
    x = out[:, 0] * cos + out[:, 0] * sin
    y = -out[:, 0] * sin + out[:, 1] * cos
    return jnp.concatenate([x[:, None], y[:, None]], axis=-1)


# --------------------------------------------------------------------------

if __name__ == "__main__":
    config = dict(n_inputs=4, n_units_cnn1=32, n_units_rnn=32,
                  rnn_bidir=True, rnn_layers=2, n_units_cnn2=16)
    B, T = 2, 8

    key = jax.random.PRNGKey(0)
    kp, kz, km, kmp = jax.random.split(key, 4)
    params = init_params(kp, config)

    Z = jax.random.normal(kz, (B, T, config['n_inputs']), dtype=jnp.float32)
    mask = (jax.random.uniform(km, (B, T)) > 0.3).astype(jnp.float32)
    mask_prev = (jax.random.uniform(kmp, (B, T)) > 0.3).astype(jnp.float32)

    out_hi = znn_forward(params, config, Z, mask, mask_prev, epoch=10)
    out_lo = znn_forward(params, config, Z, mask, mask_prev, epoch=0)
    jax.block_until_ready((out_hi, out_lo))

    ref_hi = znn_forward_ref(params, config, Z, mask, mask_prev, epoch=10)
    ref_lo = znn_forward_ref(params, config, Z, mask, mask_prev, epoch=0)
    assert out_hi.shape == (B, 2) and out_lo.shape == (B, 2)
    assert jnp.allclose(out_hi, ref_hi, rtol=1e-3, atol=1e-3)
    assert jnp.allclose(out_lo, ref_lo, rtol=1e-3, atol=1e-3)

    print("KERNEL_OK")
</pallas_src>

<mosaic_0001>
module attributes {stable_mosaic.version = 11 : i64} {
  func.func @kernel(%arg0: memref<16x4xf32, #tpu.memory_space<vmem>>, %arg1: memref<16x1xf32, #tpu.memory_space<vmem>>, %arg2: memref<4x16xf32, #tpu.memory_space<vmem>>, %arg3: memref<4x32xf32, #tpu.memory_space<vmem>>, %arg4: memref<1x32xf32, #tpu.memory_space<vmem>>, %arg5: memref<5x32x32xf32, #tpu.memory_space<vmem>>, %arg6: memref<1x32xf32, #tpu.memory_space<vmem>>, %arg7: memref<32x96xf32, #tpu.memory_space<vmem>>, %arg8: memref<32x96xf32, #tpu.memory_space<vmem>>, %arg9: memref<1x96xf32, #tpu.memory_space<vmem>>, %arg10: memref<1x96xf32, #tpu.memory_space<vmem>>, %arg11: memref<32x96xf32, #tpu.memory_space<vmem>>, %arg12: memref<32x96xf32, #tpu.memory_space<vmem>>, %arg13: memref<1x96xf32, #tpu.memory_space<vmem>>, %arg14: memref<1x96xf32, #tpu.memory_space<vmem>>, %arg15: memref<64x96xf32, #tpu.memory_space<vmem>>, %arg16: memref<32x96xf32, #tpu.memory_space<vmem>>, %arg17: memref<1x96xf32, #tpu.memory_space<vmem>>, %arg18: memref<1x96xf32, #tpu.memory_space<vmem>>, %arg19: memref<64x96xf32, #tpu.memory_space<vmem>>, %arg20: memref<32x96xf32, #tpu.memory_space<vmem>>, %arg21: memref<1x96xf32, #tpu.memory_space<vmem>>, %arg22: memref<1x96xf32, #tpu.memory_space<vmem>>, %arg23: memref<64x16xf32, #tpu.memory_space<vmem>>, %arg24: memref<1x16xf32, #tpu.memory_space<vmem>>, %arg25: memref<16x2xf32, #tpu.memory_space<vmem>>, %arg26: memref<1x2xf32, #tpu.memory_space<vmem>>, %arg27: memref<4x2xf32, #tpu.memory_space<vmem>>, %arg28: memref<24x32xf32, #tpu.memory_space<vmem>>, %arg29: memref<16x96xf32, #tpu.memory_space<vmem>>, %arg30: memref<16x32xf32, #tpu.memory_space<vmem>>, %arg31: memref<16x32xf32, #tpu.memory_space<vmem>>, %arg32: memref<16x32xf32, #tpu.memory_space<vmem>>, %arg33: memref<16x32xf32, #tpu.memory_space<vmem>>) attributes {dimension_semantics = [], scalar_prefetch = 0 : i64, scratch_operands = 6 : i64, tpu.core_type = #tpu.core_type<tc>} {
    %c0 = arith.constant 0 : index
    %c0_0 = arith.constant 0 : index
    %0 = vector.load %arg0[%c0, %c0_0] : memref<16x4xf32, #tpu.memory_space<vmem>>, vector<16x4xf32>
    %c0_1 = arith.constant 0 : index
    %c0_2 = arith.constant 0 : index
    %1 = vector.load %arg3[%c0_1, %c0_2] : memref<4x32xf32, #tpu.memory_space<vmem>>, vector<4x32xf32>
    %cst = arith.constant dense<0.000000e+00> : vector<16x32xf32>
    %2 = tpu.matmul %0, %1, %cst {dimension_numbers = #tpu.dot_dimension_numbers<[1], [0], [0], [1], [0, 0, 1, 1], [], []>} : vector<16x4xf32>, vector<4x32xf32>, vector<16x32xf32> -> vector<16x32xf32>
    %c0_3 = arith.constant 0 : index
    %c0_4 = arith.constant 0 : index
    %3 = vector.load %arg4[%c0_3, %c0_4] : memref<1x32xf32, #tpu.memory_space<vmem>>, vector<1x32xf32>
    %4 = vector.broadcast %3 : vector<1x32xf32> to vector<16x32xf32>
    %5 = arith.addf %2, %4 : vector<16x32xf32>
    %cst_5 = arith.constant 0.000000e+00 : f32
    %6 = vector.broadcast %cst_5 : f32 to vector<16x32xf32>
    %7 = arith.cmpf ogt, %5, %6 : vector<16x32xf32>
    %cst_6 = arith.constant 0.00999999977 : f32
    %8 = vector.broadcast %cst_6 : f32 to vector<16x32xf32>
    %9 = arith.mulf %8, %5 : vector<16x32xf32>
    %10 = arith.select %7, %5, %9 : vector<16x32xi1>, vector<16x32xf32>
    %cst_7 = arith.constant 0.000000e+00 : f32
    %11 = vector.broadcast %cst_7 : f32 to vector<24x32xf32>
    %c0_8 = arith.constant 0 : index
    %c0_9 = arith.constant 0 : index
    %12 = vector.load %arg28[%c0_8, %c0_9] : memref<24x32xf32, #tpu.memory_space<vmem>>, vector<24x32xf32>
    tpu.vector_store %arg28[%c0_8, %c0_9], %11 {strides = array<i32>} : memref<24x32xf32, #tpu.memory_space<vmem>>, vector<24x32xf32>,
    %c4 = arith.constant 4 : index
    %c0_10 = arith.constant 0 : index
    %13 = vector.load %arg28[%c4, %c0_10] : memref<24x32xf32, #tpu.memory_space<vmem>>, vector<16x32xf32>
    tpu.vector_store %arg28[%c4, %c0_10], %10 {strides = array<i32>} : memref<24x32xf32, #tpu.memory_space<vmem>>, vector<16x32xf32>,
    %cst_11 = arith.constant 0.000000e+00 : f32
    %14 = vector.broadcast %cst_11 : f32 to vector<16x32xf32>
    %c0_12 = arith.constant 0 : index
    %c0_13 = arith.constant 0 : index
    %15 = vector.load %arg6[%c0_12, %c0_13] : memref<1x32xf32, #tpu.memory_space<vmem>>, vector<1x32xf32>
    %16 = vector.broadcast %15 : vector<1x32xf32> to vector<16x32xf32>
    %17 = arith.addf %14, %16 : vector<16x32xf32>
    %c0_14 = arith.constant 0 : index
    %c0_15 = arith.constant 0 : index
    %18 = vector.load %arg28[%c0_14, %c0_15] : memref<24x32xf32, #tpu.memory_space<vmem>>, vector<16x32xf32>
    %c0_16 = arith.constant 0 : index
    %c0_17 = arith.constant 0 : index
    %c0_18 = arith.constant 0 : index
    %19 = vector.load %arg5[%c0_16, %c0_17, %c0_18] : memref<5x32x32xf32, #tpu.memory_space<vmem>>, vector<1x32x32xf32>
    %20 = vector.shape_cast %19 : vector<1x32x32xf32> to vector<32x32xf32>
    %cst_19 = arith.constant dense<0.000000e+00> : vector<16x32xf32>
    %21 = tpu.matmul %18, %20, %cst_19 {dimension_numbers = #tpu.dot_dimension_numbers<[1], [0], [0], [1], [0, 0, 1, 1], [], []>} : vector<16x32xf32>, vector<32x32xf32>, vector<16x32xf32> -> vector<16x32xf32>
    %22 = arith.addf %17, %21 : vector<16x32xf32>
    %c2 = arith.constant 2 : index
    %c0_20 = arith.constant 0 : index
    %23 = vector.load %arg28[%c2, %c0_20] : memref<24x32xf32, #tpu.memory_space<vmem>>, vector<16x32xf32>
    %c1 = arith.constant 1 : index
    %c0_21 = arith.constant 0 : index
    %c0_22 = arith.constant 0 : index
    %24 = vector.load %arg5[%c1, %c0_21, %c0_22] : memref<5x32x32xf32, #tpu.memory_space<vmem>>, vector<1x32x32xf32>
    %25 = vector.shape_cast %24 : vector<1x32x32xf32> to vector<32x32xf32>
    %cst_23 = arith.constant dense<0.000000e+00> : vector<16x32xf32>
    %26 = tpu.matmul %23, %25, %cst_23 {dimension_numbers = #tpu.dot_dimension_numbers<[1], [0], [0], [1], [0, 0, 1, 1], [], []>} : vector<16x32xf32>, vector<32x32xf32>, vector<16x32xf32> -> vector<16x32xf32>
    %27 = arith.addf %22, %26 : vector<16x32xf32>
    %c4_24 = arith.constant 4 : index
    %c0_25 = arith.constant 0 : index
    %28 = vector.load %arg28[%c4_24, %c0_25] : memref<24x32xf32, #tpu.memory_space<vmem>>, vector<16x32xf32>
    %c2_26 = arith.constant 2 : index
    %c0_27 = arith.constant 0 : index
    %c0_28 = arith.constant 0 : index
    %29 = vector.load %arg5[%c2_26, %c0_27, %c0_28] : memref<5x32x32xf32, #tpu.memory_space<vmem>>, vector<1x32x32xf32>
    %30 = vector.shape_cast %29 : vector<1x32x32xf32> to vector<32x32xf32>
    %cst_29 = arith.constant dense<0.000000e+00> : vector<16x32xf32>
    %31 = tpu.matmul %28, %30, %cst_29 {dimension_numbers = #tpu.dot_dimension_numbers<[1], [0], [0], [1], [0, 0, 1, 1], [], []>} : vector<16x32xf32>, vector<32x32xf32>, vector<16x32xf32> -> vector<16x32xf32>
    %32 = arith.addf %27, %31 : vector<16x32xf32>
    %c6 = arith.constant 6 : index
    %c0_30 = arith.constant 0 : index
    %33 = vector.load %arg28[%c6, %c0_30] : memref<24x32xf32, #tpu.memory_space<vmem>>, vector<16x32xf32>
    %c3 = arith.constant 3 : index
    %c0_31 = arith.constant 0 : index
    %c0_32 = arith.constant 0 : index
    %34 = vector.load %arg5[%c3, %c0_31, %c0_32] : memref<5x32x32xf32, #tpu.memory_space<vmem>>, vector<1x32x32xf32>
    %35 = vector.shape_cast %34 : vector<1x32x32xf32> to vector<32x32xf32>
    %cst_33 = arith.constant dense<0.000000e+00> : vector<16x32xf32>
    %36 = tpu.matmul %33, %35, %cst_33 {dimension_numbers = #tpu.dot_dimension_numbers<[1], [0], [0], [1], [0, 0, 1, 1], [], []>} : vector<16x32xf32>, vector<32x32xf32>, vector<16x32xf32> -> vector<16x32xf32>
    %37 = arith.addf %32, %36 : vector<16x32xf32>
    %c8 = arith.constant 8 : index
    %c0_34 = arith.constant 0 : index
    %38 = vector.load %arg28[%c8, %c0_34] : memref<24x32xf32, #tpu.memory_space<vmem>>, vector<16x32xf32>
    %c4_35 = arith.constant 4 : index
    %c0_36 = arith.constant 0 : index
    %c0_37 = arith.constant 0 : index
    %39 = vector.load %arg5[%c4_35, %c0_36, %c0_37] : memref<5x32x32xf32, #tpu.memory_space<vmem>>, vector<1x32x32xf32>
    %40 = vector.shape_cast %39 : vector<1x32x32xf32> to vector<32x32xf32>
    %cst_38 = arith.constant dense<0.000000e+00> : vector<16x32xf32>
    %41 = tpu.matmul %38, %40, %cst_38 {dimension_numbers = #tpu.dot_dimension_numbers<[1], [0], [0], [1], [0, 0, 1, 1], [], []>} : vector<16x32xf32>, vector<32x32xf32>, vector<16x32xf32> -> vector<16x32xf32>
    %42 = arith.addf %37, %41 : vector<16x32xf32>
    %c0_39 = arith.constant 0 : index
    %c0_40 = arith.constant 0 : index
    %43 = vector.load %arg7[%c0_39, %c0_40] : memref<32x96xf32, #tpu.memory_space<vmem>>, vector<32x96xf32>
    %c0_41 = arith.constant 0 : index
    %c0_42 = arith.constant 0 : index
    %44 = vector.load %arg9[%c0_41, %c0_42] : memref<1x96xf32, #tpu.memory_space<vmem>>, vector<1x96xf32>
    %cst_43 = arith.constant dense<0.000000e+00> : vector<16x96xf32>
    %45 = tpu.matmul %42, %43, %cst_43 {dimension_numbers = #tpu.dot_dimension_numbers<[1], [0], [0], [1], [0, 0, 1, 1], [], []>} : vector<16x32xf32>, vector<32x96xf32>, vector<16x96xf32> -> vector<16x96xf32>
    %46 = vector.broadcast %44 : vector<1x96xf32> to vector<16x96xf32>
    %47 = arith.addf %46, %45 : vector<16x96xf32>
    %c0_44 = arith.constant 0 : index
    %c0_45 = arith.constant 0 : index
    %48 = vector.load %arg29[%c0_44, %c0_45] : memref<16x96xf32, #tpu.memory_space<vmem>>, vector<16x96xf32>
    tpu.vector_store %arg29[%c0_44, %c0_45], %47 {strides = array<i32>} : memref<16x96xf32, #tpu.memory_space<vmem>>, vector<16x96xf32>,
    %c0_46 = arith.constant 0 : index
    %c0_47 = arith.constant 0 : index
    %49 = vector.load %arg8[%c0_46, %c0_47] : memref<32x96xf32, #tpu.memory_space<vmem>>, vector<32x96xf32>
    %c0_48 = arith.constant 0 : index
    %c0_49 = arith.constant 0 : index
    %50 = vector.load %arg10[%c0_48, %c0_49] : memref<1x96xf32, #tpu.memory_space<vmem>>, vector<1x96xf32>
    %cst_50 = arith.constant 0.000000e+00 : f32
    %51 = vector.broadcast %cst_50 : f32 to vector<2x32xf32>
    %c0_51 = arith.constant 0 : index
    %c0_52 = arith.constant 0 : index
    %52 = vector.load %arg29[%c0_51, %c0_52] : memref<16x96xf32, #tpu.memory_space<vmem>>, vector<2x96xf32>
    %cst_53 = arith.constant dense<0.000000e+00> : vector<2x96xf32>
    %53 = tpu.matmul %51, %49, %cst_53 {dimension_numbers = #tpu.dot_dimension_numbers<[1], [0], [0], [1], [0, 0, 1, 1], [], []>} : vector<2x32xf32>, vector<32x96xf32>, vector<2x96xf32> -> vector<2x96xf32>
    %54 = vector.broadcast %50 : vector<1x96xf32> to vector<2x96xf32>
    %55 = arith.addf %53, %54 : vector<2x96xf32>
    %56 = vector.extract_strided_slice %52 {offsets = [0, 0], sizes = [2, 32], strides = [1, 1]} : vector<2x96xf32> to vector<2x32xf32>
    %57 = vector.extract_strided_slice %55 {offsets = [0, 0], sizes = [2, 32], strides = [1, 1]} : vector<2x96xf32> to vector<2x32xf32>
    %58 = arith.addf %56, %57 : vector<2x32xf32>
    %59 = arith.negf %58 : vector<2x32xf32>
    %60 = math.exp %59 : vector<2x32xf32>
    %cst_54 = arith.constant 1.000000e+00 : f32
    %61 = vector.broadcast %cst_54 : f32 to vector<2x32xf32>
    %62 = arith.addf %61, %60 : vector<2x32xf32>
    %63 = arith.divf %61, %62 : vector<2x32xf32>
    %64 = vector.extract_strided_slice %52 {offsets = [0, 32], sizes = [2, 32], strides = [1, 1]} : vector<2x96xf32> to vector<2x32xf32>
    %65 = vector.extract_strided_slice %55 {offsets = [0, 32], sizes = [2, 32], strides = [1, 1]} : vector<2x96xf32> to vector<2x32xf32>
    %66 = arith.addf %64, %65 : vector<2x32xf32>
    %67 = arith.negf %66 : vector<2x32xf32>
    %68 = math.exp %67 : vector<2x32xf32>
    %cst_55 = arith.constant 1.000000e+00 : f32
    %69 = vector.broadcast %cst_55 : f32 to vector<2x32xf32>
    %70 = arith.addf %69, %68 : vector<2x32xf32>
    %71 = arith.divf %69, %70 : vector<2x32xf32>
    %72 = vector.extract_strided_slice %52 {offsets = [0, 64], sizes = [2, 32], strides = [1, 1]} : vector<2x96xf32> to vector<2x32xf32>
    %73 = vector.extract_strided_slice %55 {offsets = [0, 64], sizes = [2, 32], strides = [1, 1]} : vector<2x96xf32> to vector<2x32xf32>
    %74 = arith.mulf %63, %73 : vector<2x32xf32>
    %75 = arith.addf %72, %74 : vector<2x32xf32>
    %76 = math.tanh %75 : vector<2x32xf32>
    %cst_56 = arith.constant 1.000000e+00 : f32
    %77 = vector.broadcast %cst_56 : f32 to vector<2x32xf32>
    %78 = arith.subf %77, %71 : vector<2x32xf32>
    %79 = arith.mulf %78, %76 : vector<2x32xf32>
    %80 = arith.mulf %71, %51 : vector<2x32xf32>
    %81 = arith.addf %79, %80 : vector<2x32xf32>
    %c0_57 = arith.constant 0 : index
    %c0_58 = arith.constant 0 : index
    %82 = vector.load %arg30[%c0_57, %c0_58] : memref<16x32xf32, #tpu.memory_space<vmem>>, vector<2x32xf32>
    tpu.vector_store %arg30[%c0_57, %c0_58], %81 {strides = array<i32>} : memref<16x32xf32, #tpu.memory_space<vmem>>, vector<2x32xf32>,
    %c2_59 = arith.constant 2 : index
    %c0_60 = arith.constant 0 : index
    %83 = vector.load %arg29[%c2_59, %c0_60] : memref<16x96xf32, #tpu.memory_space<vmem>>, vector<2x96xf32>
    %cst_61 = arith.constant dense<0.000000e+00> : vector<2x96xf32>
    %84 = tpu.matmul %81, %49, %cst_61 {dimension_numbers = #tpu.dot_dimension_numbers<[1], [0], [0], [1], [0, 0, 1, 1], [], []>} : vector<2x32xf32>, vector<32x96xf32>, vector<2x96xf32> -> vector<2x96xf32>
    %85 = vector.broadcast %50 : vector<1x96xf32> to vector<2x96xf32>
    %86 = arith.addf %84, %85 : vector<2x96xf32>
    %87 = vector.extract_strided_slice %83 {offsets = [0, 0], sizes = [2, 32], strides = [1, 1]} : vector<2x96xf32> to vector<2x32xf32>
    %88 = vector.extract_strided_slice %86 {offsets = [0, 0], sizes = [2, 32], strides = [1, 1]} : vector<2x96xf32> to vector<2x32xf32>
    %89 = arith.addf %87, %88 : vector<2x32xf32>
    %90 = arith.negf %89 : vector<2x32xf32>
    %91 = math.exp %90 : vector<2x32xf32>
    %cst_62 = arith.constant 1.000000e+00 : f32
    %92 = vector.broadcast %cst_62 : f32 to vector<2x32xf32>
    %93 = arith.addf %92, %91 : vector<2x32xf32>
    %94 = arith.divf %92, %93 : vector<2x32xf32>
    %95 = vector.extract_strided_slice %83 {offsets = [0, 32], sizes = [2, 32], strides = [1, 1]} : vector<2x96xf32> to vector<2x32xf32>
    %96 = vector.extract_strided_slice %86 {offsets = [0, 32], sizes = [2, 32], strides = [1, 1]} : vector<2x96xf32> to vector<2x32xf32>
    %97 = arith.addf %95, %96 : vector<2x32xf32>
    %98 = arith.negf %97 : vector<2x32xf32>
    %99 = math.exp %98 : vector<2x32xf32>
    %cst_63 = arith.constant 1.000000e+00 : f32
    %100 = vector.broadcast %cst_63 : f32 to vector<2x32xf32>
    %101 = arith.addf %100, %99 : vector<2x32xf32>
    %102 = arith.divf %100, %101 : vector<2x32xf32>
    %103 = vector.extract_strided_slice %83 {offsets = [0, 64], sizes = [2, 32], strides = [1, 1]} : vector<2x96xf32> to vector<2x32xf32>
    %104 = vector.extract_strided_slice %86 {offsets = [0, 64], sizes = [2, 32], strides = [1, 1]} : vector<2x96xf32> to vector<2x32xf32>
    %105 = arith.mulf %94, %104 : vector<2x32xf32>
    %106 = arith.addf %103, %105 : vector<2x32xf32>
    %107 = math.tanh %106 : vector<2x32xf32>
    %cst_64 = arith.constant 1.000000e+00 : f32
    %108 = vector.broadcast %cst_64 : f32 to vector<2x32xf32>
    %109 = arith.subf %108, %102 : vector<2x32xf32>
    %110 = arith.mulf %109, %107 : vector<2x32xf32>
    %111 = arith.mulf %102, %81 : vector<2x32xf32>
    %112 = arith.addf %110, %111 : vector<2x32xf32>
    %c2_65 = arith.constant 2 : index
    %c0_66 = arith.constant 0 : index
    %113 = vector.load %arg30[%c2_65, %c0_66] : memref<16x32xf32, #tpu.memory_space<vmem>>, vector<2x32xf32>
    tpu.vector_store %arg30[%c2_65, %c0_66], %112 {strides = array<i32>} : memref<16x32xf32, #tpu.memory_space<vmem>>, vector<2x32xf32>,
    %c4_67 = arith.constant 4 : index
    %c0_68 = arith.constant 0 : index
    %114 = vector.load %arg29[%c4_67, %c0_68] : memref<16x96xf32, #tpu.memory_space<vmem>>, vector<2x96xf32>
    %cst_69 = arith.constant dense<0.000000e+00> : vector<2x96xf32>
    %115 = tpu.matmul %112, %49, %cst_69 {dimension_numbers = #tpu.dot_dimension_numbers<[1], [0], [0], [1], [0, 0, 1, 1], [], []>} : vector<2x32xf32>, vector<32x96xf32>, vector<2x96xf32> -> vector<2x96xf32>
    %116 = vector.broadcast %50 : vector<1x96xf32> to vector<2x96xf32>
    %117 = arith.addf %115, %116 : vector<2x96xf32>
    %118 = vector.extract_strided_slice %114 {offsets = [0, 0], sizes = [2, 32], strides = [1, 1]} : vector<2x96xf32> to vector<2x32xf32>
    %119 = vector.extract_strided_slice %117 {offsets = [0, 0], sizes = [2, 32], strides = [1, 1]} : vector<2x96xf32> to vector<2x32xf32>
    %120 = arith.addf %118, %119 : vector<2x32xf32>
    %121 = arith.negf %120 : vector<2x32xf32>
    %122 = math.exp %121 : vector<2x32xf32>
    %cst_70 = arith.constant 1.000000e+00 : f32
    %123 = vector.broadcast %cst_70 : f32 to vector<2x32xf32>
    %124 = arith.addf %123, %122 : vector<2x32xf32>
    %125 = arith.divf %123, %124 : vector<2x32xf32>
    %126 = vector.extract_strided_slice %114 {offsets = [0, 32], sizes = [2, 32], strides = [1, 1]} : vector<2x96xf32> to vector<2x32xf32>
    %127 = vector.extract_strided_slice %117 {offsets = [0, 32], sizes = [2, 32], strides = [1, 1]} : vector<2x96xf32> to vector<2x32xf32>
    %128 = arith.addf %126, %127 : vector<2x32xf32>
    %129 = arith.negf %128 : vector<2x32xf32>
    %130 = math.exp %129 : vector<2x32xf32>
    %cst_71 = arith.constant 1.000000e+00 : f32
    %131 = vector.broadcast %cst_71 : f32 to vector<2x32xf32>
    %132 = arith.addf %131, %130 : vector<2x32xf32>
    %133 = arith.divf %131, %132 : vector<2x32xf32>
    %134 = vector.extract_strided_slice %114 {offsets = [0, 64], sizes = [2, 32], strides = [1, 1]} : vector<2x96xf32> to vector<2x32xf32>
    %135 = vector.extract_strided_slice %117 {offsets = [0, 64], sizes = [2, 32], strides = [1, 1]} : vector<2x96xf32> to vector<2x32xf32>
    %136 = arith.mulf %125, %135 : vector<2x32xf32>
    %137 = arith.addf %134, %136 : vector<2x32xf32>
    %138 = math.tanh %137 : vector<2x32xf32>
    %cst_72 = arith.constant 1.000000e+00 : f32
    %139 = vector.broadcast %cst_72 : f32 to vector<2x32xf32>
    %140 = arith.subf %139, %133 : vector<2x32xf32>
    %141 = arith.mulf %140, %138 : vector<2x32xf32>
    %142 = arith.mulf %133, %112 : vector<2x32xf32>
    %143 = arith.addf %141, %142 : vector<2x32xf32>
    %c4_73 = arith.constant 4 : index
    %c0_74 = arith.constant 0 : index
    %144 = vector.load %arg30[%c4_73, %c0_74] : memref<16x32xf32, #tpu.memory_space<vmem>>, vector<2x32xf32>
    tpu.vector_store %arg30[%c4_73, %c0_74], %143 {strides = array<i32>} : memref<16x32xf32, #tpu.memory_space<vmem>>, vector<2x32xf32>,
    %c6_75 = arith.constant 6 : index
    %c0_76 = arith.constant 0 : index
    %145 = vector.load %arg29[%c6_75, %c0_76] : memref<16x96xf32, #tpu.memory_space<vmem>>, vector<2x96xf32>
    %cst_77 = arith.constant dense<0.000000e+00> : vector<2x96xf32>
    %146 = tpu.matmul %143, %49, %cst_77 {dimension_numbers = #tpu.dot_dimension_numbers<[1], [0], [0], [1], [0, 0, 1, 1], [], []>} : vector<2x32xf32>, vector<32x96xf32>, vector<2x96xf32> -> vector<2x96xf32>
    %147 = vector.broadcast %50 : vector<1x96xf32> to vector<2x96xf32>
    %148 = arith.addf %146, %147 : vector<2x96xf32>
    %149 = vector.extract_strided_slice %145 {offsets = [0, 0], sizes = [2, 32], strides = [1, 1]} : vector<2x96xf32> to vector<2x32xf32>
    %150 = vector.extract_strided_slice %148 {offsets = [0, 0], sizes = [2, 32], strides = [1, 1]} : vector<2x96xf32> to vector<2x32xf32>
    %151 = arith.addf %149, %150 : vector<2x32xf32>
    %152 = arith.negf %151 : vector<2x32xf32>
    %153 = math.exp %152 : vector<2x32xf32>
    %cst_78 = arith.constant 1.000000e+00 : f32
    %154 = vector.broadcast %cst_78 : f32 to vector<2x32xf32>
    %155 = arith.addf %154, %153 : vector<2x32xf32>
    %156 = arith.divf %154, %155 : vector<2x32xf32>
    %157 = vector.extract_strided_slice %145 {offsets = [0, 32], sizes = [2, 32], strides = [1, 1]} : vector<2x96xf32> to vector<2x32xf32>
    %158 = vector.extract_strided_slice %148 {offsets = [0, 32], sizes = [2, 32], strides = [1, 1]} : vector<2x96xf32> to vector<2x32xf32>
    %159 = arith.addf %157, %158 : vector<2x32xf32>
    %160 = arith.negf %159 : vector<2x32xf32>
    %161 = math.exp %160 : vector<2x32xf32>
    %cst_79 = arith.constant 1.000000e+00 : f32
    %162 = vector.broadcast %cst_79 : f32 to vector<2x32xf32>
    %163 = arith.addf %162, %161 : vector<2x32xf32>
    %164 = arith.divf %162, %163 : vector<2x32xf32>
    %165 = vector.extract_strided_slice %145 {offsets = [0, 64], sizes = [2, 32], strides = [1, 1]} : vector<2x96xf32> to vector<2x32xf32>
    %166 = vector.extract_strided_slice %148 {offsets = [0, 64], sizes = [2, 32], strides = [1, 1]} : vector<2x96xf32> to vector<2x32xf32>
    %167 = arith.mulf %156, %166 : vector<2x32xf32>
    %168 = arith.addf %165, %167 : vector<2x32xf32>
    %169 = math.tanh %168 : vector<2x32xf32>
    %cst_80 = arith.constant 1.000000e+00 : f32
    %170 = vector.broadcast %cst_80 : f32 to vector<2x32xf32>
    %171 = arith.subf %170, %164 : vector<2x32xf32>
    %172 = arith.mulf %171, %169 : vector<2x32xf32>
    %173 = arith.mulf %164, %143 : vector<2x32xf32>
    %174 = arith.addf %172, %173 : vector<2x32xf32>
    %c6_81 = arith.constant 6 : index
    %c0_82 = arith.constant 0 : index
    %175 = vector.load %arg30[%c6_81, %c0_82] : memref<16x32xf32, #tpu.memory_space<vmem>>, vector<2x32xf32>
    tpu.vector_store %arg30[%c6_81, %c0_82], %174 {strides = array<i32>} : memref<16x32xf32, #tpu.memory_space<vmem>>, vector<2x32xf32>,
    %c8_83 = arith.constant 8 : index
    %c0_84 = arith.constant 0 : index
    %176 = vector.load %arg29[%c8_83, %c0_84] : memref<16x96xf32, #tpu.memory_space<vmem>>, vector<2x96xf32>
    %cst_85 = arith.constant dense<0.000000e+00> : vector<2x96xf32>
    %177 = tpu.matmul %174, %49, %cst_85 {dimension_numbers = #tpu.dot_dimension_numbers<[1], [0], [0], [1], [0, 0, 1, 1], [], []>} : vector<2x32xf32>, vector<32x96xf32>, vector<2x96xf32> -> vector<2x96xf32>
    %178 = vector.broadcast %50 : vector<1x96xf32> to vector<2x96xf32>
    %179 = arith.addf %177, %178 : vector<2x96xf32>
    %180 = vector.extract_strided_slice %176 {offsets = [0, 0], sizes = [2, 32], strides = [1, 1]} : vector<2x96xf32> to vector<2x32xf32>
    %181 = vector.extract_strided_slice %179 {offsets = [0, 0], sizes = [2, 32], strides = [1, 1]} : vector<2x96xf32> to vector<2x32xf32>
    %182 = arith.addf %180, %181 : vector<2x32xf32>
    %183 = arith.negf %182 : vector<2x32xf32>
    %184 = math.exp %183 : vector<2x32xf32>
    %cst_86 = arith.constant 1.000000e+00 : f32
    %185 = vector.broadcast %cst_86 : f32 to vector<2x32xf32>
    %186 = arith.addf %185, %184 : vector<2x32xf32>
    %187 = arith.divf %185, %186 : vector<2x32xf32>
    %188 = vector.extract_strided_slice %176 {offsets = [0, 32], sizes = [2, 32], strides = [1, 1]} : vector<2x96xf32> to vector<2x32xf32>
    %189 = vector.extract_strided_slice %179 {offsets = [0, 32], sizes = [2, 32], strides = [1, 1]} : vector<2x96xf32> to vector<2x32xf32>
    %190 = arith.addf %188, %189 : vector<2x32xf32>
    %191 = arith.negf %190 : vector<2x32xf32>
    %192 = math.exp %191 : vector<2x32xf32>
    %cst_87 = arith.constant 1.000000e+00 : f32
    %193 = vector.broadcast %cst_87 : f32 to vector<2x32xf32>
    %194 = arith.addf %193, %192 : vector<2x32xf32>
    %195 = arith.divf %193, %194 : vector<2x32xf32>
    %196 = vector.extract_strided_slice %176 {offsets = [0, 64], sizes = [2, 32], strides = [1, 1]} : vector<2x96xf32> to vector<2x32xf32>
    %197 = vector.extract_strided_slice %179 {offsets = [0, 64], sizes = [2, 32], strides = [1, 1]} : vector<2x96xf32> to vector<2x32xf32>
    %198 = arith.mulf %187, %197 : vector<2x32xf32>
    %199 = arith.addf %196, %198 : vector<2x32xf32>
    %200 = math.tanh %199 : vector<2x32xf32>
    %cst_88 = arith.constant 1.000000e+00 : f32
    %201 = vector.broadcast %cst_88 : f32 to vector<2x32xf32>
    %202 = arith.subf %201, %195 : vector<2x32xf32>
    %203 = arith.mulf %202, %200 : vector<2x32xf32>
    %204 = arith.mulf %195, %174 : vector<2x32xf32>
    %205 = arith.addf %203, %204 : vector<2x32xf32>
    %c8_89 = arith.constant 8 : index
    %c0_90 = arith.constant 0 : index
    %206 = vector.load %arg30[%c8_89, %c0_90] : memref<16x32xf32, #tpu.memory_space<vmem>>, vector<2x32xf32>
    tpu.vector_store %arg30[%c8_89, %c0_90], %205 {strides = array<i32>} : memref<16x32xf32, #tpu.memory_space<vmem>>, vector<2x32xf32>,
    %c10 = arith.constant 10 : index
    %c0_91 = arith.constant 0 : index
    %207 = vector.load %arg29[%c10, %c0_91] : memref<16x96xf32, #tpu.memory_space<vmem>>, vector<2x96xf32>
    %cst_92 = arith.constant dense<0.000000e+00> : vector<2x96xf32>
    %208 = tpu.matmul %205, %49, %cst_92 {dimension_numbers = #tpu.dot_dimension_numbers<[1], [0], [0], [1], [0, 0, 1, 1], [], []>} : vector<2x32xf32>, vector<32x96xf32>, vector<2x96xf32> -> vector<2x96xf32>
    %209 = vector.broadcast %50 : vector<1x96xf32> to vector<2x96xf32>
    %210 = arith.addf %208, %209 : vector<2x96xf32>
    %211 = vector.extract_strided_slice %207 {offsets = [0, 0], sizes = [2, 32], strides = [1, 1]} : vector<2x96xf32> to vector<2x32xf32>
    %212 = vector.extract_strided_slice %210 {offsets = [0, 0], sizes = [2, 32], strides = [1, 1]} : vector<2x96xf32> to vector<2x32xf32>
    %213 = arith.addf %211, %212 : vector<2x32xf32>
    %214 = arith.negf %213 : vector<2x32xf32>
    %215 = math.exp %214 : vector<2x32xf32>
    %cst_93 = arith.constant 1.000000e+00 : f32
    %216 = vector.broadcast %cst_93 : f32 to vector<2x32xf32>
    %217 = arith.addf %216, %215 : vector<2x32xf32>
    %218 = arith.divf %216, %217 : vector<2x32xf32>
    %219 = vector.extract_strided_slice %207 {offsets = [0, 32], sizes = [2, 32], strides = [1, 1]} : vector<2x96xf32> to vector<2x32xf32>
    %220 = vector.extract_strided_slice %210 {offsets = [0, 32], sizes = [2, 32], strides = [1, 1]} : vector<2x96xf32> to vector<2x32xf32>
    %221 = arith.addf %219, %220 : vector<2x32xf32>
    %222 = arith.negf %221 : vector<2x32xf32>
    %223 = math.exp %222 : vector<2x32xf32>
    %cst_94 = arith.constant 1.000000e+00 : f32
    %224 = vector.broadcast %cst_94 : f32 to vector<2x32xf32>
    %225 = arith.addf %224, %223 : vector<2x32xf32>
    %226 = arith.divf %224, %225 : vector<2x32xf32>
    %227 = vector.extract_strided_slice %207 {offsets = [0, 64], sizes = [2, 32], strides = [1, 1]} : vector<2x96xf32> to vector<2x32xf32>
    %228 = vector.extract_strided_slice %210 {offsets = [0, 64], sizes = [2, 32], strides = [1, 1]} : vector<2x96xf32> to vector<2x32xf32>
    %229 = arith.mulf %218, %228 : vector<2x32xf32>
    %230 = arith.addf %227, %229 : vector<2x32xf32>
    %231 = math.tanh %230 : vector<2x32xf32>
    %cst_95 = arith.constant 1.000000e+00 : f32
    %232 = vector.broadcast %cst_95 : f32 to vector<2x32xf32>
    %233 = arith.subf %232, %226 : vector<2x32xf32>
    %234 = arith.mulf %233, %231 : vector<2x32xf32>
    %235 = arith.mulf %226, %205 : vector<2x32xf32>
    %236 = arith.addf %234, %235 : vector<2x32xf32>
    %c10_96 = arith.constant 10 : index
    %c0_97 = arith.constant 0 : index
    %237 = vector.load %arg30[%c10_96, %c0_97] : memref<16x32xf32, #tpu.memory_space<vmem>>, vector<2x32xf32>
    tpu.vector_store %arg30[%c10_96, %c0_97], %236 {strides = array<i32>} : memref<16x32xf32, #tpu.memory_space<vmem>>, vector<2x32xf32>,
    %c12 = arith.constant 12 : index
    %c0_98 = arith.constant 0 : index
    %238 = vector.load %arg29[%c12, %c0_98] : memref<16x96xf32, #tpu.memory_space<vmem>>, vector<2x96xf32>
    %cst_99 = arith.constant dense<0.000000e+00> : vector<2x96xf32>
    %239 = tpu.matmul %236, %49, %cst_99 {dimension_numbers = #tpu.dot_dimension_numbers<[1], [0], [0], [1], [0, 0, 1, 1], [], []>} : vector<2x32xf32>, vector<32x96xf32>, vector<2x96xf32> -> vector<2x96xf32>
    %240 = vector.broadcast %50 : vector<1x96xf32> to vector<2x96xf32>
    %241 = arith.addf %239, %240 : vector<2x96xf32>
    %242 = vector.extract_strided_slice %238 {offsets = [0, 0], sizes = [2, 32], strides = [1, 1]} : vector<2x96xf32> to vector<2x32xf32>
    %243 = vector.extract_strided_slice %241 {offsets = [0, 0], sizes = [2, 32], strides = [1, 1]} : vector<2x96xf32> to vector<2x32xf32>
    %244 = arith.addf %242, %243 : vector<2x32xf32>
    %245 = arith.negf %244 : vector<2x32xf32>
    %246 = math.exp %245 : vector<2x32xf32>
    %cst_100 = arith.constant 1.000000e+00 : f32
    %247 = vector.broadcast %cst_100 : f32 to vector<2x32xf32>
    %248 = arith.addf %247, %246 : vector<2x32xf32>
    %249 = arith.divf %247, %248 : vector<2x32xf32>
    %250 = vector.extract_strided_slice %238 {offsets = [0, 32], sizes = [2, 32], strides = [1, 1]} : vector<2x96xf32> to vector<2x32xf32>
    %251 = vector.extract_strided_slice %241 {offsets = [0, 32], sizes = [2, 32], strides = [1, 1]} : vector<2x96xf32> to vector<2x32xf32>
    %252 = arith.addf %250, %251 : vector<2x32xf32>
    %253 = arith.negf %252 : vector<2x32xf32>
    %254 = math.exp %253 : vector<2x32xf32>
    %cst_101 = arith.constant 1.000000e+00 : f32
    %255 = vector.broadcast %cst_101 : f32 to vector<2x32xf32>
    %256 = arith.addf %255, %254 : vector<2x32xf32>
    %257 = arith.divf %255, %256 : vector<2x32xf32>
    %258 = vector.extract_strided_slice %238 {offsets = [0, 64], sizes = [2, 32], strides = [1, 1]} : vector<2x96xf32> to vector<2x32xf32>
    %259 = vector.extract_strided_slice %241 {offsets = [0, 64], sizes = [2, 32], strides = [1, 1]} : vector<2x96xf32> to vector<2x32xf32>
    %260 = arith.mulf %249, %259 : vector<2x32xf32>
    %261 = arith.addf %258, %260 : vector<2x32xf32>
    %262 = math.tanh %261 : vector<2x32xf32>
    %cst_102 = arith.constant 1.000000e+00 : f32
    %263 = vector.broadcast %cst_102 : f32 to vector<2x32xf32>
    %264 = arith.subf %263, %257 : vector<2x32xf32>
    %265 = arith.mulf %264, %262 : vector<2x32xf32>
    %266 = arith.mulf %257, %236 : vector<2x32xf32>
    %267 = arith.addf %265, %266 : vector<2x32xf32>
    %c12_103 = arith.constant 12 : index
    %c0_104 = arith.constant 0 : index
    %268 = vector.load %arg30[%c12_103, %c0_104] : memref<16x32xf32, #tpu.memory_space<vmem>>, vector<2x32xf32>
    tpu.vector_store %arg30[%c12_103, %c0_104], %267 {strides = array<i32>} : memref<16x32xf32, #tpu.memory_space<vmem>>, vector<2x32xf32>,
    %c14 = arith.constant 14 : index
    %c0_105 = arith.constant 0 : index
    %269 = vector.load %arg29[%c14, %c0_105] : memref<16x96xf32, #tpu.memory_space<vmem>>, vector<2x96xf32>
    %cst_106 = arith.constant dense<0.000000e+00> : vector<2x96xf32>
    %270 = tpu.matmul %267, %49, %cst_106 {dimension_numbers = #tpu.dot_dimension_numbers<[1], [0], [0], [1], [0, 0, 1, 1], [], []>} : vector<2x32xf32>, vector<32x96xf32>, vector<2x96xf32> -> vector<2x96xf32>
    %271 = vector.broadcast %50 : vector<1x96xf32> to vector<2x96xf32>
    %272 = arith.addf %270, %271 : vector<2x96xf32>
    %273 = vector.extract_strided_slice %269 {offsets = [0, 0], sizes = [2, 32], strides = [1, 1]} : vector<2x96xf32> to vector<2x32xf32>
    %274 = vector.extract_strided_slice %272 {offsets = [0, 0], sizes = [2, 32], strides = [1, 1]} : vector<2x96xf32> to vector<2x32xf32>
    %275 = arith.addf %273, %274 : vector<2x32xf32>
    %276 = arith.negf %275 : vector<2x32xf32>
    %277 = math.exp %276 : vector<2x32xf32>
    %cst_107 = arith.constant 1.000000e+00 : f32
    %278 = vector.broadcast %cst_107 : f32 to vector<2x32xf32>
    %279 = arith.addf %278, %277 : vector<2x32xf32>
    %280 = arith.divf %278, %279 : vector<2x32xf32>
    %281 = vector.extract_strided_slice %269 {offsets = [0, 32], sizes = [2, 32], strides = [1, 1]} : vector<2x96xf32> to vector<2x32xf32>
    %282 = vector.extract_strided_slice %272 {offsets = [0, 32], sizes = [2, 32], strides = [1, 1]} : vector<2x96xf32> to vector<2x32xf32>
    %283 = arith.addf %281, %282 : vector<2x32xf32>
    %284 = arith.negf %283 : vector<2x32xf32>
    %285 = math.exp %284 : vector<2x32xf32>
    %cst_108 = arith.constant 1.000000e+00 : f32
    %286 = vector.broadcast %cst_108 : f32 to vector<2x32xf32>
    %287 = arith.addf %286, %285 : vector<2x32xf32>
    %288 = arith.divf %286, %287 : vector<2x32xf32>
    %289 = vector.extract_strided_slice %269 {offsets = [0, 64], sizes = [2, 32], strides = [1, 1]} : vector<2x96xf32> to vector<2x32xf32>
    %290 = vector.extract_strided_slice %272 {offsets = [0, 64], sizes = [2, 32], strides = [1, 1]} : vector<2x96xf32> to vector<2x32xf32>
    %291 = arith.mulf %280, %290 : vector<2x32xf32>
    %292 = arith.addf %289, %291 : vector<2x32xf32>
    %293 = math.tanh %292 : vector<2x32xf32>
    %cst_109 = arith.constant 1.000000e+00 : f32
    %294 = vector.broadcast %cst_109 : f32 to vector<2x32xf32>
    %295 = arith.subf %294, %288 : vector<2x32xf32>
    %296 = arith.mulf %295, %293 : vector<2x32xf32>
    %297 = arith.mulf %288, %267 : vector<2x32xf32>
    %298 = arith.addf %296, %297 : vector<2x32xf32>
    %c14_110 = arith.constant 14 : index
    %c0_111 = arith.constant 0 : index
    %299 = vector.load %arg30[%c14_110, %c0_111] : memref<16x32xf32, #tpu.memory_space<vmem>>, vector<2x32xf32>
    tpu.vector_store %arg30[%c14_110, %c0_111], %298 {strides = array<i32>} : memref<16x32xf32, #tpu.memory_space<vmem>>, vector<2x32xf32>,
    %c0_112 = arith.constant 0 : index
    %c0_113 = arith.constant 0 : index
    %300 = vector.load %arg30[%c0_112, %c0_113] : memref<16x32xf32, #tpu.memory_space<vmem>>, vector<16x32xf32>
    %c0_114 = arith.constant 0 : index
    %c0_115 = arith.constant 0 : index
    %301 = vector.load %arg11[%c0_114, %c0_115] : memref<32x96xf32, #tpu.memory_space<vmem>>, vector<32x96xf32>
    %c0_116 = arith.constant 0 : index
    %c0_117 = arith.constant 0 : index
    %302 = vector.load %arg13[%c0_116, %c0_117] : memref<1x96xf32, #tpu.memory_space<vmem>>, vector<1x96xf32>
    %cst_118 = arith.constant dense<0.000000e+00> : vector<16x96xf32>
    %303 = tpu.matmul %42, %301, %cst_118 {dimension_numbers = #tpu.dot_dimension_numbers<[1], [0], [0], [1], [0, 0, 1, 1], [], []>} : vector<16x32xf32>, vector<32x96xf32>, vector<16x96xf32> -> vector<16x96xf32>
    %304 = vector.broadcast %302 : vector<1x96xf32> to vector<16x96xf32>
    %305 = arith.addf %304, %303 : vector<16x96xf32>
    %c0_119 = arith.constant 0 : index
    %c0_120 = arith.constant 0 : index
    %306 = vector.load %arg29[%c0_119, %c0_120] : memref<16x96xf32, #tpu.memory_space<vmem>>, vector<16x96xf32>
    tpu.vector_store %arg29[%c0_119, %c0_120], %305 {strides = array<i32>} : memref<16x96xf32, #tpu.memory_space<vmem>>, vector<16x96xf32>,
    %c0_121 = arith.constant 0 : index
    %c0_122 = arith.constant 0 : index
    %307 = vector.load %arg12[%c0_121, %c0_122] : memref<32x96xf32, #tpu.memory_space<vmem>>, vector<32x96xf32>
    %c0_123 = arith.constant 0 : index
    %c0_124 = arith.constant 0 : index
    %308 = vector.load %arg14[%c0_123, %c0_124] : memref<1x96xf32, #tpu.memory_space<vmem>>, vector<1x96xf32>
    %cst_125 = arith.constant 0.000000e+00 : f32
    %309 = vector.broadcast %cst_125 : f32 to vector<2x32xf32>
    %c14_126 = arith.constant 14 : index
    %c0_127 = arith.constant 0 : index
    %310 = vector.load %arg29[%c14_126, %c0_127] : memref<16x96xf32, #tpu.memory_space<vmem>>, vector<2x96xf32>
    %cst_128 = arith.constant dense<0.000000e+00> : vector<2x96xf32>
    %311 = tpu.matmul %309, %307, %cst_128 {dimension_numbers = #tpu.dot_dimension_numbers<[1], [0], [0], [1], [0, 0, 1, 1], [], []>} : vector<2x32xf32>, vector<32x96xf32>, vector<2x96xf32> -> vector<2x96xf32>
    %312 = vector.broadcast %308 : vector<1x96xf32> to vector<2x96xf32>
    %313 = arith.addf %311, %312 : vector<2x96xf32>
    %314 = vector.extract_strided_slice %310 {offsets = [0, 0], sizes = [2, 32], strides = [1, 1]} : vector<2x96xf32> to vector<2x32xf32>
    %315 = vector.extract_strided_slice %313 {offsets = [0, 0], sizes = [2, 32], strides = [1, 1]} : vector<2x96xf32> to vector<2x32xf32>
    %316 = arith.addf %314, %315 : vector<2x32xf32>
    %317 = arith.negf %316 : vector<2x32xf32>
    %318 = math.exp %317 : vector<2x32xf32>
    %cst_129 = arith.constant 1.000000e+00 : f32
    %319 = vector.broadcast %cst_129 : f32 to vector<2x32xf32>
    %320 = arith.addf %319, %318 : vector<2x32xf32>
    %321 = arith.divf %319, %320 : vector<2x32xf32>
    %322 = vector.extract_strided_slice %310 {offsets = [0, 32], sizes = [2, 32], strides = [1, 1]} : vector<2x96xf32> to vector<2x32xf32>
    %323 = vector.extract_strided_slice %313 {offsets = [0, 32], sizes = [2, 32], strides = [1, 1]} : vector<2x96xf32> to vector<2x32xf32>
    %324 = arith.addf %322, %323 : vector<2x32xf32>
    %325 = arith.negf %324 : vector<2x32xf32>
    %326 = math.exp %325 : vector<2x32xf32>
    %cst_130 = arith.constant 1.000000e+00 : f32
    %327 = vector.broadcast %cst_130 : f32 to vector<2x32xf32>
    %328 = arith.addf %327, %326 : vector<2x32xf32>
    %329 = arith.divf %327, %328 : vector<2x32xf32>
    %330 = vector.extract_strided_slice %310 {offsets = [0, 64], sizes = [2, 32], strides = [1, 1]} : vector<2x96xf32> to vector<2x32xf32>
    %331 = vector.extract_strided_slice %313 {offsets = [0, 64], sizes = [2, 32], strides = [1, 1]} : vector<2x96xf32> to vector<2x32xf32>
    %332 = arith.mulf %321, %331 : vector<2x32xf32>
    %333 = arith.addf %330, %332 : vector<2x32xf32>
    %334 = math.tanh %333 : vector<2x32xf32>
    %cst_131 = arith.constant 1.000000e+00 : f32
    %335 = vector.broadcast %cst_131 : f32 to vector<2x32xf32>
    %336 = arith.subf %335, %329 : vector<2x32xf32>
    %337 = arith.mulf %336, %334 : vector<2x32xf32>
    %338 = arith.mulf %329, %309 : vector<2x32xf32>
    %339 = arith.addf %337, %338 : vector<2x32xf32>
    %c14_132 = arith.constant 14 : index
    %c0_133 = arith.constant 0 : index
    %340 = vector.load %arg31[%c14_132, %c0_133] : memref<16x32xf32, #tpu.memory_space<vmem>>, vector<2x32xf32>
    tpu.vector_store %arg31[%c14_132, %c0_133], %339 {strides = array<i32>} : memref<16x32xf32, #tpu.memory_space<vmem>>, vector<2x32xf32>,
    %c12_134 = arith.constant 12 : index
    %c0_135 = arith.constant 0 : index
    %341 = vector.load %arg29[%c12_134, %c0_135] : memref<16x96xf32, #tpu.memory_space<vmem>>, vector<2x96xf32>
    %cst_136 = arith.constant dense<0.000000e+00> : vector<2x96xf32>
    %342 = tpu.matmul %339, %307, %cst_136 {dimension_numbers = #tpu.dot_dimension_numbers<[1], [0], [0], [1], [0, 0, 1, 1], [], []>} : vector<2x32xf32>, vector<32x96xf32>, vector<2x96xf32> -> vector<2x96xf32>
    %343 = vector.broadcast %308 : vector<1x96xf32> to vector<2x96xf32>
    %344 = arith.addf %342, %343 : vector<2x96xf32>
    %345 = vector.extract_strided_slice %341 {offsets = [0, 0], sizes = [2, 32], strides = [1, 1]} : vector<2x96xf32> to vector<2x32xf32>
    %346 = vector.extract_strided_slice %344 {offsets = [0, 0], sizes = [2, 32], strides = [1, 1]} : vector<2x96xf32> to vector<2x32xf32>
    %347 = arith.addf %345, %346 : vector<2x32xf32>
    %348 = arith.negf %347 : vector<2x32xf32>
    %349 = math.exp %348 : vector<2x32xf32>
    %cst_137 = arith.constant 1.000000e+00 : f32
    %350 = vector.broadcast %cst_137 : f32 to vector<2x32xf32>
    %351 = arith.addf %350, %349 : vector<2x32xf32>
    %352 = arith.divf %350, %351 : vector<2x32xf32>
    %353 = vector.extract_strided_slice %341 {offsets = [0, 32], sizes = [2, 32], strides = [1, 1]} : vector<2x96xf32> to vector<2x32xf32>
    %354 = vector.extract_strided_slice %344 {offsets = [0, 32], sizes = [2, 32], strides = [1, 1]} : vector<2x96xf32> to vector<2x32xf32>
    %355 = arith.addf %353, %354 : vector<2x32xf32>
    %356 = arith.negf %355 : vector<2x32xf32>
    %357 = math.exp %356 : vector<2x32xf32>
    %cst_138 = arith.constant 1.000000e+00 : f32
    %358 = vector.broadcast %cst_138 : f32 to vector<2x32xf32>
    %359 = arith.addf %358, %357 : vector<2x32xf32>
    %360 = arith.divf %358, %359 : vector<2x32xf32>
    %361 = vector.extract_strided_slice %341 {offsets = [0, 64], sizes = [2, 32], strides = [1, 1]} : vector<2x96xf32> to vector<2x32xf32>
    %362 = vector.extract_strided_slice %344 {offsets = [0, 64], sizes = [2, 32], strides = [1, 1]} : vector<2x96xf32> to vector<2x32xf32>
    %363 = arith.mulf %352, %362 : vector<2x32xf32>
    %364 = arith.addf %361, %363 : vector<2x32xf32>
    %365 = math.tanh %364 : vector<2x32xf32>
    %cst_139 = arith.constant 1.000000e+00 : f32
    %366 = vector.broadcast %cst_139 : f32 to vector<2x32xf32>
    %367 = arith.subf %366, %360 : vector<2x32xf32>
    %368 = arith.mulf %367, %365 : vector<2x32xf32>
    %369 = arith.mulf %360, %339 : vector<2x32xf32>
    %370 = arith.addf %368, %369 : vector<2x32xf32>
    %c12_140 = arith.constant 12 : index
    %c0_141 = arith.constant 0 : index
    %371 = vector.load %arg31[%c12_140, %c0_141] : memref<16x32xf32, #tpu.memory_space<vmem>>, vector<2x32xf32>
    tpu.vector_store %arg31[%c12_140, %c0_141], %370 {strides = array<i32>} : memref<16x32xf32, #tpu.memory_space<vmem>>, vector<2x32xf32>,
    %c10_142 = arith.constant 10 : index
    %c0_143 = arith.constant 0 : index
    %372 = vector.load %arg29[%c10_142, %c0_143] : memref<16x96xf32, #tpu.memory_space<vmem>>, vector<2x96xf32>
    %cst_144 = arith.constant dense<0.000000e+00> : vector<2x96xf32>
    %373 = tpu.matmul %370, %307, %cst_144 {dimension_numbers = #tpu.dot_dimension_numbers<[1], [0], [0], [1], [0, 0, 1, 1], [], []>} : vector<2x32xf32>, vector<32x96xf32>, vector<2x96xf32> -> vector<2x96xf32>
    %374 = vector.broadcast %308 : vector<1x96xf32> to vector<2x96xf32>
    %375 = arith.addf %373, %374 : vector<2x96xf32>
    %376 = vector.extract_strided_slice %372 {offsets = [0, 0], sizes = [2, 32], strides = [1, 1]} : vector<2x96xf32> to vector<2x32xf32>
    %377 = vector.extract_strided_slice %375 {offsets = [0, 0], sizes = [2, 32], strides = [1, 1]} : vector<2x96xf32> to vector<2x32xf32>
    %378 = arith.addf %376, %377 : vector<2x32xf32>
    %379 = arith.negf %378 : vector<2x32xf32>
    %380 = math.exp %379 : vector<2x32xf32>
    %cst_145 = arith.constant 1.000000e+00 : f32
    %381 = vector.broadcast %cst_145 : f32 to vector<2x32xf32>
    %382 = arith.addf %381, %380 : vector<2x32xf32>
    %383 = arith.divf %381, %382 : vector<2x32xf32>
    %384 = vector.extract_strided_slice %372 {offsets = [0, 32], sizes = [2, 32], strides = [1, 1]} : vector<2x96xf32> to vector<2x32xf32>
    %385 = vector.extract_strided_slice %375 {offsets = [0, 32], sizes = [2, 32], strides = [1, 1]} : vector<2x96xf32> to vector<2x32xf32>
    %386 = arith.addf %384, %385 : vector<2x32xf32>
    %387 = arith.negf %386 : vector<2x32xf32>
    %388 = math.exp %387 : vector<2x32xf32>
    %cst_146 = arith.constant 1.000000e+00 : f32
    %389 = vector.broadcast %cst_146 : f32 to vector<2x32xf32>
    %390 = arith.addf %389, %388 : vector<2x32xf32>
    %391 = arith.divf %389, %390 : vector<2x32xf32>
    %392 = vector.extract_strided_slice %372 {offsets = [0, 64], sizes = [2, 32], strides = [1, 1]} : vector<2x96xf32> to vector<2x32xf32>
    %393 = vector.extract_strided_slice %375 {offsets = [0, 64], sizes = [2, 32], strides = [1, 1]} : vector<2x96xf32> to vector<2x32xf32>
    %394 = arith.mulf %383, %393 : vector<2x32xf32>
    %395 = arith.addf %392, %394 : vector<2x32xf32>
    %396 = math.tanh %395 : vector<2x32xf32>
    %cst_147 = arith.constant 1.000000e+00 : f32
    %397 = vector.broadcast %cst_147 : f32 to vector<2x32xf32>
    %398 = arith.subf %397, %391 : vector<2x32xf32>
    %399 = arith.mulf %398, %396 : vector<2x32xf32>
    %400 = arith.mulf %391, %370 : vector<2x32xf32>
    %401 = arith.addf %399, %400 : vector<2x32xf32>
    %c10_148 = arith.constant 10 : index
    %c0_149 = arith.constant 0 : index
    %402 = vector.load %arg31[%c10_148, %c0_149] : memref<16x32xf32, #tpu.memory_space<vmem>>, vector<2x32xf32>
    tpu.vector_store %arg31[%c10_148, %c0_149], %401 {strides = array<i32>} : memref<16x32xf32, #tpu.memory_space<vmem>>, vector<2x32xf32>,
    %c8_150 = arith.constant 8 : index
    %c0_151 = arith.constant 0 : index
    %403 = vector.load %arg29[%c8_150, %c0_151] : memref<16x96xf32, #tpu.memory_space<vmem>>, vector<2x96xf32>
    %cst_152 = arith.constant dense<0.000000e+00> : vector<2x96xf32>
    %404 = tpu.matmul %401, %307, %cst_152 {dimension_numbers = #tpu.dot_dimension_numbers<[1], [0], [0], [1], [0, 0, 1, 1], [], []>} : vector<2x32xf32>, vector<32x96xf32>, vector<2x96xf32> -> vector<2x96xf32>
    %405 = vector.broadcast %308 : vector<1x96xf32> to vector<2x96xf32>
    %406 = arith.addf %404, %405 : vector<2x96xf32>
    %407 = vector.extract_strided_slice %403 {offsets = [0, 0], sizes = [2, 32], strides = [1, 1]} : vector<2x96xf32> to vector<2x32xf32>
    %408 = vector.extract_strided_slice %406 {offsets = [0, 0], sizes = [2, 32], strides = [1, 1]} : vector<2x96xf32> to vector<2x32xf32>
    %409 = arith.addf %407, %408 : vector<2x32xf32>
    %410 = arith.negf %409 : vector<2x32xf32>
    %411 = math.exp %410 : vector<2x32xf32>
    %cst_153 = arith.constant 1.000000e+00 : f32
    %412 = vector.broadcast %cst_153 : f32 to vector<2x32xf32>
    %413 = arith.addf %412, %411 : vector<2x32xf32>
    %414 = arith.divf %412, %413 : vector<2x32xf32>
    %415 = vector.extract_strided_slice %403 {offsets = [0, 32], sizes = [2, 32], strides = [1, 1]} : vector<2x96xf32> to vector<2x32xf32>
    %416 = vector.extract_strided_slice %406 {offsets = [0, 32], sizes = [2, 32], strides = [1, 1]} : vector<2x96xf32> to vector<2x32xf32>
    %417 = arith.addf %415, %416 : vector<2x32xf32>
    %418 = arith.negf %417 : vector<2x32xf32>
    %419 = math.exp %418 : vector<2x32xf32>
    %cst_154 = arith.constant 1.000000e+00 : f32
    %420 = vector.broadcast %cst_154 : f32 to vector<2x32xf32>
    %421 = arith.addf %420, %419 : vector<2x32xf32>
    %422 = arith.divf %420, %421 : vector<2x32xf32>
    %423 = vector.extract_strided_slice %403 {offsets = [0, 64], sizes = [2, 32], strides = [1, 1]} : vector<2x96xf32> to vector<2x32xf32>
    %424 = vector.extract_strided_slice %406 {offsets = [0, 64], sizes = [2, 32], strides = [1, 1]} : vector<2x96xf32> to vector<2x32xf32>
    %425 = arith.mulf %414, %424 : vector<2x32xf32>
    %426 = arith.addf %423, %425 : vector<2x32xf32>
    %427 = math.tanh %426 : vector<2x32xf32>
    %cst_155 = arith.constant 1.000000e+00 : f32
    %428 = vector.broadcast %cst_155 : f32 to vector<2x32xf32>
    %429 = arith.subf %428, %422 : vector<2x32xf32>
    %430 = arith.mulf %429, %427 : vector<2x32xf32>
    %431 = arith.mulf %422, %401 : vector<2x32xf32>
    %432 = arith.addf %430, %431 : vector<2x32xf32>
    %c8_156 = arith.constant 8 : index
    %c0_157 = arith.constant 0 : index
    %433 = vector.load %arg31[%c8_156, %c0_157] : memref<16x32xf32, #tpu.memory_space<vmem>>, vector<2x32xf32>
    tpu.vector_store %arg31[%c8_156, %c0_157], %432 {strides = array<i32>} : memref<16x32xf32, #tpu.memory_space<vmem>>, vector<2x32xf32>,
    %c6_158 = arith.constant 6 : index
    %c0_159 = arith.constant 0 : index
    %434 = vector.load %arg29[%c6_158, %c0_159] : memref<16x96xf32, #tpu.memory_space<vmem>>, vector<2x96xf32>
    %cst_160 = arith.constant dense<0.000000e+00> : vector<2x96xf32>
    %435 = tpu.matmul %432, %307, %cst_160 {dimension_numbers = #tpu.dot_dimension_numbers<[1], [0], [0], [1], [0, 0, 1, 1], [], []>} : vector<2x32xf32>, vector<32x96xf32>, vector<2x96xf32> -> vector<2x96xf32>
    %436 = vector.broadcast %308 : vector<1x96xf32> to vector<2x96xf32>
    %437 = arith.addf %435, %436 : vector<2x96xf32>
    %438 = vector.extract_strided_slice %434 {offsets = [0, 0], sizes = [2, 32], strides = [1, 1]} : vector<2x96xf32> to vector<2x32xf32>
    %439 = vector.extract_strided_slice %437 {offsets = [0, 0], sizes = [2, 32], strides = [1, 1]} : vector<2x96xf32> to vector<2x32xf32>
    %440 = arith.addf %438, %439 : vector<2x32xf32>
    %441 = arith.negf %440 : vector<2x32xf32>
    %442 = math.exp %441 : vector<2x32xf32>
    %cst_161 = arith.constant 1.000000e+00 : f32
    %443 = vector.broadcast %cst_161 : f32 to vector<2x32xf32>
    %444 = arith.addf %443, %442 : vector<2x32xf32>
    %445 = arith.divf %443, %444 : vector<2x32xf32>
    %446 = vector.extract_strided_slice %434 {offsets = [0, 32], sizes = [2, 32], strides = [1, 1]} : vector<2x96xf32> to vector<2x32xf32>
    %447 = vector.extract_strided_slice %437 {offsets = [0, 32], sizes = [2, 32], strides = [1, 1]} : vector<2x96xf32> to vector<2x32xf32>
    %448 = arith.addf %446, %447 : vector<2x32xf32>
    %449 = arith.negf %448 : vector<2x32xf32>
    %450 = math.exp %449 : vector<2x32xf32>
    %cst_162 = arith.constant 1.000000e+00 : f32
    %451 = vector.broadcast %cst_162 : f32 to vector<2x32xf32>
    %452 = arith.addf %451, %450 : vector<2x32xf32>
    %453 = arith.divf %451, %452 : vector<2x32xf32>
    %454 = vector.extract_strided_slice %434 {offsets = [0, 64], sizes = [2, 32], strides = [1, 1]} : vector<2x96xf32> to vector<2x32xf32>
    %455 = vector.extract_strided_slice %437 {offsets = [0, 64], sizes = [2, 32], strides = [1, 1]} : vector<2x96xf32> to vector<2x32xf32>
    %456 = arith.mulf %445, %455 : vector<2x32xf32>
    %457 = arith.addf %454, %456 : vector<2x32xf32>
    %458 = math.tanh %457 : vector<2x32xf32>
    %cst_163 = arith.constant 1.000000e+00 : f32
    %459 = vector.broadcast %cst_163 : f32 to vector<2x32xf32>
    %460 = arith.subf %459, %453 : vector<2x32xf32>
    %461 = arith.mulf %460, %458 : vector<2x32xf32>
    %462 = arith.mulf %453, %432 : vector<2x32xf32>
    %463 = arith.addf %461, %462 : vector<2x32xf32>
    %c6_164 = arith.constant 6 : index
    %c0_165 = arith.constant 0 : index
    %464 = vector.load %arg31[%c6_164, %c0_165] : memref<16x32xf32, #tpu.memory_space<vmem>>, vector<2x32xf32>
    tpu.vector_store %arg31[%c6_164, %c0_165], %463 {strides = array<i32>} : memref<16x32xf32, #tpu.memory_space<vmem>>, vector<2x32xf32>,
    %c4_166 = arith.constant 4 : index
    %c0_167 = arith.constant 0 : index
    %465 = vector.load %arg29[%c4_166, %c0_167] : memref<16x96xf32, #tpu.memory_space<vmem>>, vector<2x96xf32>
    %cst_168 = arith.constant dense<0.000000e+00> : vector<2x96xf32>
    %466 = tpu.matmul %463, %307, %cst_168 {dimension_numbers = #tpu.dot_dimension_numbers<[1], [0], [0], [1], [0, 0, 1, 1], [], []>} : vector<2x32xf32>, vector<32x96xf32>, vector<2x96xf32> -> vector<2x96xf32>
    %467 = vector.broadcast %308 : vector<1x96xf32> to vector<2x96xf32>
    %468 = arith.addf %466, %467 : vector<2x96xf32>
    %469 = vector.extract_strided_slice %465 {offsets = [0, 0], sizes = [2, 32], strides = [1, 1]} : vector<2x96xf32> to vector<2x32xf32>
    %470 = vector.extract_strided_slice %468 {offsets = [0, 0], sizes = [2, 32], strides = [1, 1]} : vector<2x96xf32> to vector<2x32xf32>
    %471 = arith.addf %469, %470 : vector<2x32xf32>
    %472 = arith.negf %471 : vector<2x32xf32>
    %473 = math.exp %472 : vector<2x32xf32>
    %cst_169 = arith.constant 1.000000e+00 : f32
    %474 = vector.broadcast %cst_169 : f32 to vector<2x32xf32>
    %475 = arith.addf %474, %473 : vector<2x32xf32>
    %476 = arith.divf %474, %475 : vector<2x32xf32>
    %477 = vector.extract_strided_slice %465 {offsets = [0, 32], sizes = [2, 32], strides = [1, 1]} : vector<2x96xf32> to vector<2x32xf32>
    %478 = vector.extract_strided_slice %468 {offsets = [0, 32], sizes = [2, 32], strides = [1, 1]} : vector<2x96xf32> to vector<2x32xf32>
    %479 = arith.addf %477, %478 : vector<2x32xf32>
    %480 = arith.negf %479 : vector<2x32xf32>
    %481 = math.exp %480 : vector<2x32xf32>
    %cst_170 = arith.constant 1.000000e+00 : f32
    %482 = vector.broadcast %cst_170 : f32 to vector<2x32xf32>
    %483 = arith.addf %482, %481 : vector<2x32xf32>
    %484 = arith.divf %482, %483 : vector<2x32xf32>
    %485 = vector.extract_strided_slice %465 {offsets = [0, 64], sizes = [2, 32], strides = [1, 1]} : vector<2x96xf32> to vector<2x32xf32>
    %486 = vector.extract_strided_slice %468 {offsets = [0, 64], sizes = [2, 32], strides = [1, 1]} : vector<2x96xf32> to vector<2x32xf32>
    %487 = arith.mulf %476, %486 : vector<2x32xf32>
    %488 = arith.addf %485, %487 : vector<2x32xf32>
    %489 = math.tanh %488 : vector<2x32xf32>
    %cst_171 = arith.constant 1.000000e+00 : f32
    %490 = vector.broadcast %cst_171 : f32 to vector<2x32xf32>
    %491 = arith.subf %490, %484 : vector<2x32xf32>
    %492 = arith.mulf %491, %489 : vector<2x32xf32>
    %493 = arith.mulf %484, %463 : vector<2x32xf32>
    %494 = arith.addf %492, %493 : vector<2x32xf32>
    %c4_172 = arith.constant 4 : index
    %c0_173 = arith.constant 0 : index
    %495 = vector.load %arg31[%c4_172, %c0_173] : memref<16x32xf32, #tpu.memory_space<vmem>>, vector<2x32xf32>
    tpu.vector_store %arg31[%c4_172, %c0_173], %494 {strides = array<i32>} : memref<16x32xf32, #tpu.memory_space<vmem>>, vector<2x32xf32>,
    %c2_174 = arith.constant 2 : index
    %c0_175 = arith.constant 0 : index
    %496 = vector.load %arg29[%c2_174, %c0_175] : memref<16x96xf32, #tpu.memory_space<vmem>>, vector<2x96xf32>
    %cst_176 = arith.constant dense<0.000000e+00> : vector<2x96xf32>
    %497 = tpu.matmul %494, %307, %cst_176 {dimension_numbers = #tpu.dot_dimension_numbers<[1], [0], [0], [1], [0, 0, 1, 1], [], []>} : vector<2x32xf32>, vector<32x96xf32>, vector<2x96xf32> -> vector<2x96xf32>
    %498 = vector.broadcast %308 : vector<1x96xf32> to vector<2x96xf32>
    %499 = arith.addf %497, %498 : vector<2x96xf32>
    %500 = vector.extract_strided_slice %496 {offsets = [0, 0], sizes = [2, 32], strides = [1, 1]} : vector<2x96xf32> to vector<2x32xf32>
    %501 = vector.extract_strided_slice %499 {offsets = [0, 0], sizes = [2, 32], strides = [1, 1]} : vector<2x96xf32> to vector<2x32xf32>
    %502 = arith.addf %500, %501 : vector<2x32xf32>
    %503 = arith.negf %502 : vector<2x32xf32>
    %504 = math.exp %503 : vector<2x32xf32>
    %cst_177 = arith.constant 1.000000e+00 : f32
    %505 = vector.broadcast %cst_177 : f32 to vector<2x32xf32>
    %506 = arith.addf %505, %504 : vector<2x32xf32>
    %507 = arith.divf %505, %506 : vector<2x32xf32>
    %508 = vector.extract_strided_slice %496 {offsets = [0, 32], sizes = [2, 32], strides = [1, 1]} : vector<2x96xf32> to vector<2x32xf32>
    %509 = vector.extract_strided_slice %499 {offsets = [0, 32], sizes = [2, 32], strides = [1, 1]} : vector<2x96xf32> to vector<2x32xf32>
    %510 = arith.addf %508, %509 : vector<2x32xf32>
    %511 = arith.negf %510 : vector<2x32xf32>
    %512 = math.exp %511 : vector<2x32xf32>
    %cst_178 = arith.constant 1.000000e+00 : f32
    %513 = vector.broadcast %cst_178 : f32 to vector<2x32xf32>
    %514 = arith.addf %513, %512 : vector<2x32xf32>
    %515 = arith.divf %513, %514 : vector<2x32xf32>
    %516 = vector.extract_strided_slice %496 {offsets = [0, 64], sizes = [2, 32], strides = [1, 1]} : vector<2x96xf32> to vector<2x32xf32>
    %517 = vector.extract_strided_slice %499 {offsets = [0, 64], sizes = [2, 32], strides = [1, 1]} : vector<2x96xf32> to vector<2x32xf32>
    %518 = arith.mulf %507, %517 : vector<2x32xf32>
    %519 = arith.addf %516, %518 : vector<2x32xf32>
    %520 = math.tanh %519 : vector<2x32xf32>
    %cst_179 = arith.constant 1.000000e+00 : f32
    %521 = vector.broadcast %cst_179 : f32 to vector<2x32xf32>
    %522 = arith.subf %521, %515 : vector<2x32xf32>
    %523 = arith.mulf %522, %520 : vector<2x32xf32>
    %524 = arith.mulf %515, %494 : vector<2x32xf32>
    %525 = arith.addf %523, %524 : vector<2x32xf32>
    %c2_180 = arith.constant 2 : index
    %c0_181 = arith.constant 0 : index
    %526 = vector.load %arg31[%c2_180, %c0_181] : memref<16x32xf32, #tpu.memory_space<vmem>>, vector<2x32xf32>
    tpu.vector_store %arg31[%c2_180, %c0_181], %525 {strides = array<i32>} : memref<16x32xf32, #tpu.memory_space<vmem>>, vector<2x32xf32>,
    %c0_182 = arith.constant 0 : index
    %c0_183 = arith.constant 0 : index
    %527 = vector.load %arg29[%c0_182, %c0_183] : memref<16x96xf32, #tpu.memory_space<vmem>>, vector<2x96xf32>
    %cst_184 = arith.constant dense<0.000000e+00> : vector<2x96xf32>
    %528 = tpu.matmul %525, %307, %cst_184 {dimension_numbers = #tpu.dot_dimension_numbers<[1], [0], [0], [1], [0, 0, 1, 1], [], []>} : vector<2x32xf32>, vector<32x96xf32>, vector<2x96xf32> -> vector<2x96xf32>
    %529 = vector.broadcast %308 : vector<1x96xf32> to vector<2x96xf32>
    %530 = arith.addf %528, %529 : vector<2x96xf32>
    %531 = vector.extract_strided_slice %527 {offsets = [0, 0], sizes = [2, 32], strides = [1, 1]} : vector<2x96xf32> to vector<2x32xf32>
    %532 = vector.extract_strided_slice %530 {offsets = [0, 0], sizes = [2, 32], strides = [1, 1]} : vector<2x96xf32> to vector<2x32xf32>
    %533 = arith.addf %531, %532 : vector<2x32xf32>
    %534 = arith.negf %533 : vector<2x32xf32>
    %535 = math.exp %534 : vector<2x32xf32>
    %cst_185 = arith.constant 1.000000e+00 : f32
    %536 = vector.broadcast %cst_185 : f32 to vector<2x32xf32>
    %537 = arith.addf %536, %535 : vector<2x32xf32>
    %538 = arith.divf %536, %537 : vector<2x32xf32>
    %539 = vector.extract_strided_slice %527 {offsets = [0, 32], sizes = [2, 32], strides = [1, 1]} : vector<2x96xf32> to vector<2x32xf32>
    %540 = vector.extract_strided_slice %530 {offsets = [0, 32], sizes = [2, 32], strides = [1, 1]} : vector<2x96xf32> to vector<2x32xf32>
    %541 = arith.addf %539, %540 : vector<2x32xf32>
    %542 = arith.negf %541 : vector<2x32xf32>
    %543 = math.exp %542 : vector<2x32xf32>
    %cst_186 = arith.constant 1.000000e+00 : f32
    %544 = vector.broadcast %cst_186 : f32 to vector<2x32xf32>
    %545 = arith.addf %544, %543 : vector<2x32xf32>
    %546 = arith.divf %544, %545 : vector<2x32xf32>
    %547 = vector.extract_strided_slice %527 {offsets = [0, 64], sizes = [2, 32], strides = [1, 1]} : vector<2x96xf32> to vector<2x32xf32>
    %548 = vector.extract_strided_slice %530 {offsets = [0, 64], sizes = [2, 32], strides = [1, 1]} : vector<2x96xf32> to vector<2x32xf32>
    %549 = arith.mulf %538, %548 : vector<2x32xf32>
    %550 = arith.addf %547, %549 : vector<2x32xf32>
    %551 = math.tanh %550 : vector<2x32xf32>
    %cst_187 = arith.constant 1.000000e+00 : f32
    %552 = vector.broadcast %cst_187 : f32 to vector<2x32xf32>
    %553 = arith.subf %552, %546 : vector<2x32xf32>
    %554 = arith.mulf %553, %551 : vector<2x32xf32>
    %555 = arith.mulf %546, %525 : vector<2x32xf32>
    %556 = arith.addf %554, %555 : vector<2x32xf32>
    %c0_188 = arith.constant 0 : index
    %c0_189 = arith.constant 0 : index
    %557 = vector.load %arg31[%c0_188, %c0_189] : memref<16x32xf32, #tpu.memory_space<vmem>>, vector<2x32xf32>
    tpu.vector_store %arg31[%c0_188, %c0_189], %556 {strides = array<i32>} : memref<16x32xf32, #tpu.memory_space<vmem>>, vector<2x32xf32>,
    %c0_190 = arith.constant 0 : index
    %c0_191 = arith.constant 0 : index
    %558 = vector.load %arg31[%c0_190, %c0_191] : memref<16x32xf32, #tpu.memory_space<vmem>>, vector<16x32xf32>
    %c0_192 = arith.constant 0 : index
    %c0_193 = arith.constant 0 : index
    %559 = vector.load %arg15[%c0_192, %c0_193] : memref<64x96xf32, #tpu.memory_space<vmem>>, vector<64x96xf32>
    %c0_194 = arith.constant 0 : index
    %c0_195 = arith.constant 0 : index
    %560 = vector.load %arg17[%c0_194, %c0_195] : memref<1x96xf32, #tpu.memory_space<vmem>>, vector<1x96xf32>
    %561 = vector.extract_strided_slice %559 {offsets = [0, 0], sizes = [32, 96], strides = [1, 1]} : vector<64x96xf32> to vector<32x96xf32>
    %cst_196 = arith.constant dense<0.000000e+00> : vector<16x96xf32>
    %562 = tpu.matmul %300, %561, %cst_196 {dimension_numbers = #tpu.dot_dimension_numbers<[1], [0], [0], [1], [0, 0, 1, 1], [], []>} : vector<16x32xf32>, vector<32x96xf32>, vector<16x96xf32> -> vector<16x96xf32>
    %563 = vector.broadcast %560 : vector<1x96xf32> to vector<16x96xf32>
    %564 = arith.addf %563, %562 : vector<16x96xf32>
    %565 = vector.extract_strided_slice %559 {offsets = [32, 0], sizes = [32, 96], strides = [1, 1]} : vector<64x96xf32> to vector<32x96xf32>
    %cst_197 = arith.constant dense<0.000000e+00> : vector<16x96xf32>
    %566 = tpu.matmul %558, %565, %cst_197 {dimension_numbers = #tpu.dot_dimension_numbers<[1], [0], [0], [1], [0, 0, 1, 1], [], []>} : vector<16x32xf32>, vector<32x96xf32>, vector<16x96xf32> -> vector<16x96xf32>
    %567 = arith.addf %564, %566 : vector<16x96xf32>
    %c0_198 = arith.constant 0 : index
    %c0_199 = arith.constant 0 : index
    %568 = vector.load %arg29[%c0_198, %c0_199] : memref<16x96xf32, #tpu.memory_space<vmem>>, vector<16x96xf32>
    tpu.vector_store %arg29[%c0_198, %c0_199], %567 {strides = array<i32>} : memref<16x96xf32, #tpu.memory_space<vmem>>, vector<16x96xf32>,
    %c0_200 = arith.constant 0 : index
    %c0_201 = arith.constant 0 : index
    %569 = vector.load %arg16[%c0_200, %c0_201] : memref<32x96xf32, #tpu.memory_space<vmem>>, vector<32x96xf32>
    %c0_202 = arith.constant 0 : index
    %c0_203 = arith.constant 0 : index
    %570 = vector.load %arg18[%c0_202, %c0_203] : memref<1x96xf32, #tpu.memory_space<vmem>>, vector<1x96xf32>
    %cst_204 = arith.constant 0.000000e+00 : f32
    %571 = vector.broadcast %cst_204 : f32 to vector<2x32xf32>
    %c0_205 = arith.constant 0 : index
    %c0_206 = arith.constant 0 : index
    %572 = vector.load %arg29[%c0_205, %c0_206] : memref<16x96xf32, #tpu.memory_space<vmem>>, vector<2x96xf32>
    %cst_207 = arith.constant dense<0.000000e+00> : vector<2x96xf32>
    %573 = tpu.matmul %571, %569, %cst_207 {dimension_numbers = #tpu.dot_dimension_numbers<[1], [0], [0], [1], [0, 0, 1, 1], [], []>} : vector<2x32xf32>, vector<32x96xf32>, vector<2x96xf32> -> vector<2x96xf32>
    %574 = vector.broadcast %570 : vector<1x96xf32> to vector<2x96xf32>
    %575 = arith.addf %573, %574 : vector<2x96xf32>
    %576 = vector.extract_strided_slice %572 {offsets = [0, 0], sizes = [2, 32], strides = [1, 1]} : vector<2x96xf32> to vector<2x32xf32>
    %577 = vector.extract_strided_slice %575 {offsets = [0, 0], sizes = [2, 32], strides = [1, 1]} : vector<2x96xf32> to vector<2x32xf32>
    %578 = arith.addf %576, %577 : vector<2x32xf32>
    %579 = arith.negf %578 : vector<2x32xf32>
    %580 = math.exp %579 : vector<2x32xf32>
    %cst_208 = arith.constant 1.000000e+00 : f32
    %581 = vector.broadcast %cst_208 : f32 to vector<2x32xf32>
    %582 = arith.addf %581, %580 : vector<2x32xf32>
    %583 = arith.divf %581, %582 : vector<2x32xf32>
    %584 = vector.extract_strided_slice %572 {offsets = [0, 32], sizes = [2, 32], strides = [1, 1]} : vector<2x96xf32> to vector<2x32xf32>
    %585 = vector.extract_strided_slice %575 {offsets = [0, 32], sizes = [2, 32], strides = [1, 1]} : vector<2x96xf32> to vector<2x32xf32>
    %586 = arith.addf %584, %585 : vector<2x32xf32>
    %587 = arith.negf %586 : vector<2x32xf32>
    %588 = math.exp %587 : vector<2x32xf32>
    %cst_209 = arith.constant 1.000000e+00 : f32
    %589 = vector.broadcast %cst_209 : f32 to vector<2x32xf32>
    %590 = arith.addf %589, %588 : vector<2x32xf32>
    %591 = arith.divf %589, %590 : vector<2x32xf32>
    %592 = vector.extract_strided_slice %572 {offsets = [0, 64], sizes = [2, 32], strides = [1, 1]} : vector<2x96xf32> to vector<2x32xf32>
    %593 = vector.extract_strided_slice %575 {offsets = [0, 64], sizes = [2, 32], strides = [1, 1]} : vector<2x96xf32> to vector<2x32xf32>
    %594 = arith.mulf %583, %593 : vector<2x32xf32>
    %595 = arith.addf %592, %594 : vector<2x32xf32>
    %596 = math.tanh %595 : vector<2x32xf32>
    %cst_210 = arith.constant 1.000000e+00 : f32
    %597 = vector.broadcast %cst_210 : f32 to vector<2x32xf32>
    %598 = arith.subf %597, %591 : vector<2x32xf32>
    %599 = arith.mulf %598, %596 : vector<2x32xf32>
    %600 = arith.mulf %591, %571 : vector<2x32xf32>
    %601 = arith.addf %599, %600 : vector<2x32xf32>
    %c0_211 = arith.constant 0 : index
    %c0_212 = arith.constant 0 : index
    %602 = vector.load %arg32[%c0_211, %c0_212] : memref<16x32xf32, #tpu.memory_space<vmem>>, vector<2x32xf32>
    tpu.vector_store %arg32[%c0_211, %c0_212], %601 {strides = array<i32>} : memref<16x32xf32, #tpu.memory_space<vmem>>, vector<2x32xf32>,
    %c2_213 = arith.constant 2 : index
    %c0_214 = arith.constant 0 : index
    %603 = vector.load %arg29[%c2_213, %c0_214] : memref<16x96xf32, #tpu.memory_space<vmem>>, vector<2x96xf32>
    %cst_215 = arith.constant dense<0.000000e+00> : vector<2x96xf32>
    %604 = tpu.matmul %601, %569, %cst_215 {dimension_numbers = #tpu.dot_dimension_numbers<[1], [0], [0], [1], [0, 0, 1, 1], [], []>} : vector<2x32xf32>, vector<32x96xf32>, vector<2x96xf32> -> vector<2x96xf32>
    %605 = vector.broadcast %570 : vector<1x96xf32> to vector<2x96xf32>
    %606 = arith.addf %604, %605 : vector<2x96xf32>
    %607 = vector.extract_strided_slice %603 {offsets = [0, 0], sizes = [2, 32], strides = [1, 1]} : vector<2x96xf32> to vector<2x32xf32>
    %608 = vector.extract_strided_slice %606 {offsets = [0, 0], sizes = [2, 32], strides = [1, 1]} : vector<2x96xf32> to vector<2x32xf32>
    %609 = arith.addf %607, %608 : vector<2x32xf32>
    %610 = arith.negf %609 : vector<2x32xf32>
    %611 = math.exp %610 : vector<2x32xf32>
    %cst_216 = arith.constant 1.000000e+00 : f32
    %612 = vector.broadcast %cst_216 : f32 to vector<2x32xf32>
    %613 = arith.addf %612, %611 : vector<2x32xf32>
    %614 = arith.divf %612, %613 : vector<2x32xf32>
    %615 = vector.extract_strided_slice %603 {offsets = [0, 32], sizes = [2, 32], strides = [1, 1]} : vector<2x96xf32> to vector<2x32xf32>
    %616 = vector.extract_strided_slice %606 {offsets = [0, 32], sizes = [2, 32], strides = [1, 1]} : vector<2x96xf32> to vector<2x32xf32>
    %617 = arith.addf %615, %616 : vector<2x32xf32>
    %618 = arith.negf %617 : vector<2x32xf32>
    %619 = math.exp %618 : vector<2x32xf32>
    %cst_217 = arith.constant 1.000000e+00 : f32
    %620 = vector.broadcast %cst_217 : f32 to vector<2x32xf32>
    %621 = arith.addf %620, %619 : vector<2x32xf32>
    %622 = arith.divf %620, %621 : vector<2x32xf32>
    %623 = vector.extract_strided_slice %603 {offsets = [0, 64], sizes = [2, 32], strides = [1, 1]} : vector<2x96xf32> to vector<2x32xf32>
    %624 = vector.extract_strided_slice %606 {offsets = [0, 64], sizes = [2, 32], strides = [1, 1]} : vector<2x96xf32> to vector<2x32xf32>
    %625 = arith.mulf %614, %624 : vector<2x32xf32>
    %626 = arith.addf %623, %625 : vector<2x32xf32>
    %627 = math.tanh %626 : vector<2x32xf32>
    %cst_218 = arith.constant 1.000000e+00 : f32
    %628 = vector.broadcast %cst_218 : f32 to vector<2x32xf32>
    %629 = arith.subf %628, %622 : vector<2x32xf32>
    %630 = arith.mulf %629, %627 : vector<2x32xf32>
    %631 = arith.mulf %622, %601 : vector<2x32xf32>
    %632 = arith.addf %630, %631 : vector<2x32xf32>
    %c2_219 = arith.constant 2 : index
    %c0_220 = arith.constant 0 : index
    %633 = vector.load %arg32[%c2_219, %c0_220] : memref<16x32xf32, #tpu.memory_space<vmem>>, vector<2x32xf32>
    tpu.vector_store %arg32[%c2_219, %c0_220], %632 {strides = array<i32>} : memref<16x32xf32, #tpu.memory_space<vmem>>, vector<2x32xf32>,
    %c4_221 = arith.constant 4 : index
    %c0_222 = arith.constant 0 : index
    %634 = vector.load %arg29[%c4_221, %c0_222] : memref<16x96xf32, #tpu.memory_space<vmem>>, vector<2x96xf32>
    %cst_223 = arith.constant dense<0.000000e+00> : vector<2x96xf32>
    %635 = tpu.matmul %632, %569, %cst_223 {dimension_numbers = #tpu.dot_dimension_numbers<[1], [0], [0], [1], [0, 0, 1, 1], [], []>} : vector<2x32xf32>, vector<32x96xf32>, vector<2x96xf32> -> vector<2x96xf32>
    %636 = vector.broadcast %570 : vector<1x96xf32> to vector<2x96xf32>
    %637 = arith.addf %635, %636 : vector<2x96xf32>
    %638 = vector.extract_strided_slice %634 {offsets = [0, 0], sizes = [2, 32], strides = [1, 1]} : vector<2x96xf32> to vector<2x32xf32>
    %639 = vector.extract_strided_slice %637 {offsets = [0, 0], sizes = [2, 32], strides = [1, 1]} : vector<2x96xf32> to vector<2x32xf32>
    %640 = arith.addf %638, %639 : vector<2x32xf32>
    %641 = arith.negf %640 : vector<2x32xf32>
    %642 = math.exp %641 : vector<2x32xf32>
    %cst_224 = arith.constant 1.000000e+00 : f32
    %643 = vector.broadcast %cst_224 : f32 to vector<2x32xf32>
    %644 = arith.addf %643, %642 : vector<2x32xf32>
    %645 = arith.divf %643, %644 : vector<2x32xf32>
    %646 = vector.extract_strided_slice %634 {offsets = [0, 32], sizes = [2, 32], strides = [1, 1]} : vector<2x96xf32> to vector<2x32xf32>
    %647 = vector.extract_strided_slice %637 {offsets = [0, 32], sizes = [2, 32], strides = [1, 1]} : vector<2x96xf32> to vector<2x32xf32>
    %648 = arith.addf %646, %647 : vector<2x32xf32>
    %649 = arith.negf %648 : vector<2x32xf32>
    %650 = math.exp %649 : vector<2x32xf32>
    %cst_225 = arith.constant 1.000000e+00 : f32
    %651 = vector.broadcast %cst_225 : f32 to vector<2x32xf32>
    %652 = arith.addf %651, %650 : vector<2x32xf32>
    %653 = arith.divf %651, %652 : vector<2x32xf32>
    %654 = vector.extract_strided_slice %634 {offsets = [0, 64], sizes = [2, 32], strides = [1, 1]} : vector<2x96xf32> to vector<2x32xf32>
    %655 = vector.extract_strided_slice %637 {offsets = [0, 64], sizes = [2, 32], strides = [1, 1]} : vector<2x96xf32> to vector<2x32xf32>
    %656 = arith.mulf %645, %655 : vector<2x32xf32>
    %657 = arith.addf %654, %656 : vector<2x32xf32>
    %658 = math.tanh %657 : vector<2x32xf32>
    %cst_226 = arith.constant 1.000000e+00 : f32
    %659 = vector.broadcast %cst_226 : f32 to vector<2x32xf32>
    %660 = arith.subf %659, %653 : vector<2x32xf32>
    %661 = arith.mulf %660, %658 : vector<2x32xf32>
    %662 = arith.mulf %653, %632 : vector<2x32xf32>
    %663 = arith.addf %661, %662 : vector<2x32xf32>
    %c4_227 = arith.constant 4 : index
    %c0_228 = arith.constant 0 : index
    %664 = vector.load %arg32[%c4_227, %c0_228] : memref<16x32xf32, #tpu.memory_space<vmem>>, vector<2x32xf32>
    tpu.vector_store %arg32[%c4_227, %c0_228], %663 {strides = array<i32>} : memref<16x32xf32, #tpu.memory_space<vmem>>, vector<2x32xf32>,
    %c6_229 = arith.constant 6 : index
    %c0_230 = arith.constant 0 : index
    %665 = vector.load %arg29[%c6_229, %c0_230] : memref<16x96xf32, #tpu.memory_space<vmem>>, vector<2x96xf32>
    %cst_231 = arith.constant dense<0.000000e+00> : vector<2x96xf32>
    %666 = tpu.matmul %663, %569, %cst_231 {dimension_numbers = #tpu.dot_dimension_numbers<[1], [0], [0], [1], [0, 0, 1, 1], [], []>} : vector<2x32xf32>, vector<32x96xf32>, vector<2x96xf32> -> vector<2x96xf32>
    %667 = vector.broadcast %570 : vector<1x96xf32> to vector<2x96xf32>
    %668 = arith.addf %666, %667 : vector<2x96xf32>
    %669 = vector.extract_strided_slice %665 {offsets = [0, 0], sizes = [2, 32], strides = [1, 1]} : vector<2x96xf32> to vector<2x32xf32>
    %670 = vector.extract_strided_slice %668 {offsets = [0, 0], sizes = [2, 32], strides = [1, 1]} : vector<2x96xf32> to vector<2x32xf32>
    %671 = arith.addf %669, %670 : vector<2x32xf32>
    %672 = arith.negf %671 : vector<2x32xf32>
    %673 = math.exp %672 : vector<2x32xf32>
    %cst_232 = arith.constant 1.000000e+00 : f32
    %674 = vector.broadcast %cst_232 : f32 to vector<2x32xf32>
    %675 = arith.addf %674, %673 : vector<2x32xf32>
    %676 = arith.divf %674, %675 : vector<2x32xf32>
    %677 = vector.extract_strided_slice %665 {offsets = [0, 32], sizes = [2, 32], strides = [1, 1]} : vector<2x96xf32> to vector<2x32xf32>
    %678 = vector.extract_strided_slice %668 {offsets = [0, 32], sizes = [2, 32], strides = [1, 1]} : vector<2x96xf32> to vector<2x32xf32>
    %679 = arith.addf %677, %678 : vector<2x32xf32>
    %680 = arith.negf %679 : vector<2x32xf32>
    %681 = math.exp %680 : vector<2x32xf32>
    %cst_233 = arith.constant 1.000000e+00 : f32
    %682 = vector.broadcast %cst_233 : f32 to vector<2x32xf32>
    %683 = arith.addf %682, %681 : vector<2x32xf32>
    %684 = arith.divf %682, %683 : vector<2x32xf32>
    %685 = vector.extract_strided_slice %665 {offsets = [0, 64], sizes = [2, 32], strides = [1, 1]} : vector<2x96xf32> to vector<2x32xf32>
    %686 = vector.extract_strided_slice %668 {offsets = [0, 64], sizes = [2, 32], strides = [1, 1]} : vector<2x96xf32> to vector<2x32xf32>
    %687 = arith.mulf %676, %686 : vector<2x32xf32>
    %688 = arith.addf %685, %687 : vector<2x32xf32>
    %689 = math.tanh %688 : vector<2x32xf32>
    %cst_234 = arith.constant 1.000000e+00 : f32
    %690 = vector.broadcast %cst_234 : f32 to vector<2x32xf32>
    %691 = arith.subf %690, %684 : vector<2x32xf32>
    %692 = arith.mulf %691, %689 : vector<2x32xf32>
    %693 = arith.mulf %684, %663 : vector<2x32xf32>
    %694 = arith.addf %692, %693 : vector<2x32xf32>
    %c6_235 = arith.constant 6 : index
    %c0_236 = arith.constant 0 : index
    %695 = vector.load %arg32[%c6_235, %c0_236] : memref<16x32xf32, #tpu.memory_space<vmem>>, vector<2x32xf32>
    tpu.vector_store %arg32[%c6_235, %c0_236], %694 {strides = array<i32>} : memref<16x32xf32, #tpu.memory_space<vmem>>, vector<2x32xf32>,
    %c8_237 = arith.constant 8 : index
    %c0_238 = arith.constant 0 : index
    %696 = vector.load %arg29[%c8_237, %c0_238] : memref<16x96xf32, #tpu.memory_space<vmem>>, vector<2x96xf32>
    %cst_239 = arith.constant dense<0.000000e+00> : vector<2x96xf32>
    %697 = tpu.matmul %694, %569, %cst_239 {dimension_numbers = #tpu.dot_dimension_numbers<[1], [0], [0], [1], [0, 0, 1, 1], [], []>} : vector<2x32xf32>, vector<32x96xf32>, vector<2x96xf32> -> vector<2x96xf32>
    %698 = vector.broadcast %570 : vector<1x96xf32> to vector<2x96xf32>
    %699 = arith.addf %697, %698 : vector<2x96xf32>
    %700 = vector.extract_strided_slice %696 {offsets = [0, 0], sizes = [2, 32], strides = [1, 1]} : vector<2x96xf32> to vector<2x32xf32>
    %701 = vector.extract_strided_slice %699 {offsets = [0, 0], sizes = [2, 32], strides = [1, 1]} : vector<2x96xf32> to vector<2x32xf32>
    %702 = arith.addf %700, %701 : vector<2x32xf32>
    %703 = arith.negf %702 : vector<2x32xf32>
    %704 = math.exp %703 : vector<2x32xf32>
    %cst_240 = arith.constant 1.000000e+00 : f32
    %705 = vector.broadcast %cst_240 : f32 to vector<2x32xf32>
    %706 = arith.addf %705, %704 : vector<2x32xf32>
    %707 = arith.divf %705, %706 : vector<2x32xf32>
    %708 = vector.extract_strided_slice %696 {offsets = [0, 32], sizes = [2, 32], strides = [1, 1]} : vector<2x96xf32> to vector<2x32xf32>
    %709 = vector.extract_strided_slice %699 {offsets = [0, 32], sizes = [2, 32], strides = [1, 1]} : vector<2x96xf32> to vector<2x32xf32>
    %710 = arith.addf %708, %709 : vector<2x32xf32>
    %711 = arith.negf %710 : vector<2x32xf32>
    %712 = math.exp %711 : vector<2x32xf32>
    %cst_241 = arith.constant 1.000000e+00 : f32
    %713 = vector.broadcast %cst_241 : f32 to vector<2x32xf32>
    %714 = arith.addf %713, %712 : vector<2x32xf32>
    %715 = arith.divf %713, %714 : vector<2x32xf32>
    %716 = vector.extract_strided_slice %696 {offsets = [0, 64], sizes = [2, 32], strides = [1, 1]} : vector<2x96xf32> to vector<2x32xf32>
    %717 = vector.extract_strided_slice %699 {offsets = [0, 64], sizes = [2, 32], strides = [1, 1]} : vector<2x96xf32> to vector<2x32xf32>
    %718 = arith.mulf %707, %717 : vector<2x32xf32>
    %719 = arith.addf %716, %718 : vector<2x32xf32>
    %720 = math.tanh %719 : vector<2x32xf32>
    %cst_242 = arith.constant 1.000000e+00 : f32
    %721 = vector.broadcast %cst_242 : f32 to vector<2x32xf32>
    %722 = arith.subf %721, %715 : vector<2x32xf32>
    %723 = arith.mulf %722, %720 : vector<2x32xf32>
    %724 = arith.mulf %715, %694 : vector<2x32xf32>
    %725 = arith.addf %723, %724 : vector<2x32xf32>
    %c8_243 = arith.constant 8 : index
    %c0_244 = arith.constant 0 : index
    %726 = vector.load %arg32[%c8_243, %c0_244] : memref<16x32xf32, #tpu.memory_space<vmem>>, vector<2x32xf32>
    tpu.vector_store %arg32[%c8_243, %c0_244], %725 {strides = array<i32>} : memref<16x32xf32, #tpu.memory_space<vmem>>, vector<2x32xf32>,
    %c10_245 = arith.constant 10 : index
    %c0_246 = arith.constant 0 : index
    %727 = vector.load %arg29[%c10_245, %c0_246] : memref<16x96xf32, #tpu.memory_space<vmem>>, vector<2x96xf32>
    %cst_247 = arith.constant dense<0.000000e+00> : vector<2x96xf32>
    %728 = tpu.matmul %725, %569, %cst_247 {dimension_numbers = #tpu.dot_dimension_numbers<[1], [0], [0], [1], [0, 0, 1, 1], [], []>} : vector<2x32xf32>, vector<32x96xf32>, vector<2x96xf32> -> vector<2x96xf32>
    %729 = vector.broadcast %570 : vector<1x96xf32> to vector<2x96xf32>
    %730 = arith.addf %728, %729 : vector<2x96xf32>
    %731 = vector.extract_strided_slice %727 {offsets = [0, 0], sizes = [2, 32], strides = [1, 1]} : vector<2x96xf32> to vector<2x32xf32>
    %732 = vector.extract_strided_slice %730 {offsets = [0, 0], sizes = [2, 32], strides = [1, 1]} : vector<2x96xf32> to vector<2x32xf32>
    %733 = arith.addf %731, %732 : vector<2x32xf32>
    %734 = arith.negf %733 : vector<2x32xf32>
    %735 = math.exp %734 : vector<2x32xf32>
    %cst_248 = arith.constant 1.000000e+00 : f32
    %736 = vector.broadcast %cst_248 : f32 to vector<2x32xf32>
    %737 = arith.addf %736, %735 : vector<2x32xf32>
    %738 = arith.divf %736, %737 : vector<2x32xf32>
    %739 = vector.extract_strided_slice %727 {offsets = [0, 32], sizes = [2, 32], strides = [1, 1]} : vector<2x96xf32> to vector<2x32xf32>
    %740 = vector.extract_strided_slice %730 {offsets = [0, 32], sizes = [2, 32], strides = [1, 1]} : vector<2x96xf32> to vector<2x32xf32>
    %741 = arith.addf %739, %740 : vector<2x32xf32>
    %742 = arith.negf %741 : vector<2x32xf32>
    %743 = math.exp %742 : vector<2x32xf32>
    %cst_249 = arith.constant 1.000000e+00 : f32
    %744 = vector.broadcast %cst_249 : f32 to vector<2x32xf32>
    %745 = arith.addf %744, %743 : vector<2x32xf32>
    %746 = arith.divf %744, %745 : vector<2x32xf32>
    %747 = vector.extract_strided_slice %727 {offsets = [0, 64], sizes = [2, 32], strides = [1, 1]} : vector<2x96xf32> to vector<2x32xf32>
    %748 = vector.extract_strided_slice %730 {offsets = [0, 64], sizes = [2, 32], strides = [1, 1]} : vector<2x96xf32> to vector<2x32xf32>
    %749 = arith.mulf %738, %748 : vector<2x32xf32>
    %750 = arith.addf %747, %749 : vector<2x32xf32>
    %751 = math.tanh %750 : vector<2x32xf32>
    %cst_250 = arith.constant 1.000000e+00 : f32
    %752 = vector.broadcast %cst_250 : f32 to vector<2x32xf32>
    %753 = arith.subf %752, %746 : vector<2x32xf32>
    %754 = arith.mulf %753, %751 : vector<2x32xf32>
    %755 = arith.mulf %746, %725 : vector<2x32xf32>
    %756 = arith.addf %754, %755 : vector<2x32xf32>
    %c10_251 = arith.constant 10 : index
    %c0_252 = arith.constant 0 : index
    %757 = vector.load %arg32[%c10_251, %c0_252] : memref<16x32xf32, #tpu.memory_space<vmem>>, vector<2x32xf32>
    tpu.vector_store %arg32[%c10_251, %c0_252], %756 {strides = array<i32>} : memref<16x32xf32, #tpu.memory_space<vmem>>, vector<2x32xf32>,
    %c12_253 = arith.constant 12 : index
    %c0_254 = arith.constant 0 : index
    %758 = vector.load %arg29[%c12_253, %c0_254] : memref<16x96xf32, #tpu.memory_space<vmem>>, vector<2x96xf32>
    %cst_255 = arith.constant dense<0.000000e+00> : vector<2x96xf32>
    %759 = tpu.matmul %756, %569, %cst_255 {dimension_numbers = #tpu.dot_dimension_numbers<[1], [0], [0], [1], [0, 0, 1, 1], [], []>} : vector<2x32xf32>, vector<32x96xf32>, vector<2x96xf32> -> vector<2x96xf32>
    %760 = vector.broadcast %570 : vector<1x96xf32> to vector<2x96xf32>
    %761 = arith.addf %759, %760 : vector<2x96xf32>
    %762 = vector.extract_strided_slice %758 {offsets = [0, 0], sizes = [2, 32], strides = [1, 1]} : vector<2x96xf32> to vector<2x32xf32>
    %763 = vector.extract_strided_slice %761 {offsets = [0, 0], sizes = [2, 32], strides = [1, 1]} : vector<2x96xf32> to vector<2x32xf32>
    %764 = arith.addf %762, %763 : vector<2x32xf32>
    %765 = arith.negf %764 : vector<2x32xf32>
    %766 = math.exp %765 : vector<2x32xf32>
    %cst_256 = arith.constant 1.000000e+00 : f32
    %767 = vector.broadcast %cst_256 : f32 to vector<2x32xf32>
    %768 = arith.addf %767, %766 : vector<2x32xf32>
    %769 = arith.divf %767, %768 : vector<2x32xf32>
    %770 = vector.extract_strided_slice %758 {offsets = [0, 32], sizes = [2, 32], strides = [1, 1]} : vector<2x96xf32> to vector<2x32xf32>
    %771 = vector.extract_strided_slice %761 {offsets = [0, 32], sizes = [2, 32], strides = [1, 1]} : vector<2x96xf32> to vector<2x32xf32>
    %772 = arith.addf %770, %771 : vector<2x32xf32>
    %773 = arith.negf %772 : vector<2x32xf32>
    %774 = math.exp %773 : vector<2x32xf32>
    %cst_257 = arith.constant 1.000000e+00 : f32
    %775 = vector.broadcast %cst_257 : f32 to vector<2x32xf32>
    %776 = arith.addf %775, %774 : vector<2x32xf32>
    %777 = arith.divf %775, %776 : vector<2x32xf32>
    %778 = vector.extract_strided_slice %758 {offsets = [0, 64], sizes = [2, 32], strides = [1, 1]} : vector<2x96xf32> to vector<2x32xf32>
    %779 = vector.extract_strided_slice %761 {offsets = [0, 64], sizes = [2, 32], strides = [1, 1]} : vector<2x96xf32> to vector<2x32xf32>
    %780 = arith.mulf %769, %779 : vector<2x32xf32>
    %781 = arith.addf %778, %780 : vector<2x32xf32>
    %782 = math.tanh %781 : vector<2x32xf32>
    %cst_258 = arith.constant 1.000000e+00 : f32
    %783 = vector.broadcast %cst_258 : f32 to vector<2x32xf32>
    %784 = arith.subf %783, %777 : vector<2x32xf32>
    %785 = arith.mulf %784, %782 : vector<2x32xf32>
    %786 = arith.mulf %777, %756 : vector<2x32xf32>
    %787 = arith.addf %785, %786 : vector<2x32xf32>
    %c12_259 = arith.constant 12 : index
    %c0_260 = arith.constant 0 : index
    %788 = vector.load %arg32[%c12_259, %c0_260] : memref<16x32xf32, #tpu.memory_space<vmem>>, vector<2x32xf32>
    tpu.vector_store %arg32[%c12_259, %c0_260], %787 {strides = array<i32>} : memref<16x32xf32, #tpu.memory_space<vmem>>, vector<2x32xf32>,
    %c14_261 = arith.constant 14 : index
    %c0_262 = arith.constant 0 : index
    %789 = vector.load %arg29[%c14_261, %c0_262] : memref<16x96xf32, #tpu.memory_space<vmem>>, vector<2x96xf32>
    %cst_263 = arith.constant dense<0.000000e+00> : vector<2x96xf32>
    %790 = tpu.matmul %787, %569, %cst_263 {dimension_numbers = #tpu.dot_dimension_numbers<[1], [0], [0], [1], [0, 0, 1, 1], [], []>} : vector<2x32xf32>, vector<32x96xf32>, vector<2x96xf32> -> vector<2x96xf32>
    %791 = vector.broadcast %570 : vector<1x96xf32> to vector<2x96xf32>
    %792 = arith.addf %790, %791 : vector<2x96xf32>
    %793 = vector.extract_strided_slice %789 {offsets = [0, 0], sizes = [2, 32], strides = [1, 1]} : vector<2x96xf32> to vector<2x32xf32>
    %794 = vector.extract_strided_slice %792 {offsets = [0, 0], sizes = [2, 32], strides = [1, 1]} : vector<2x96xf32> to vector<2x32xf32>
    %795 = arith.addf %793, %794 : vector<2x32xf32>
    %796 = arith.negf %795 : vector<2x32xf32>
    %797 = math.exp %796 : vector<2x32xf32>
    %cst_264 = arith.constant 1.000000e+00 : f32
    %798 = vector.broadcast %cst_264 : f32 to vector<2x32xf32>
    %799 = arith.addf %798, %797 : vector<2x32xf32>
    %800 = arith.divf %798, %799 : vector<2x32xf32>
    %801 = vector.extract_strided_slice %789 {offsets = [0, 32], sizes = [2, 32], strides = [1, 1]} : vector<2x96xf32> to vector<2x32xf32>
    %802 = vector.extract_strided_slice %792 {offsets = [0, 32], sizes = [2, 32], strides = [1, 1]} : vector<2x96xf32> to vector<2x32xf32>
    %803 = arith.addf %801, %802 : vector<2x32xf32>
    %804 = arith.negf %803 : vector<2x32xf32>
    %805 = math.exp %804 : vector<2x32xf32>
    %cst_265 = arith.constant 1.000000e+00 : f32
    %806 = vector.broadcast %cst_265 : f32 to vector<2x32xf32>
    %807 = arith.addf %806, %805 : vector<2x32xf32>
    %808 = arith.divf %806, %807 : vector<2x32xf32>
    %809 = vector.extract_strided_slice %789 {offsets = [0, 64], sizes = [2, 32], strides = [1, 1]} : vector<2x96xf32> to vector<2x32xf32>
    %810 = vector.extract_strided_slice %792 {offsets = [0, 64], sizes = [2, 32], strides = [1, 1]} : vector<2x96xf32> to vector<2x32xf32>
    %811 = arith.mulf %800, %810 : vector<2x32xf32>
    %812 = arith.addf %809, %811 : vector<2x32xf32>
    %813 = math.tanh %812 : vector<2x32xf32>
    %cst_266 = arith.constant 1.000000e+00 : f32
    %814 = vector.broadcast %cst_266 : f32 to vector<2x32xf32>
    %815 = arith.subf %814, %808 : vector<2x32xf32>
    %816 = arith.mulf %815, %813 : vector<2x32xf32>
    %817 = arith.mulf %808, %787 : vector<2x32xf32>
    %818 = arith.addf %816, %817 : vector<2x32xf32>
    %c14_267 = arith.constant 14 : index
    %c0_268 = arith.constant 0 : index
    %819 = vector.load %arg32[%c14_267, %c0_268] : memref<16x32xf32, #tpu.memory_space<vmem>>, vector<2x32xf32>
    tpu.vector_store %arg32[%c14_267, %c0_268], %818 {strides = array<i32>} : memref<16x32xf32, #tpu.memory_space<vmem>>, vector<2x32xf32>,
    %c0_269 = arith.constant 0 : index
    %c0_270 = arith.constant 0 : index
    %820 = vector.load %arg32[%c0_269, %c0_270] : memref<16x32xf32, #tpu.memory_space<vmem>>, vector<16x32xf32>
    %c0_271 = arith.constant 0 : index
    %c0_272 = arith.constant 0 : index
    %821 = vector.load %arg19[%c0_271, %c0_272] : memref<64x96xf32, #tpu.memory_space<vmem>>, vector<64x96xf32>
    %c0_273 = arith.constant 0 : index
    %c0_274 = arith.constant 0 : index
    %822 = vector.load %arg21[%c0_273, %c0_274] : memref<1x96xf32, #tpu.memory_space<vmem>>, vector<1x96xf32>
    %823 = vector.extract_strided_slice %821 {offsets = [0, 0], sizes = [32, 96], strides = [1, 1]} : vector<64x96xf32> to vector<32x96xf32>
    %cst_275 = arith.constant dense<0.000000e+00> : vector<16x96xf32>
    %824 = tpu.matmul %300, %823, %cst_275 {dimension_numbers = #tpu.dot_dimension_numbers<[1], [0], [0], [1], [0, 0, 1, 1], [], []>} : vector<16x32xf32>, vector<32x96xf32>, vector<16x96xf32> -> vector<16x96xf32>
    %825 = vector.broadcast %822 : vector<1x96xf32> to vector<16x96xf32>
    %826 = arith.addf %825, %824 : vector<16x96xf32>
    %827 = vector.extract_strided_slice %821 {offsets = [32, 0], sizes = [32, 96], strides = [1, 1]} : vector<64x96xf32> to vector<32x96xf32>
    %cst_276 = arith.constant dense<0.000000e+00> : vector<16x96xf32>
    %828 = tpu.matmul %558, %827, %cst_276 {dimension_numbers = #tpu.dot_dimension_numbers<[1], [0], [0], [1], [0, 0, 1, 1], [], []>} : vector<16x32xf32>, vector<32x96xf32>, vector<16x96xf32> -> vector<16x96xf32>
    %829 = arith.addf %826, %828 : vector<16x96xf32>
    %c0_277 = arith.constant 0 : index
    %c0_278 = arith.constant 0 : index
    %830 = vector.load %arg29[%c0_277, %c0_278] : memref<16x96xf32, #tpu.memory_space<vmem>>, vector<16x96xf32>
    tpu.vector_store %arg29[%c0_277, %c0_278], %829 {strides = array<i32>} : memref<16x96xf32, #tpu.memory_space<vmem>>, vector<16x96xf32>,
    %c0_279 = arith.constant 0 : index
    %c0_280 = arith.constant 0 : index
    %831 = vector.load %arg20[%c0_279, %c0_280] : memref<32x96xf32, #tpu.memory_space<vmem>>, vector<32x96xf32>
    %c0_281 = arith.constant 0 : index
    %c0_282 = arith.constant 0 : index
    %832 = vector.load %arg22[%c0_281, %c0_282] : memref<1x96xf32, #tpu.memory_space<vmem>>, vector<1x96xf32>
    %cst_283 = arith.constant 0.000000e+00 : f32
    %833 = vector.broadcast %cst_283 : f32 to vector<2x32xf32>
    %c14_284 = arith.constant 14 : index
    %c0_285 = arith.constant 0 : index
    %834 = vector.load %arg29[%c14_284, %c0_285] : memref<16x96xf32, #tpu.memory_space<vmem>>, vector<2x96xf32>
    %cst_286 = arith.constant dense<0.000000e+00> : vector<2x96xf32>
    %835 = tpu.matmul %833, %831, %cst_286 {dimension_numbers = #tpu.dot_dimension_numbers<[1], [0], [0], [1], [0, 0, 1, 1], [], []>} : vector<2x32xf32>, vector<32x96xf32>, vector<2x96xf32> -> vector<2x96xf32>
    %836 = vector.broadcast %832 : vector<1x96xf32> to vector<2x96xf32>
    %837 = arith.addf %835, %836 : vector<2x96xf32>
    %838 = vector.extract_strided_slice %834 {offsets = [0, 0], sizes = [2, 32], strides = [1, 1]} : vector<2x96xf32> to vector<2x32xf32>
    %839 = vector.extract_strided_slice %837 {offsets = [0, 0], sizes = [2, 32], strides = [1, 1]} : vector<2x96xf32> to vector<2x32xf32>
    %840 = arith.addf %838, %839 : vector<2x32xf32>
    %841 = arith.negf %840 : vector<2x32xf32>
    %842 = math.exp %841 : vector<2x32xf32>
    %cst_287 = arith.constant 1.000000e+00 : f32
    %843 = vector.broadcast %cst_287 : f32 to vector<2x32xf32>
    %844 = arith.addf %843, %842 : vector<2x32xf32>
    %845 = arith.divf %843, %844 : vector<2x32xf32>
    %846 = vector.extract_strided_slice %834 {offsets = [0, 32], sizes = [2, 32], strides = [1, 1]} : vector<2x96xf32> to vector<2x32xf32>
    %847 = vector.extract_strided_slice %837 {offsets = [0, 32], sizes = [2, 32], strides = [1, 1]} : vector<2x96xf32> to vector<2x32xf32>
    %848 = arith.addf %846, %847 : vector<2x32xf32>
    %849 = arith.negf %848 : vector<2x32xf32>
    %850 = math.exp %849 : vector<2x32xf32>
    %cst_288 = arith.constant 1.000000e+00 : f32
    %851 = vector.broadcast %cst_288 : f32 to vector<2x32xf32>
    %852 = arith.addf %851, %850 : vector<2x32xf32>
    %853 = arith.divf %851, %852 : vector<2x32xf32>
    %854 = vector.extract_strided_slice %834 {offsets = [0, 64], sizes = [2, 32], strides = [1, 1]} : vector<2x96xf32> to vector<2x32xf32>
    %855 = vector.extract_strided_slice %837 {offsets = [0, 64], sizes = [2, 32], strides = [1, 1]} : vector<2x96xf32> to vector<2x32xf32>
    %856 = arith.mulf %845, %855 : vector<2x32xf32>
    %857 = arith.addf %854, %856 : vector<2x32xf32>
    %858 = math.tanh %857 : vector<2x32xf32>
    %cst_289 = arith.constant 1.000000e+00 : f32
    %859 = vector.broadcast %cst_289 : f32 to vector<2x32xf32>
    %860 = arith.subf %859, %853 : vector<2x32xf32>
    %861 = arith.mulf %860, %858 : vector<2x32xf32>
    %862 = arith.mulf %853, %833 : vector<2x32xf32>
    %863 = arith.addf %861, %862 : vector<2x32xf32>
    %c14_290 = arith.constant 14 : index
    %c0_291 = arith.constant 0 : index
    %864 = vector.load %arg33[%c14_290, %c0_291] : memref<16x32xf32, #tpu.memory_space<vmem>>, vector<2x32xf32>
    tpu.vector_store %arg33[%c14_290, %c0_291], %863 {strides = array<i32>} : memref<16x32xf32, #tpu.memory_space<vmem>>, vector<2x32xf32>,
    %c12_292 = arith.constant 12 : index
    %c0_293 = arith.constant 0 : index
    %865 = vector.load %arg29[%c12_292, %c0_293] : memref<16x96xf32, #tpu.memory_space<vmem>>, vector<2x96xf32>
    %cst_294 = arith.constant dense<0.000000e+00> : vector<2x96xf32>
    %866 = tpu.matmul %863, %831, %cst_294 {dimension_numbers = #tpu.dot_dimension_numbers<[1], [0], [0], [1], [0, 0, 1, 1], [], []>} : vector<2x32xf32>, vector<32x96xf32>, vector<2x96xf32> -> vector<2x96xf32>
    %867 = vector.broadcast %832 : vector<1x96xf32> to vector<2x96xf32>
    %868 = arith.addf %866, %867 : vector<2x96xf32>
    %869 = vector.extract_strided_slice %865 {offsets = [0, 0], sizes = [2, 32], strides = [1, 1]} : vector<2x96xf32> to vector<2x32xf32>
    %870 = vector.extract_strided_slice %868 {offsets = [0, 0], sizes = [2, 32], strides = [1, 1]} : vector<2x96xf32> to vector<2x32xf32>
    %871 = arith.addf %869, %870 : vector<2x32xf32>
    %872 = arith.negf %871 : vector<2x32xf32>
    %873 = math.exp %872 : vector<2x32xf32>
    %cst_295 = arith.constant 1.000000e+00 : f32
    %874 = vector.broadcast %cst_295 : f32 to vector<2x32xf32>
    %875 = arith.addf %874, %873 : vector<2x32xf32>
    %876 = arith.divf %874, %875 : vector<2x32xf32>
    %877 = vector.extract_strided_slice %865 {offsets = [0, 32], sizes = [2, 32], strides = [1, 1]} : vector<2x96xf32> to vector<2x32xf32>
    %878 = vector.extract_strided_slice %868 {offsets = [0, 32], sizes = [2, 32], strides = [1, 1]} : vector<2x96xf32> to vector<2x32xf32>
    %879 = arith.addf %877, %878 : vector<2x32xf32>
    %880 = arith.negf %879 : vector<2x32xf32>
    %881 = math.exp %880 : vector<2x32xf32>
    %cst_296 = arith.constant 1.000000e+00 : f32
    %882 = vector.broadcast %cst_296 : f32 to vector<2x32xf32>
    %883 = arith.addf %882, %881 : vector<2x32xf32>
    %884 = arith.divf %882, %883 : vector<2x32xf32>
    %885 = vector.extract_strided_slice %865 {offsets = [0, 64], sizes = [2, 32], strides = [1, 1]} : vector<2x96xf32> to vector<2x32xf32>
    %886 = vector.extract_strided_slice %868 {offsets = [0, 64], sizes = [2, 32], strides = [1, 1]} : vector<2x96xf32> to vector<2x32xf32>
    %887 = arith.mulf %876, %886 : vector<2x32xf32>
    %888 = arith.addf %885, %887 : vector<2x32xf32>
    %889 = math.tanh %888 : vector<2x32xf32>
    %cst_297 = arith.constant 1.000000e+00 : f32
    %890 = vector.broadcast %cst_297 : f32 to vector<2x32xf32>
    %891 = arith.subf %890, %884 : vector<2x32xf32>
    %892 = arith.mulf %891, %889 : vector<2x32xf32>
    %893 = arith.mulf %884, %863 : vector<2x32xf32>
    %894 = arith.addf %892, %893 : vector<2x32xf32>
    %c12_298 = arith.constant 12 : index
    %c0_299 = arith.constant 0 : index
    %895 = vector.load %arg33[%c12_298, %c0_299] : memref<16x32xf32, #tpu.memory_space<vmem>>, vector<2x32xf32>
    tpu.vector_store %arg33[%c12_298, %c0_299], %894 {strides = array<i32>} : memref<16x32xf32, #tpu.memory_space<vmem>>, vector<2x32xf32>,
    %c10_300 = arith.constant 10 : index
    %c0_301 = arith.constant 0 : index
    %896 = vector.load %arg29[%c10_300, %c0_301] : memref<16x96xf32, #tpu.memory_space<vmem>>, vector<2x96xf32>
    %cst_302 = arith.constant dense<0.000000e+00> : vector<2x96xf32>
    %897 = tpu.matmul %894, %831, %cst_302 {dimension_numbers = #tpu.dot_dimension_numbers<[1], [0], [0], [1], [0, 0, 1, 1], [], []>} : vector<2x32xf32>, vector<32x96xf32>, vector<2x96xf32> -> vector<2x96xf32>
    %898 = vector.broadcast %832 : vector<1x96xf32> to vector<2x96xf32>
    %899 = arith.addf %897, %898 : vector<2x96xf32>
    %900 = vector.extract_strided_slice %896 {offsets = [0, 0], sizes = [2, 32], strides = [1, 1]} : vector<2x96xf32> to vector<2x32xf32>
    %901 = vector.extract_strided_slice %899 {offsets = [0, 0], sizes = [2, 32], strides = [1, 1]} : vector<2x96xf32> to vector<2x32xf32>
    %902 = arith.addf %900, %901 : vector<2x32xf32>
    %903 = arith.negf %902 : vector<2x32xf32>
    %904 = math.exp %903 : vector<2x32xf32>
    %cst_303 = arith.constant 1.000000e+00 : f32
    %905 = vector.broadcast %cst_303 : f32 to vector<2x32xf32>
    %906 = arith.addf %905, %904 : vector<2x32xf32>
    %907 = arith.divf %905, %906 : vector<2x32xf32>
    %908 = vector.extract_strided_slice %896 {offsets = [0, 32], sizes = [2, 32], strides = [1, 1]} : vector<2x96xf32> to vector<2x32xf32>
    %909 = vector.extract_strided_slice %899 {offsets = [0, 32], sizes = [2, 32], strides = [1, 1]} : vector<2x96xf32> to vector<2x32xf32>
    %910 = arith.addf %908, %909 : vector<2x32xf32>
    %911 = arith.negf %910 : vector<2x32xf32>
    %912 = math.exp %911 : vector<2x32xf32>
    %cst_304 = arith.constant 1.000000e+00 : f32
    %913 = vector.broadcast %cst_304 : f32 to vector<2x32xf32>
    %914 = arith.addf %913, %912 : vector<2x32xf32>
    %915 = arith.divf %913, %914 : vector<2x32xf32>
    %916 = vector.extract_strided_slice %896 {offsets = [0, 64], sizes = [2, 32], strides = [1, 1]} : vector<2x96xf32> to vector<2x32xf32>
    %917 = vector.extract_strided_slice %899 {offsets = [0, 64], sizes = [2, 32], strides = [1, 1]} : vector<2x96xf32> to vector<2x32xf32>
    %918 = arith.mulf %907, %917 : vector<2x32xf32>
    %919 = arith.addf %916, %918 : vector<2x32xf32>
    %920 = math.tanh %919 : vector<2x32xf32>
    %cst_305 = arith.constant 1.000000e+00 : f32
    %921 = vector.broadcast %cst_305 : f32 to vector<2x32xf32>
    %922 = arith.subf %921, %915 : vector<2x32xf32>
    %923 = arith.mulf %922, %920 : vector<2x32xf32>
    %924 = arith.mulf %915, %894 : vector<2x32xf32>
    %925 = arith.addf %923, %924 : vector<2x32xf32>
    %c10_306 = arith.constant 10 : index
    %c0_307 = arith.constant 0 : index
    %926 = vector.load %arg33[%c10_306, %c0_307] : memref<16x32xf32, #tpu.memory_space<vmem>>, vector<2x32xf32>
    tpu.vector_store %arg33[%c10_306, %c0_307], %925 {strides = array<i32>} : memref<16x32xf32, #tpu.memory_space<vmem>>, vector<2x32xf32>,
    %c8_308 = arith.constant 8 : index
    %c0_309 = arith.constant 0 : index
    %927 = vector.load %arg29[%c8_308, %c0_309] : memref<16x96xf32, #tpu.memory_space<vmem>>, vector<2x96xf32>
    %cst_310 = arith.constant dense<0.000000e+00> : vector<2x96xf32>
    %928 = tpu.matmul %925, %831, %cst_310 {dimension_numbers = #tpu.dot_dimension_numbers<[1], [0], [0], [1], [0, 0, 1, 1], [], []>} : vector<2x32xf32>, vector<32x96xf32>, vector<2x96xf32> -> vector<2x96xf32>
    %929 = vector.broadcast %832 : vector<1x96xf32> to vector<2x96xf32>
    %930 = arith.addf %928, %929 : vector<2x96xf32>
    %931 = vector.extract_strided_slice %927 {offsets = [0, 0], sizes = [2, 32], strides = [1, 1]} : vector<2x96xf32> to vector<2x32xf32>
    %932 = vector.extract_strided_slice %930 {offsets = [0, 0], sizes = [2, 32], strides = [1, 1]} : vector<2x96xf32> to vector<2x32xf32>
    %933 = arith.addf %931, %932 : vector<2x32xf32>
    %934 = arith.negf %933 : vector<2x32xf32>
    %935 = math.exp %934 : vector<2x32xf32>
    %cst_311 = arith.constant 1.000000e+00 : f32
    %936 = vector.broadcast %cst_311 : f32 to vector<2x32xf32>
    %937 = arith.addf %936, %935 : vector<2x32xf32>
    %938 = arith.divf %936, %937 : vector<2x32xf32>
    %939 = vector.extract_strided_slice %927 {offsets = [0, 32], sizes = [2, 32], strides = [1, 1]} : vector<2x96xf32> to vector<2x32xf32>
    %940 = vector.extract_strided_slice %930 {offsets = [0, 32], sizes = [2, 32], strides = [1, 1]} : vector<2x96xf32> to vector<2x32xf32>
    %941 = arith.addf %939, %940 : vector<2x32xf32>
    %942 = arith.negf %941 : vector<2x32xf32>
    %943 = math.exp %942 : vector<2x32xf32>
    %cst_312 = arith.constant 1.000000e+00 : f32
    %944 = vector.broadcast %cst_312 : f32 to vector<2x32xf32>
    %945 = arith.addf %944, %943 : vector<2x32xf32>
    %946 = arith.divf %944, %945 : vector<2x32xf32>
    %947 = vector.extract_strided_slice %927 {offsets = [0, 64], sizes = [2, 32], strides = [1, 1]} : vector<2x96xf32> to vector<2x32xf32>
    %948 = vector.extract_strided_slice %930 {offsets = [0, 64], sizes = [2, 32], strides = [1, 1]} : vector<2x96xf32> to vector<2x32xf32>
    %949 = arith.mulf %938, %948 : vector<2x32xf32>
    %950 = arith.addf %947, %949 : vector<2x32xf32>
    %951 = math.tanh %950 : vector<2x32xf32>
    %cst_313 = arith.constant 1.000000e+00 : f32
    %952 = vector.broadcast %cst_313 : f32 to vector<2x32xf32>
    %953 = arith.subf %952, %946 : vector<2x32xf32>
    %954 = arith.mulf %953, %951 : vector<2x32xf32>
    %955 = arith.mulf %946, %925 : vector<2x32xf32>
    %956 = arith.addf %954, %955 : vector<2x32xf32>
    %c8_314 = arith.constant 8 : index
    %c0_315 = arith.constant 0 : index
    %957 = vector.load %arg33[%c8_314, %c0_315] : memref<16x32xf32, #tpu.memory_space<vmem>>, vector<2x32xf32>
    tpu.vector_store %arg33[%c8_314, %c0_315], %956 {strides = array<i32>} : memref<16x32xf32, #tpu.memory_space<vmem>>, vector<2x32xf32>,
    %c6_316 = arith.constant 6 : index
    %c0_317 = arith.constant 0 : index
    %958 = vector.load %arg29[%c6_316, %c0_317] : memref<16x96xf32, #tpu.memory_space<vmem>>, vector<2x96xf32>
    %cst_318 = arith.constant dense<0.000000e+00> : vector<2x96xf32>
    %959 = tpu.matmul %956, %831, %cst_318 {dimension_numbers = #tpu.dot_dimension_numbers<[1], [0], [0], [1], [0, 0, 1, 1], [], []>} : vector<2x32xf32>, vector<32x96xf32>, vector<2x96xf32> -> vector<2x96xf32>
    %960 = vector.broadcast %832 : vector<1x96xf32> to vector<2x96xf32>
    %961 = arith.addf %959, %960 : vector<2x96xf32>
    %962 = vector.extract_strided_slice %958 {offsets = [0, 0], sizes = [2, 32], strides = [1, 1]} : vector<2x96xf32> to vector<2x32xf32>
    %963 = vector.extract_strided_slice %961 {offsets = [0, 0], sizes = [2, 32], strides = [1, 1]} : vector<2x96xf32> to vector<2x32xf32>
    %964 = arith.addf %962, %963 : vector<2x32xf32>
    %965 = arith.negf %964 : vector<2x32xf32>
    %966 = math.exp %965 : vector<2x32xf32>
    %cst_319 = arith.constant 1.000000e+00 : f32
    %967 = vector.broadcast %cst_319 : f32 to vector<2x32xf32>
    %968 = arith.addf %967, %966 : vector<2x32xf32>
    %969 = arith.divf %967, %968 : vector<2x32xf32>
    %970 = vector.extract_strided_slice %958 {offsets = [0, 32], sizes = [2, 32], strides = [1, 1]} : vector<2x96xf32> to vector<2x32xf32>
    %971 = vector.extract_strided_slice %961 {offsets = [0, 32], sizes = [2, 32], strides = [1, 1]} : vector<2x96xf32> to vector<2x32xf32>
    %972 = arith.addf %970, %971 : vector<2x32xf32>
    %973 = arith.negf %972 : vector<2x32xf32>
    %974 = math.exp %973 : vector<2x32xf32>
    %cst_320 = arith.constant 1.000000e+00 : f32
    %975 = vector.broadcast %cst_320 : f32 to vector<2x32xf32>
    %976 = arith.addf %975, %974 : vector<2x32xf32>
    %977 = arith.divf %975, %976 : vector<2x32xf32>
    %978 = vector.extract_strided_slice %958 {offsets = [0, 64], sizes = [2, 32], strides = [1, 1]} : vector<2x96xf32> to vector<2x32xf32>
    %979 = vector.extract_strided_slice %961 {offsets = [0, 64], sizes = [2, 32], strides = [1, 1]} : vector<2x96xf32> to vector<2x32xf32>
    %980 = arith.mulf %969, %979 : vector<2x32xf32>
    %981 = arith.addf %978, %980 : vector<2x32xf32>
    %982 = math.tanh %981 : vector<2x32xf32>
    %cst_321 = arith.constant 1.000000e+00 : f32
    %983 = vector.broadcast %cst_321 : f32 to vector<2x32xf32>
    %984 = arith.subf %983, %977 : vector<2x32xf32>
    %985 = arith.mulf %984, %982 : vector<2x32xf32>
    %986 = arith.mulf %977, %956 : vector<2x32xf32>
    %987 = arith.addf %985, %986 : vector<2x32xf32>
    %c6_322 = arith.constant 6 : index
    %c0_323 = arith.constant 0 : index
    %988 = vector.load %arg33[%c6_322, %c0_323] : memref<16x32xf32, #tpu.memory_space<vmem>>, vector<2x32xf32>
    tpu.vector_store %arg33[%c6_322, %c0_323], %987 {strides = array<i32>} : memref<16x32xf32, #tpu.memory_space<vmem>>, vector<2x32xf32>,
    %c4_324 = arith.constant 4 : index
    %c0_325 = arith.constant 0 : index
    %989 = vector.load %arg29[%c4_324, %c0_325] : memref<16x96xf32, #tpu.memory_space<vmem>>, vector<2x96xf32>
    %cst_326 = arith.constant dense<0.000000e+00> : vector<2x96xf32>
    %990 = tpu.matmul %987, %831, %cst_326 {dimension_numbers = #tpu.dot_dimension_numbers<[1], [0], [0], [1], [0, 0, 1, 1], [], []>} : vector<2x32xf32>, vector<32x96xf32>, vector<2x96xf32> -> vector<2x96xf32>
    %991 = vector.broadcast %832 : vector<1x96xf32> to vector<2x96xf32>
    %992 = arith.addf %990, %991 : vector<2x96xf32>
    %993 = vector.extract_strided_slice %989 {offsets = [0, 0], sizes = [2, 32], strides = [1, 1]} : vector<2x96xf32> to vector<2x32xf32>
    %994 = vector.extract_strided_slice %992 {offsets = [0, 0], sizes = [2, 32], strides = [1, 1]} : vector<2x96xf32> to vector<2x32xf32>
    %995 = arith.addf %993, %994 : vector<2x32xf32>
    %996 = arith.negf %995 : vector<2x32xf32>
    %997 = math.exp %996 : vector<2x32xf32>
    %cst_327 = arith.constant 1.000000e+00 : f32
    %998 = vector.broadcast %cst_327 : f32 to vector<2x32xf32>
    %999 = arith.addf %998, %997 : vector<2x32xf32>
    %1000 = arith.divf %998, %999 : vector<2x32xf32>
    %1001 = vector.extract_strided_slice %989 {offsets = [0, 32], sizes = [2, 32], strides = [1, 1]} : vector<2x96xf32> to vector<2x32xf32>
    %1002 = vector.extract_strided_slice %992 {offsets = [0, 32], sizes = [2, 32], strides = [1, 1]} : vector<2x96xf32> to vector<2x32xf32>
    %1003 = arith.addf %1001, %1002 : vector<2x32xf32>
    %1004 = arith.negf %1003 : vector<2x32xf32>
    %1005 = math.exp %1004 : vector<2x32xf32>
    %cst_328 = arith.constant 1.000000e+00 : f32
    %1006 = vector.broadcast %cst_328 : f32 to vector<2x32xf32>
    %1007 = arith.addf %1006, %1005 : vector<2x32xf32>
    %1008 = arith.divf %1006, %1007 : vector<2x32xf32>
    %1009 = vector.extract_strided_slice %989 {offsets = [0, 64], sizes = [2, 32], strides = [1, 1]} : vector<2x96xf32> to vector<2x32xf32>
    %1010 = vector.extract_strided_slice %992 {offsets = [0, 64], sizes = [2, 32], strides = [1, 1]} : vector<2x96xf32> to vector<2x32xf32>
    %1011 = arith.mulf %1000, %1010 : vector<2x32xf32>
    %1012 = arith.addf %1009, %1011 : vector<2x32xf32>
    %1013 = math.tanh %1012 : vector<2x32xf32>
    %cst_329 = arith.constant 1.000000e+00 : f32
    %1014 = vector.broadcast %cst_329 : f32 to vector<2x32xf32>
    %1015 = arith.subf %1014, %1008 : vector<2x32xf32>
    %1016 = arith.mulf %1015, %1013 : vector<2x32xf32>
    %1017 = arith.mulf %1008, %987 : vector<2x32xf32>
    %1018 = arith.addf %1016, %1017 : vector<2x32xf32>
    %c4_330 = arith.constant 4 : index
    %c0_331 = arith.constant 0 : index
    %1019 = vector.load %arg33[%c4_330, %c0_331] : memref<16x32xf32, #tpu.memory_space<vmem>>, vector<2x32xf32>
    tpu.vector_store %arg33[%c4_330, %c0_331], %1018 {strides = array<i32>} : memref<16x32xf32, #tpu.memory_space<vmem>>, vector<2x32xf32>,
    %c2_332 = arith.constant 2 : index
    %c0_333 = arith.constant 0 : index
    %1020 = vector.load %arg29[%c2_332, %c0_333] : memref<16x96xf32, #tpu.memory_space<vmem>>, vector<2x96xf32>
    %cst_334 = arith.constant dense<0.000000e+00> : vector<2x96xf32>
    %1021 = tpu.matmul %1018, %831, %cst_334 {dimension_numbers = #tpu.dot_dimension_numbers<[1], [0], [0], [1], [0, 0, 1, 1], [], []>} : vector<2x32xf32>, vector<32x96xf32>, vector<2x96xf32> -> vector<2x96xf32>
    %1022 = vector.broadcast %832 : vector<1x96xf32> to vector<2x96xf32>
    %1023 = arith.addf %1021, %1022 : vector<2x96xf32>
    %1024 = vector.extract_strided_slice %1020 {offsets = [0, 0], sizes = [2, 32], strides = [1, 1]} : vector<2x96xf32> to vector<2x32xf32>
    %1025 = vector.extract_strided_slice %1023 {offsets = [0, 0], sizes = [2, 32], strides = [1, 1]} : vector<2x96xf32> to vector<2x32xf32>
    %1026 = arith.addf %1024, %1025 : vector<2x32xf32>
    %1027 = arith.negf %1026 : vector<2x32xf32>
    %1028 = math.exp %1027 : vector<2x32xf32>
    %cst_335 = arith.constant 1.000000e+00 : f32
    %1029 = vector.broadcast %cst_335 : f32 to vector<2x32xf32>
    %1030 = arith.addf %1029, %1028 : vector<2x32xf32>
    %1031 = arith.divf %1029, %1030 : vector<2x32xf32>
    %1032 = vector.extract_strided_slice %1020 {offsets = [0, 32], sizes = [2, 32], strides = [1, 1]} : vector<2x96xf32> to vector<2x32xf32>
    %1033 = vector.extract_strided_slice %1023 {offsets = [0, 32], sizes = [2, 32], strides = [1, 1]} : vector<2x96xf32> to vector<2x32xf32>
    %1034 = arith.addf %1032, %1033 : vector<2x32xf32>
    %1035 = arith.negf %1034 : vector<2x32xf32>
    %1036 = math.exp %1035 : vector<2x32xf32>
    %cst_336 = arith.constant 1.000000e+00 : f32
    %1037 = vector.broadcast %cst_336 : f32 to vector<2x32xf32>
    %1038 = arith.addf %1037, %1036 : vector<2x32xf32>
    %1039 = arith.divf %1037, %1038 : vector<2x32xf32>
    %1040 = vector.extract_strided_slice %1020 {offsets = [0, 64], sizes = [2, 32], strides = [1, 1]} : vector<2x96xf32> to vector<2x32xf32>
    %1041 = vector.extract_strided_slice %1023 {offsets = [0, 64], sizes = [2, 32], strides = [1, 1]} : vector<2x96xf32> to vector<2x32xf32>
    %1042 = arith.mulf %1031, %1041 : vector<2x32xf32>
    %1043 = arith.addf %1040, %1042 : vector<2x32xf32>
    %1044 = math.tanh %1043 : vector<2x32xf32>
    %cst_337 = arith.constant 1.000000e+00 : f32
    %1045 = vector.broadcast %cst_337 : f32 to vector<2x32xf32>
    %1046 = arith.subf %1045, %1039 : vector<2x32xf32>
    %1047 = arith.mulf %1046, %1044 : vector<2x32xf32>
    %1048 = arith.mulf %1039, %1018 : vector<2x32xf32>
    %1049 = arith.addf %1047, %1048 : vector<2x32xf32>
    %c2_338 = arith.constant 2 : index
    %c0_339 = arith.constant 0 : index
    %1050 = vector.load %arg33[%c2_338, %c0_339] : memref<16x32xf32, #tpu.memory_space<vmem>>, vector<2x32xf32>
    tpu.vector_store %arg33[%c2_338, %c0_339], %1049 {strides = array<i32>} : memref<16x32xf32, #tpu.memory_space<vmem>>, vector<2x32xf32>,
    %c0_340 = arith.constant 0 : index
    %c0_341 = arith.constant 0 : index
    %1051 = vector.load %arg29[%c0_340, %c0_341] : memref<16x96xf32, #tpu.memory_space<vmem>>, vector<2x96xf32>
    %cst_342 = arith.constant dense<0.000000e+00> : vector<2x96xf32>
    %1052 = tpu.matmul %1049, %831, %cst_342 {dimension_numbers = #tpu.dot_dimension_numbers<[1], [0], [0], [1], [0, 0, 1, 1], [], []>} : vector<2x32xf32>, vector<32x96xf32>, vector<2x96xf32> -> vector<2x96xf32>
    %1053 = vector.broadcast %832 : vector<1x96xf32> to vector<2x96xf32>
    %1054 = arith.addf %1052, %1053 : vector<2x96xf32>
    %1055 = vector.extract_strided_slice %1051 {offsets = [0, 0], sizes = [2, 32], strides = [1, 1]} : vector<2x96xf32> to vector<2x32xf32>
    %1056 = vector.extract_strided_slice %1054 {offsets = [0, 0], sizes = [2, 32], strides = [1, 1]} : vector<2x96xf32> to vector<2x32xf32>
    %1057 = arith.addf %1055, %1056 : vector<2x32xf32>
    %1058 = arith.negf %1057 : vector<2x32xf32>
    %1059 = math.exp %1058 : vector<2x32xf32>
    %cst_343 = arith.constant 1.000000e+00 : f32
    %1060 = vector.broadcast %cst_343 : f32 to vector<2x32xf32>
    %1061 = arith.addf %1060, %1059 : vector<2x32xf32>
    %1062 = arith.divf %1060, %1061 : vector<2x32xf32>
    %1063 = vector.extract_strided_slice %1051 {offsets = [0, 32], sizes = [2, 32], strides = [1, 1]} : vector<2x96xf32> to vector<2x32xf32>
    %1064 = vector.extract_strided_slice %1054 {offsets = [0, 32], sizes = [2, 32], strides = [1, 1]} : vector<2x96xf32> to vector<2x32xf32>
    %1065 = arith.addf %1063, %1064 : vector<2x32xf32>
    %1066 = arith.negf %1065 : vector<2x32xf32>
    %1067 = math.exp %1066 : vector<2x32xf32>
    %cst_344 = arith.constant 1.000000e+00 : f32
    %1068 = vector.broadcast %cst_344 : f32 to vector<2x32xf32>
    %1069 = arith.addf %1068, %1067 : vector<2x32xf32>
    %1070 = arith.divf %1068, %1069 : vector<2x32xf32>
    %1071 = vector.extract_strided_slice %1051 {offsets = [0, 64], sizes = [2, 32], strides = [1, 1]} : vector<2x96xf32> to vector<2x32xf32>
    %1072 = vector.extract_strided_slice %1054 {offsets = [0, 64], sizes = [2, 32], strides = [1, 1]} : vector<2x96xf32> to vector<2x32xf32>
    %1073 = arith.mulf %1062, %1072 : vector<2x32xf32>
    %1074 = arith.addf %1071, %1073 : vector<2x32xf32>
    %1075 = math.tanh %1074 : vector<2x32xf32>
    %cst_345 = arith.constant 1.000000e+00 : f32
    %1076 = vector.broadcast %cst_345 : f32 to vector<2x32xf32>
    %1077 = arith.subf %1076, %1070 : vector<2x32xf32>
    %1078 = arith.mulf %1077, %1075 : vector<2x32xf32>
    %1079 = arith.mulf %1070, %1049 : vector<2x32xf32>
    %1080 = arith.addf %1078, %1079 : vector<2x32xf32>
    %c0_346 = arith.constant 0 : index
    %c0_347 = arith.constant 0 : index
    %1081 = vector.load %arg33[%c0_346, %c0_347] : memref<16x32xf32, #tpu.memory_space<vmem>>, vector<2x32xf32>
    tpu.vector_store %arg33[%c0_346, %c0_347], %1080 {strides = array<i32>} : memref<16x32xf32, #tpu.memory_space<vmem>>, vector<2x32xf32>,
    %c0_348 = arith.constant 0 : index
    %c0_349 = arith.constant 0 : index
    %1082 = vector.load %arg33[%c0_348, %c0_349] : memref<16x32xf32, #tpu.memory_space<vmem>>, vector<16x32xf32>
    %c0_350 = arith.constant 0 : index
    %c0_351 = arith.constant 0 : index
    %1083 = vector.load %arg23[%c0_350, %c0_351] : memref<64x16xf32, #tpu.memory_space<vmem>>, vector<64x16xf32>
    %c0_352 = arith.constant 0 : index
    %c0_353 = arith.constant 0 : index
    %1084 = vector.load %arg24[%c0_352, %c0_353] : memref<1x16xf32, #tpu.memory_space<vmem>>, vector<1x16xf32>
    %1085 = vector.extract_strided_slice %1083 {offsets = [0, 0], sizes = [32, 16], strides = [1, 1]} : vector<64x16xf32> to vector<32x16xf32>
    %cst_354 = arith.constant dense<0.000000e+00> : vector<16x16xf32>
    %1086 = tpu.matmul %820, %1085, %cst_354 {dimension_numbers = #tpu.dot_dimension_numbers<[1], [0], [0], [1], [0, 0, 1, 1], [], []>} : vector<16x32xf32>, vector<32x16xf32>, vector<16x16xf32> -> vector<16x16xf32>
    %1087 = vector.broadcast %1084 : vector<1x16xf32> to vector<16x16xf32>
    %1088 = arith.addf %1087, %1086 : vector<16x16xf32>
    %1089 = vector.extract_strided_slice %1083 {offsets = [32, 0], sizes = [32, 16], strides = [1, 1]} : vector<64x16xf32> to vector<32x16xf32>
    %cst_355 = arith.constant dense<0.000000e+00> : vector<16x16xf32>
    %1090 = tpu.matmul %1082, %1089, %cst_355 {dimension_numbers = #tpu.dot_dimension_numbers<[1], [0], [0], [1], [0, 0, 1, 1], [], []>} : vector<16x32xf32>, vector<32x16xf32>, vector<16x16xf32> -> vector<16x16xf32>
    %1091 = arith.addf %1088, %1090 : vector<16x16xf32>
    %cst_356 = arith.constant 0.000000e+00 : f32
    %1092 = vector.broadcast %cst_356 : f32 to vector<16x16xf32>
    %1093 = arith.cmpf ogt, %1091, %1092 : vector<16x16xf32>
    %cst_357 = arith.constant 0.00999999977 : f32
    %1094 = vector.broadcast %cst_357 : f32 to vector<16x16xf32>
    %1095 = arith.mulf %1094, %1091 : vector<16x16xf32>
    %1096 = arith.select %1093, %1091, %1095 : vector<16x16xi1>, vector<16x16xf32>
    %c0_358 = arith.constant 0 : index
    %c0_359 = arith.constant 0 : index
    %1097 = vector.load %arg25[%c0_358, %c0_359] : memref<16x2xf32, #tpu.memory_space<vmem>>, vector<16x2xf32>
    %cst_360 = arith.constant dense<0.000000e+00> : vector<16x2xf32>
    %1098 = tpu.matmul %1096, %1097, %cst_360 {dimension_numbers = #tpu.dot_dimension_numbers<[1], [0], [0], [1], [0, 0, 1, 1], [], []>} : vector<16x16xf32>, vector<16x2xf32>, vector<16x2xf32> -> vector<16x2xf32>
    %c0_361 = arith.constant 0 : index
    %c0_362 = arith.constant 0 : index
    %1099 = vector.load %arg26[%c0_361, %c0_362] : memref<1x2xf32, #tpu.memory_space<vmem>>, vector<1x2xf32>
    %1100 = vector.broadcast %1099 : vector<1x2xf32> to vector<16x2xf32>
    %1101 = arith.addf %1098, %1100 : vector<16x2xf32>
    %c0_363 = arith.constant 0 : index
    %c0_364 = arith.constant 0 : index
    %1102 = vector.load %arg2[%c0_363, %c0_364] : memref<4x16xf32, #tpu.memory_space<vmem>>, vector<4x16xf32>
    %cst_365 = arith.constant dense<0.000000e+00> : vector<4x2xf32>
    %1103 = tpu.matmul %1102, %1101, %cst_365 {dimension_numbers = #tpu.dot_dimension_numbers<[1], [0], [0], [1], [0, 0, 1, 1], [], []>} : vector<4x16xf32>, vector<16x2xf32>, vector<4x2xf32> -> vector<4x2xf32>
    %c0_366 = arith.constant 0 : index
    %c0_367 = arith.constant 0 : index
    %1104 = vector.load %arg27[%c0_366, %c0_367] : memref<4x2xf32, #tpu.memory_space<vmem>>, vector<4x2xf32>
    tpu.vector_store %arg27[%c0_366, %c0_367], %1103 {strides = array<i32>} : memref<4x2xf32, #tpu.memory_space<vmem>>, vector<4x2xf32>,
    return
  }
}

</mosaic_0001>

<bundles_post_ra>
// kernel: tpu_custom_call.1
= control target key start
LH: loop header
LB: loop body
LE: loop exit
PB: predicated region body
PF: predicated region fallthrough
CT: control target
= control target key end

     0   :  { %s4501_s0 = inlined_call_operand.vmem [shape: f32[16,4], index: 0, kind: input, shape index: {}]   ;;  %s4502_s1 = inlined_call_operand.vmem [shape: f32[16,1], index: 1, kind: input, shape index: {}]   ;;  %s4503_s2 = inlined_call_operand.hbm [shape: f32[4,16], index: 2, kind: input, shape index: {}]   ;;  %s4504_s3 = inlined_call_operand.hbm [shape: f32[4,32], index: 3, kind: input, shape index: {}]   ;;  %s4505_s4 = inlined_call_operand.vmem [shape: f32[1,32], index: 4, kind: input, shape index: {}]   ;;  %s4506_s5 = inlined_call_operand.hbm [shape: f32[5,32,32], index: 5, kind: input, shape index: {}]   ;;  %s4507_s6 = inlined_call_operand.vmem [shape: f32[1,32], index: 6, kind: input, shape index: {}]   ;;  %s4508_s7 = inlined_call_operand.vmem [shape: f32[32,96], index: 7, kind: input, shape index: {}]   ;;  %s4509_s8 = inlined_call_operand.hbm [shape: f32[32,96], index: 8, kind: input, shape index: {}]   ;;  %s4510_s9 = inlined_call_operand.vmem [shape: f32[1,96], index: 9, kind: input, shape index: {}]   ;;  %s4511_s10 = inlined_call_operand.hbm [shape: f32[1,96], index: 10, kind: input, shape index: {}]   ;;  %s4512_s11 = inlined_call_operand.hbm [shape: f32[32,96], index: 11, kind: input, shape index: {}]   ;;  %s4513_s12 = inlined_call_operand.hbm [shape: f32[32,96], index: 12, kind: input, shape index: {}]   ;;  %s4514_s13 = inlined_call_operand.hbm [shape: f32[1,96], index: 13, kind: input, shape index: {}]   ;;  %s4515_s14 = inlined_call_operand.hbm [shape: f32[1,96], index: 14, kind: input, shape index: {}]   ;;  %s4516_s15 = inlined_call_operand.vmem [shape: f32[64,96], index: 15, kind: input, shape index: {}]   ;;  %s4517_s16 = inlined_call_operand.vmem [shape: f32[32,96], index: 16, kind: input, shape index: {}]   ;;  %s4518_s17 = inlined_call_operand.hbm [shape: f32[1,96], index: 17, kind: input, shape index: {}]   ;;  %s4519_s18 = inlined_call_operand.vmem [shape: f32[1,96], index: 18, kind: input, shape index: {}]   ;;  %s4520_s19 = inlined_call_operand.hbm [shape: f32[64,96], index: 19, kind: input, shape index: {}]   ;;  %s4521_s20 = inlined_call_operand.hbm [shape: f32[32,96], index: 20, kind: input, shape index: {}]   ;;  %s4522_s21 = inlined_call_operand.vmem [shape: f32[1,96], index: 21, kind: input, shape index: {}]   ;;  %s4523_s22 = inlined_call_operand.vmem [shape: f32[1,96], index: 22, kind: input, shape index: {}]   ;;  %s4524_s23 = inlined_call_operand.vmem [shape: f32[64,16], index: 23, kind: input, shape index: {}]   ;;  %s4525_s24 = inlined_call_operand.vmem [shape: f32[1,16], index: 24, kind: input, shape index: {}]   ;;  %s4526_s25 = inlined_call_operand.vmem [shape: f32[16,2], index: 25, kind: input, shape index: {}]   ;;  %s4527_s26 = inlined_call_operand.vmem [shape: f32[1,2], index: 26, kind: input, shape index: {}]   ;;  %s4528_s27 = inlined_call_operand.vmem [shape: f32[4,2], index: 27, kind: output, shape index: {}]  }
   0x1   :  { %4535 = sst [smem:[#allocation34_spill]] %s4501_s0 }
   0x2   :  { %4536 = sst [smem:[#allocation35_spill]] %s4503_s2 }
   0x3   :  { %4537 = sst [smem:[#allocation36_spill]] %s4504_s3 }
   0x4   :  { %4538 = sst [smem:[#allocation37_spill]] %s4505_s4 }
   0x5   :  { %4539 = sst [smem:[#allocation38_spill]] %s4506_s5 }
   0x6   :  { %4540 = sst [smem:[#allocation39_spill]] %s4507_s6 }
   0x7   :  { %4541 = sst [smem:[#allocation40_spill]] %s4508_s7 }
   0x8   :  { %4542 = sst [smem:[#allocation41_spill]] %s4509_s8 }
   0x9   :  { %4543 = sst [smem:[#allocation42_spill]] %s4510_s9 }
   0xa   :  { %4544 = sst [smem:[#allocation43_spill]] %s4511_s10 }
   0xb   :  { %4545 = sst [smem:[#allocation44_spill]] %s4512_s11 }
   0xc   :  { %4546 = sst [smem:[#allocation45_spill]] %s4528_s27 }
   0xd   :  { %32 = vsyncpa [#allocation9], 0 }
   0xe   :  { %33 = vsyncpa [#allocation11], 0 }
   0xf   :  { %34 = vsyncpa [#allocation14], 0 }
  0x10   :  { %35 = vsyncpa [#allocation17], 0 }
  0x11   :  { %36 = vsyncpa [#allocation20], 0 }
  0x12   :  { %37 = vsyncpa [#allocation23], 0  ;;  %s4547_s8 = sld [smem:[#allocation36_spill]] }
  0x18   :  { %s59_s30 = sshll.u32 %s4547_s8, 4  ;;  %s60_s30 = int_to_ptr.hbm [resolvable:$true] %s59_s30 }
  0x19   :  { %38 = vsyncpa [#allocation26], 0  ;;  %s3675_s9 = smov [#allocation10]   ;;  %s4548_s10 = sld [smem:[#allocation41_spill]] }
  0x1a   :  { %s61_s5 = sshll.u32 %s3675_s9, 4  ;;  %s3676_s1 = smov [#allocation13]   ;;  %s62_s5 = int_to_ptr.vmem [resolvable:$true] %s61_s5 }
  0x1b   :  { %64 = dma.hbm_to_vmem [thread:$0]  %s60_s30, 64, %s62_s5, [#allocation11]  }
  0x1c   :  { %s90_s6 = sshll.u32 %s3676_s1, 4  ;;  %s4549_s3 = sld [smem:[#allocation44_spill]]  ;;  %s91_s6 = int_to_ptr.vmem [resolvable:$true] %s90_s6 }
  0x1d   :  { %s4531_s7 = smov 128   ;;  %s4533_s4 = smov 8  }
  0x1e   :  { %s141_s9 = sshll.u32 %s4514_s13, 4  ;;  %s3679_s5 = smov [#allocation16]   ;;  %s142_s9 = int_to_ptr.hbm [resolvable:$true] %s141_s9 }
  0x1f   :  { %s88_s29 = sshll.u32 %s4548_s10, 4  ;;  %s116_s28 = sshll.u32 %s3679_s5, 4  ;;  %s89_s29 = int_to_ptr.hbm [resolvable:$true] %s88_s29  ;;  %s117_s28 = int_to_ptr.vmem [resolvable:$true] %s116_s28 }
  0x20   :  { %96 = dma.hbm_to_vmem [thread:$0]  %s89_s29, 512, %s91_s6, [#allocation14], %s4531_s7, %s4531_s7, %s4533_s4  }
  0x21   :  { %s3680_s0 = smov [#allocation19]   ;;  %s167_s2 = sshll.u32 %s4518_s17, 4  ;;  %s168_s2 = int_to_ptr.hbm [resolvable:$true] %s167_s2 }
  0x22   :  { %s114_s27 = sshll.u32 %s4549_s3, 4  ;;  %s143_s10 = sshll.u32 %s3680_s0, 4  ;;  %s115_s27 = int_to_ptr.hbm [resolvable:$true] %s114_s27  ;;  %s144_s10 = int_to_ptr.vmem [resolvable:$true] %s143_s10 }
  0x23   :  { %122 = dma.hbm_to_vmem [thread:$0]  %s115_s27, 512, %s117_s28, [#allocation17], %s4531_s7, %s4531_s7, %s4533_s4  }
  0x24   :  { %146 = dma.hbm_to_vmem [thread:$0]  %s142_s9, 16, %s144_s10, [#allocation20]  }
  0x25   :  { %s4550_s13 = sld [smem:[#allocation35_spill]]  ;;  %s3681_s8 = smov [#allocation22]  }
  0x26   :  { %s169_s30 = sshll.u32 %s3681_s8, 4  ;;  %s3682_s5 = smov [#allocation8]   ;;  %s170_s30 = int_to_ptr.vmem [resolvable:$true] %s169_s30 }
  0x27   :  { %172 = dma.hbm_to_vmem [thread:$0]  %s168_s2, 16, %s170_s30, [#allocation23]  }
  0x28   :  { %s50_s27 = sshll.u32 %s3682_s5, 4  ;;  %s4551_s7 = sld [smem:[#allocation38_spill]]  ;;  %s51_s27 = int_to_ptr.vmem [resolvable:$true] %s50_s27 }
  0x29   :  { %s4552_s10 = sld [smem:[#allocation43_spill]]  ;;  %s3683_s11 = smov [#allocation12]  }
  0x2a   :  { %s73_s29 = sshll.u32 %s3683_s11, 4  ;;  %s4553_s6 = smov 8   ;;  %s74_s29 = int_to_ptr.vmem [resolvable:$true] %s73_s29 }
  0x2b   :  { %s48_s3 = sshll.u32 %s4550_s13, 4  ;;  %s4554_s13 = smov 128   ;;  %s49_s3 = int_to_ptr.hbm [resolvable:$true] %s48_s3 }
  0x2c   :  { %53 = dma.hbm_to_vmem [thread:$0]  %s49_s3, 64, %s51_s27, [#allocation9]  }
  0x2d   :  { %s3684_s2 = smov [#allocation15]   ;;  %s152_s28 = sshll.u32 %s4515_s14, 4  ;;  %s153_s28 = int_to_ptr.hbm [resolvable:$true] %s152_s28 }
  0x2e   :  { %s71_s4 = sshll.u32 %s4551_s7, 4  ;;  %s106_s8 = sshll.u32 %s3684_s2, 4  ;;  %s72_s4 = int_to_ptr.hbm [resolvable:$true] %s71_s4  ;;  %s107_s8 = int_to_ptr.vmem [resolvable:$true] %s106_s8 }
  0x2f   :  { %s104_s1 = sshll.u32 %s4552_s10, 4  ;;  %s127_s7 = sshll.u32 %s4513_s12, 4  ;;  %s105_s1 = int_to_ptr.hbm [resolvable:$true] %s104_s1  ;;  %s128_s7 = int_to_ptr.hbm [resolvable:$true] %s127_s7 }
  0x30   :  { %79 = dma.hbm_to_vmem [thread:$0]  %s72_s4, 2560, %s74_s29, [#allocation11], %s4554_s13, %s4554_s13, %s4553_s6  }
  0x31   :  { %109 = dma.hbm_to_vmem [thread:$0]  %s105_s1, 16, %s107_s8, [#allocation14]  }
  0x32   :  { %s3685_s0 = smov [#allocation18]   ;;  %s3686_s4 = smov [#allocation21]  }
  0x33   :  { %s129_s17 = sshll.u32 %s3685_s0, 4  ;;  %s154_s9 = sshll.u32 %s3686_s4, 4  ;;  %s130_s17 = int_to_ptr.vmem [resolvable:$true] %s129_s17  ;;  %s155_s9 = int_to_ptr.vmem [resolvable:$true] %s154_s9 }
  0x34   :  { %135 = dma.hbm_to_vmem [thread:$0]  %s128_s7, 512, %s130_s17, [#allocation17], %s4554_s13, %s4554_s13, %s4553_s6  }
  0x35   :  { %s179_s12 = sshll.u32 %s4520_s19, 4  ;;  %s192_s14 = sshll.u32 %s4521_s20, 4  ;;  %s180_s12 = int_to_ptr.hbm [resolvable:$true] %s179_s12  ;;  %s193_s14 = int_to_ptr.hbm [resolvable:$true] %s192_s14 }
  0x36   :  { %157 = dma.hbm_to_vmem [thread:$0]  %s153_s28, 16, %s155_s9, [#allocation20]  }
  0x37   :  { %s3687_s2 = smov [#allocation24]   ;;  %s3688_s30 = smov [#allocation25]  }
  0x38   :  { %s181_s8 = sshll.u32 %s3687_s2, 4  ;;  %s194_s5 = sshll.u32 %s3688_s30, 4  ;;  %s182_s8 = int_to_ptr.vmem [resolvable:$true] %s181_s8  ;;  %s195_s5 = int_to_ptr.vmem [resolvable:$true] %s194_s5 }
  0x39   :  { %187 = dma.hbm_to_vmem [thread:$0]  %s180_s12, 1024, %s182_s8, [#allocation23], %s4554_s13, %s4554_s13, %s4553_s6  }
  0x3a   :  { %200 = dma.hbm_to_vmem [thread:$0]  %s193_s14, 512, %s195_s5, [#allocation26], %s4554_s13, %s4554_s13, %s4553_s6  }
  0x3b   :  { %3661 = dma.done.wait [#allocation9], 64  }
  0x3c   :  { %3662 = vsyncadd [#allocation9], 4294967232 }
  0x3d   :  { %3663 = dma.done.wait [#allocation11], 2624  }
  0x3e   :  { %3664 = vsyncadd [#allocation11], 4294964672 }
  0x3f   :  { %3665 = dma.done.wait [#allocation14], 528  }
  0x40   :  { %3666 = vsyncadd [#allocation14], 4294966768 }
  0x41   :  { %3667 = dma.done.wait [#allocation17], 1024  }
  0x42   :  { %3668 = vsyncadd [#allocation17], 4294966272 }
  0x43   :  { %3669 = dma.done.wait [#allocation20], 32  }
  0x44   :  { %3670 = vsyncadd [#allocation20], 4294967264 }
  0x45   :  { %3671 = dma.done.wait [#allocation23], 1040  }
  0x46   :  { %3672 = vsyncadd [#allocation23], 4294966256 }
  0x47   :  { %3673 = dma.done.wait [#allocation26], 512  }
  0x48   :  { %3674 = vsyncadd [#allocation26], 4294966784  ;;  %vm275_vm0 = vcmask 1043456   ;;  %vm268_vm1 = vcmask 31744   ;;  %v263_v0 = vld [vmem:[#allocation10] sm:$0xf] }
  0x49   :  { %s4555_s6 = sld [smem:[#allocation34_spill]]  ;;  %3058 = vmatpush.msk.msra.mxu0 %vm275_vm0, %v263_v0  ;;  %vm308_vm2 = vcmask 261120   ;;  %v3689_v3 = vmov 0.0   ;;  %v324_v4 = vld [vmem:[#allocation12 + $0x18] sm:$0xff]  ;;  %v323_v7 = vld [vmem:[#allocation12 + $0x10] sm:$0xff]  ;;  %v322_v10 = vld [vmem:[#allocation12 + $0x8] sm:$0xff] }
  0x4a   :  { %309 = vst.msk [vmem:[#allocation2] sm:$0xff] %vm308_vm2, %v3689_v3  ;;  %v362_v5 = vld [vmem:[#allocation12 + $0x38] sm:$0xff]  ;;  %343 = vmatpush.msra.mxu1 %v324_v4  ;;  %v361_v8 = vld [vmem:[#allocation12 + $0x30] sm:$0xff]  ;;  %v360_v11 = vld [vmem:[#allocation12 + $0x28] sm:$0xff]  ;;  %s4556_s28 = sld [smem:[#allocation37_spill]]  ;;  %s3690_s30 = smov 64  }
  0x4b   :  { %310 = vst.msk [vmem:[#allocation2 + $0x8] sm:$0xff] %vm308_vm2, %v3689_v3  ;;  %v400_v6 = vld [vmem:[#allocation12 + $0x58] sm:$0xff]  ;;  %381 = vmatpush.msra.mxu2 %v362_v5  ;;  %v399_v9 = vld [vmem:[#allocation12 + $0x50] sm:$0xff]  ;;  %v398_v12 = vld [vmem:[#allocation12 + $0x48] sm:$0xff]  ;;  %s4557_s4 = sld [smem:[#allocation40_spill]]  ;;  %vm547_vm5 = vcmask 785408  }
  0x4c   :  { %311 = vst.msk [vmem:[#allocation2 + $0x10] sm:$0xff] %vm308_vm2, %v3689_v3  ;;  %419 = vmatpush.msra.mxu3 %v400_v6  ;;  %344 = vmatpush.msra.mxu1 %v323_v7  ;;  %v321_v13 = vld [vmem:[#allocation12] sm:$0xff]  ;;  %v438_v16 = vld [vmem:[#allocation12 + $0x78] sm:$0xff]  ;;  %v437_v17 = vld [vmem:[#allocation12 + $0x70] sm:$0xff]  ;;  %s4558_s8 = sld [smem:[#allocation39_spill]]  ;;  %vm625_vm10 = vcmask 254976  }
  0x4d   :  { %382 = vmatpush.msra.mxu2 %v361_v8  ;;  %v359_v14 = vld [vmem:[#allocation12 + $0x20] sm:$0xff]  ;;  %457 = vmatpush.msrb.mxu0 %v438_v16  ;;  %v476_v18 = vld [vmem:[#allocation12 + $0x98] sm:$0xff]  ;;  %v436_v19 = vld [vmem:[#allocation12 + $0x68] sm:$0xff]  ;;  %s4559_s20 = sld [smem:[#allocation42_spill]] }
  0x4e   :  { %420 = vmatpush.msra.mxu3 %v399_v9  ;;  %345 = vmatpush.msra.mxu1 %v322_v10  ;;  %v397_v15 = vld [vmem:[#allocation12 + $0x40] sm:$0xff]  ;;  %v475_v21 = vld [vmem:[#allocation12 + $0x90] sm:$0xff]  ;;  %v474_v22 = vld [vmem:[#allocation12 + $0x88] sm:$0xff] }
  0x4f   :  { %v261_v1 = vld [vmem:[%s4555_s6] sm:$0xff]  ;;  %v262_v2 = vld [vmem:[%s4555_s6 + $0x8] sm:$0xff]  ;;  %383 = vmatpush.msra.mxu2 %v360_v11  ;;  %458 = vmatpush.msrb.mxu0 %v437_v17  ;;  %v435_v20 = vld [vmem:[#allocation12 + $0x60] sm:$0xff]  ;;  %s3691_s6 = smov 96  }
  0x50   :  { %3059 = vmatmul.msk.f32.vlgmr.msra.gmra.mxu0 %vm268_vm1, %v261_v1  ;;  %421 = vmatpush.msra.mxu3 %v398_v12  ;;  %v473_v23 = vld [vmem:[#allocation12 + $0x80] sm:$0xff]  ;;  %v3167_v24 = vld [vmem:[%s4556_s28] ss:$0 sm:$0xff]  ;;  %v3902_v29 = vld [vmem:[#allocation13 + $0x18] sm:$0xff] }
  0x51   :  { %346 = vmatpush.msra.mxu1 %v321_v13  ;;  %384 = vmatpush.msra.mxu2 %v359_v14  ;;  %v3904_v30 = vld [vmem:[#allocation13 + $0x10] sm:$0xff]  ;;  %v551_v32 = vld [vmem:[#allocation13 + $0x8] sm:$0xff]  ;;  %v550_v34 = vld [vmem:[#allocation13] sm:$0xff] }
  0x52   :  { %422 = vmatpush.msra.mxu3 %v397_v15  ;;  %459 = vmatpush.msrb.mxu0 %v436_v19  ;;  %v511_v46 = vld [vmem:[%s4557_s4 + $0x18] sm:$0xff]  ;;  %v510_v47 = vld [vmem:[%s4557_s4 + $0x10] sm:$0xff]  ;;  %v509_v48 = vld [vmem:[%s4557_s4 + $0x8] sm:$0xff] }
  0x53   :  { %495 = vmatpush.msrb.mxu1 %v476_v18  ;;  %531 = vmatpush.msrb.mxu2 %v511_v46  ;;  %v508_v49 = vld [vmem:[%s4557_s4] sm:$0xff]  ;;  %v3953_v4 = vld [vmem:[#allocation15] ss:$0 sm:$0xff] }
  0x54   :  { %460 = vmatpush.msrb.mxu0 %v435_v20  ;;  %574 = vmatpush.msrb.mxu3 %v3902_v29  ;;  %v3168_v51 = vld [vmem:[%s4558_s8] ss:$0 sm:$0xff] }
  0x55   :  { %496 = vmatpush.msrb.mxu1 %v475_v21  ;;  %532 = vmatpush.msrb.mxu2 %v510_v47  ;;  %v3170_v11 = vld [vmem:[%s4559_s20] ss:$0 sm:$0xff] }
  0x56   :  { %709 = vmatpush.msra.mxu0 %v3902_v29  ;;  %575 = vmatpush.msrb.mxu3 %v3904_v30 }
  0x57   :  { %497 = vmatpush.msrb.mxu1 %v474_v22  ;;  %533 = vmatpush.msrb.mxu2 %v509_v48 }
  0x58   :  { %3060 = vmatmul.msk.f32.gmra.mxu0 %vm268_vm1, %v262_v2  ;;  %576 = vmatpush.msrb.mxu3 %v551_v32 }
  0x59   :  { %498 = vmatpush.msrb.mxu1 %v473_v23  ;;  %710 = vmatpush.msra.mxu0 %v3904_v30 }
  0x5a   :  { %577 = vmatpush.msrb.mxu3 %v550_v34  ;;  %534 = vmatpush.msrb.mxu2 %v508_v49 }
  0x5b   :  { %711 = vmatpush.msra.mxu0 %v551_v32 }
  0x5d   :  { %712 = vmatpush.msra.mxu0 %v550_v34 }
  0xcd   :  { %v296_v25 = vpop.f32.mrf.mxu0 }
  0xce   :  { %v297_v26 = vadd.f32 %v3167_v24, %v296_v25 }
  0xd0   :  { %vm302_vm3 = vcmp.gt.f32.partialorder %v297_v26, 0.0  ;;  %v304_v27 = vmul.f32 0.01, %v297_v26 }
  0xd2   :  { %v306_v28 = vsel %vm302_vm3, %v297_v26, %v304_v27 }
  0xd3   :  { %312 = vst.msk [vmem:[#allocation2 + $0x4] sm:$0xff] %vm308_vm2, %v306_v28 }
  0xd5   :  { %v299_v31 = vpop.f32.mrf.mxu0 }
  0xd6   :  { %v300_v33 = vadd.f32 %v3167_v24, %v299_v31 }
  0xd8   :  { %vm303_vm4 = vcmp.gt.f32.partialorder %v300_v33, 0.0  ;;  %v305_v35 = vmul.f32 0.01, %v300_v33 }
  0xda   :  { %v307_v36 = vsel %vm303_vm4, %v300_v33, %v305_v35  ;;  %v319_v37 = vld [vmem:[#allocation2] sm:$0xff] }
  0xdb   :  { %v356_v38 = vld [vmem:[#allocation2 + $0x2] sm:$0xff]  ;;  %313 = vst.msk [vmem:[#allocation2 + $0xc] sm:$0xff] %vm308_vm2, %v307_v36  ;;  %3061 = vmatmul.msk.f32.vlgmr.msra.gmra.mxu1 %vm308_vm2, %v319_v37 }
  0xdc   :  { %v394_v39 = vld [vmem:[#allocation2 + $0x4] sm:$0xff]  ;;  %3063 = vmatmul.msk.f32.vlgmr.msra.gmra.mxu2 %vm308_vm2, %v356_v38  ;;  %776 = vmatpush.msra.mxu1 %v3902_v29 }
  0xdd   :  { %3065 = vmatmul.msk.f32.vlgmr.msra.gmra.mxu3 %vm308_vm2, %v394_v39  ;;  %843 = vmatpush.msra.mxu2 %v3902_v29 }
  0xde   :  { %642 = vmatpush.msra.mxu3 %v3902_v29  ;;  %777 = vmatpush.msra.mxu1 %v3904_v30 }
  0xdf   :  { %844 = vmatpush.msra.mxu2 %v3904_v30 }
  0xe0   :  { %643 = vmatpush.msra.mxu3 %v3904_v30  ;;  %778 = vmatpush.msra.mxu1 %v551_v32 }
  0xe1   :  { %845 = vmatpush.msra.mxu2 %v551_v32 }
  0xe2   :  { %644 = vmatpush.msra.mxu3 %v551_v32  ;;  %v320_v40 = vld [vmem:[#allocation2 + $0x8] sm:$0xff]  ;;  %779 = vmatpush.msra.mxu1 %v550_v34  ;;  %v471_v45 = vld [vmem:[#allocation2 + $0x10] sm:$0xff] }
  0xe3   :  { %v357_v41 = vld [vmem:[#allocation2 + $0xa] sm:$0xff]  ;;  %3062 = vmatmul.msk.f32.gmra.mxu1 %vm308_vm2, %v320_v40  ;;  %846 = vmatpush.msra.mxu2 %v550_v34 }
  0xe4   :  { %v395_v42 = vld [vmem:[#allocation2 + $0xc] sm:$0xff]  ;;  %3064 = vmatmul.msk.f32.gmra.mxu2 %vm308_vm2, %v357_v41  ;;  %645 = vmatpush.msra.mxu3 %v550_v34 }
  0xe5   :  { %v432_v43 = vld [vmem:[#allocation2 + $0x6] sm:$0xff]  ;;  %3066 = vmatmul.msk.f32.gmra.mxu3 %vm308_vm2, %v395_v42  ;;  %v433_v44 = vld [vmem:[#allocation2 + $0xe] sm:$0xff] }
  0xe6   :  { %3067 = vmatmul.msk.f32.vlgmr.msrb.gmra.mxu0 %vm308_vm2, %v432_v43 }
  0xe7   :  { %977 = vmatpush.msrb.mxu0 %v3902_v29 }
  0xe9   :  { %978 = vmatpush.msrb.mxu0 %v3904_v30 }
  0xeb   :  { %979 = vmatpush.msrb.mxu0 %v551_v32  ;;  %3069 = vmatmul.msk.f32.vlgmr.msrb.gmra.mxu1 %vm308_vm2, %v320_v40 }
  0xec   :  { %1044 = vmatpush.msrb.mxu1 %v3902_v29 }
  0xed   :  { %980 = vmatpush.msrb.mxu0 %v550_v34  ;;  %578 = vmatmul.f32.vlgmr.msrb.gmra.mxu3 %v3689_v3 }
  0xee   :  { %3068 = vmatmul.msk.f32.gmra.mxu0 %vm308_vm2, %v433_v44  ;;  %910 = vmatpush.msrb.mxu3 %v3902_v29 }
  0xef   :  { %1045 = vmatpush.msrb.mxu1 %v3904_v30 }
  0xf0   :  { %911 = vmatpush.msrb.mxu3 %v3904_v30 }
  0xf1   :  { %1046 = vmatpush.msrb.mxu1 %v551_v32 }
  0xf2   :  { %912 = vmatpush.msrb.mxu3 %v551_v32 }
  0xf3   :  { %3070 = vmatmul.msk.f32.gmra.mxu1 %vm308_vm2, %v471_v45 }
  0xf4   :  { %913 = vmatpush.msrb.mxu3 %v550_v34  ;;  %1047 = vmatpush.msrb.mxu1 %v550_v34 }
 0x158   :  { %v348_v50 = vpop.f32.mrf.mxu1 }
 0x159   :  { %v354_v52 = vadd.f32 %v3168_v51, %v348_v50 }
 0x15f   :  { %v386_v53 = vpop.f32.mrf.mxu2 }
 0x160   :  { %v392_v54 = vadd.f32 %v386_v53, %v354_v52  ;;  %v424_v55 = vpop.f32.mrf.mxu3  ;;  %v351_v56 = vpop.f32.mrf.mxu1 }
 0x161   :  { %v355_v59 = vadd.f32 %v3168_v51, %v351_v56 }
 0x162   :  { %v430_v57 = vadd.f32 %v424_v55, %v392_v54 }
 0x163   :  { %v462_v58 = vpop.f32.mrf.mxu0 }
 0x164   :  { %v468_v61 = vadd.f32 %v462_v58, %v430_v57 }
 0x167   :  { %v389_v60 = vpop.f32.mrf.mxu2 }
 0x168   :  { %v393_v62 = vadd.f32 %v389_v60, %v355_v59  ;;  %v427_v63 = vpop.f32.mrf.mxu3  ;;  %v500_v0 = vpop.f32.mrf.mxu1 }
 0x169   :  { %v3949_v1 = vadd.f32 %v500_v0, %v468_v61 }
 0x16a   :  { %v431_v2 = vadd.f32 %v427_v63, %v393_v62 }
 0x16b   :  { %3071 = vmatmul.msk.f32.vlgmr.msrb.gmra.mxu2 %vm308_vm2, %v3949_v1  ;;  %v465_v5 = vpop.f32.mrf.mxu0 }
 0x16c   :  { %v469_v6 = vadd.f32 %v465_v5, %v431_v2 }
 0x170   :  { %v579_v7 = vpop.f32.mrf.mxu3  ;;  %v503_v8 = vpop.f32.mrf.mxu1 }
 0x171   :  { %v580_v9 = vadd.f32 %v3953_v4, %v579_v7  ;;  %v3956_v10 = vadd.f32 %v503_v8, %v469_v6 }
 0x173   :  { %603 = vrot.lane.b32.xlu0 %v580_v9, %s3690_s30  ;;  %3072 = vmatmul.msk.f32.gmra.mxu2 %vm308_vm2, %v3956_v10 }
 0x1e5   :  { %v604_v28 = vpop.permute.xlu0 %603 }
 0x1ee   :  { %v536_v12 = vpop.f32.mrf.mxu2 }
 0x1ef   :  { %v545_v13 = vadd.f32 %v3170_v11, %v536_v12 }
 0x1f1   :  { %548 = vst.msk [vmem:[#allocation3] sm:$0xff] %vm547_vm5, %v545_v13 }
 0x1f6   :  { %v539_v14 = vpop.f32.mrf.mxu2 }
 0x1f7   :  { %v546_v15 = vadd.f32 %v3170_v11, %v539_v14 }
 0x1f8   :  { %v555_v16 = vld [vmem:[#allocation3] sm:$0x3]  ;;  %v627_v44 = vld [vmem:[#allocation3 + $0x2] sm:$0x3]  ;;  %v694_v12 = vld [vmem:[#allocation3 + $0x4] sm:$0x3] }
 0x1f9   :  { %549 = vst.msk [vmem:[#allocation3 + $0x8] sm:$0xff] %vm547_vm5, %v546_v15  ;;  %v582_v17 = vadd.f32 %v580_v9, %v555_v16 }
 0x1fb   :  { %v3073_v18 = vmul.f32 -1.442695, %v582_v17 }
 0x1fd   :  { %3179 = vpow2.f32 %v3073_v18 }
 0x203   :  { %v3180_v19 = vpop.eup %3179 }
 0x204   :  { %v586_v20 = vadd.f32 1.0, %v3180_v19 }
 0x206   :  { %3181 = vrcp.f32 %v586_v20  ;;  %v598_v24 = vand.u32 2147483648, %v586_v20  ;;  %v596_v26 = vand.u32 2147483647, %v586_v20  ;;  %vm592_vm7 = vweird.f32 %v586_v20 }
 0x208   :  { %v599_v29 = vor.u32 1.1754944e-38, %v598_v24  ;;  %vm597_vm9 = vcmp.eq.f32.partialorder %v596_v26, 8.507059e+37 }
 0x20c   :  { %v3182_v21 = vpop.eup %3181 }
 0x20d   :  { %v588_v22 = vmul.f32 %v3182_v21, %v586_v20  ;;  %vm593_vm6 = vweird.f32 %v3182_v21 }
 0x20e   :  { %vm594_vm8 = vmor %vm592_vm7, %vm593_vm6 }
 0x20f   :  { %v589_v23 = vsub.f32 1.0, %v588_v22 }
 0x211   :  { %v590_v25 = vmul.f32 %v3182_v21, %v589_v23 }
 0x213   :  { %v591_v27 = vadd.f32 %v3182_v21, %v590_v25 }
 0x215   :  { %v595_v30 = vsel %vm594_vm8, %v3182_v21, %v591_v27 }
 0x216   :  { %v600_v31 = vsel %vm597_vm9, %v599_v29, %v595_v30 }
 0x217   :  { %v606_v32 = vmul.f32 %v604_v28, %v600_v31  ;;  %v613_v36 = vsub.f32 1.0, %v600_v31  ;;  %v619_v38 = vmul.f32 0.0, %v600_v31 }
 0x219   :  { %608 = vrot.lane.b32.xlu0 %v606_v32, %s3690_s30 }
 0x28b   :  { %v609_v33 = vpop.permute.xlu0 %608 }
 0x28c   :  { %v611_v34 = vadd.f32 %v609_v33, %v555_v16 }
 0x28e   :  { %3183 = vtanh.f32 %v611_v34 }
 0x294   :  { %v3184_v35 = vpop.eup %3183 }
 0x295   :  { %615 = vrot.lane.b32.xlu1 %v3184_v35, %s3691_s6 }
 0x307   :  { %v616_v37 = vpop.permute.xlu1 %615 }
 0x308   :  { %v618_v39 = vmul.f32 %v616_v37, %v613_v36 }
 0x30a   :  { %v620_v40 = vadd.f32 %v619_v38, %v618_v39 }
 0x30c   :  { %622 = vrot.lane.b32.xlu1 %v620_v40, %s3691_s6 }
 0x37e   :  { %v623_v41 = vpop.permute.xlu1 %622 }
 0x37f   :  { %626 = vst.msk [vmem:[#allocation4] sm:$0x3] %vm625_vm10, %v623_v41  ;;  %3074 = vmatmul.msk.f32.vlgmr.msra.gmra.mxu3 %vm308_vm2, %v623_v41 }
 0x402   :  { %v647_v42 = vpop.f32.mrf.mxu3 }
 0x403   :  { %v648_v43 = vadd.f32 %v3953_v4, %v647_v42 }
 0x405   :  { %671 = vrot.lane.b32.xlu2 %v648_v43, %s3690_s30  ;;  %v650_v45 = vadd.f32 %v648_v43, %v627_v44 }
 0x407   :  { %v3075_v46 = vmul.f32 -1.442695, %v650_v45 }
 0x409   :  { %3185 = vpow2.f32 %v3075_v46 }
 0x40f   :  { %v3186_v47 = vpop.eup %3185 }
 0x410   :  { %v654_v48 = vadd.f32 1.0, %v3186_v47 }
 0x412   :  { %3187 = vrcp.f32 %v654_v48  ;;  %v666_v54 = vand.u32 2147483648, %v654_v48  ;;  %vm660_vm12 = vweird.f32 %v654_v48  ;;  %v664_v55 = vand.u32 2147483647, %v654_v48 }
 0x414   :  { %v667_v57 = vor.u32 1.1754944e-38, %v666_v54  ;;  %vm665_vm14 = vcmp.eq.f32.partialorder %v664_v55, 8.507059e+37 }
 0x418   :  { %v3188_v49 = vpop.eup %3187 }
 0x419   :  { %v656_v50 = vmul.f32 %v3188_v49, %v654_v48  ;;  %vm661_vm11 = vweird.f32 %v3188_v49 }
 0x41a   :  { %vm662_vm13 = vmor %vm660_vm12, %vm661_vm11 }
 0x41b   :  { %v657_v51 = vsub.f32 1.0, %v656_v50 }
 0x41d   :  { %v658_v52 = vmul.f32 %v3188_v49, %v657_v51 }
 0x41f   :  { %v659_v53 = vadd.f32 %v3188_v49, %v658_v52 }
 0x421   :  { %v663_v56 = vsel %vm662_vm13, %v3188_v49, %v659_v53 }
 0x422   :  { %v668_v59 = vsel %vm665_vm14, %v667_v57, %v663_v56 }
 0x423   :  { %v681_v0 = vsub.f32 1.0, %v668_v59  ;;  %v687_v5 = vmul.f32 %v668_v59, %v620_v40  ;;  %v761_v40 = vld [vmem:[#allocation3 + $0x6] sm:$0x3] }
 0x45f   :  { %v672_v58 = vpop.permute.xlu2 %671 }
 0x460   :  { %v674_v60 = vmul.f32 %v672_v58, %v668_v59 }
 0x462   :  { %676 = vrot.lane.b32.xlu2 %v674_v60, %s3690_s30 }
 0x4bc   :  { %v677_v61 = vpop.permute.xlu2 %676 }
 0x4bd   :  { %v679_v62 = vadd.f32 %v677_v61, %v627_v44 }
 0x4bf   :  { %3189 = vtanh.f32 %v679_v62 }
 0x4c5   :  { %v3190_v63 = vpop.eup %3189 }
 0x4c6   :  { %683 = vrot.lane.b32.xlu0 %v3190_v63, %s3691_s6 }
 0x538   :  { %v684_v2 = vpop.permute.xlu0 %683 }
 0x539   :  { %v686_v6 = vmul.f32 %v684_v2, %v681_v0  ;;  %v1101_v2 = vld [vmem:[#allocation16 + $0x18] sm:$0xff] }
 0x53a   :  { %1115 = vmatpush.msrb.mxu2 %v1101_v2 }
 0x53b   :  { %v688_v7 = vadd.f32 %v687_v5, %v686_v6  ;;  %v1100_v5 = vld [vmem:[#allocation16 + $0x10] sm:$0xff]  ;;  %v1099_v6 = vld [vmem:[#allocation16 + $0x8] sm:$0xff] }
 0x53c   :  { %1116 = vmatpush.msrb.mxu2 %v1100_v5 }
 0x53d   :  { %690 = vrot.lane.b32.xlu1 %v688_v7, %s3691_s6 }
 0x53e   :  { %1117 = vmatpush.msrb.mxu2 %v1099_v6 }
 0x5af   :  { %v691_v8 = vpop.permute.xlu1 %690 }
 0x5b0   :  { %693 = vst.msk [vmem:[#allocation4 + $0x2] sm:$0x3] %vm625_vm10, %v691_v8  ;;  %3076 = vmatmul.msk.f32.vlgmr.msra.gmra.mxu0 %vm308_vm2, %v691_v8 }
 0x62d   :  { %v714_v9 = vpop.f32.mrf.mxu0 }
 0x62e   :  { %v715_v11 = vadd.f32 %v3953_v4, %v714_v9 }
 0x630   :  { %738 = vrot.lane.b32.xlu2 %v715_v11, %s3690_s30  ;;  %v717_v13 = vadd.f32 %v715_v11, %v694_v12 }
 0x632   :  { %v3077_v14 = vmul.f32 -1.442695, %v717_v13 }
 0x634   :  { %3191 = vpow2.f32 %v3077_v14 }
 0x63a   :  { %v3192_v15 = vpop.eup %3191 }
 0x63b   :  { %v721_v16 = vadd.f32 1.0, %v3192_v15 }
 0x63d   :  { %3193 = vrcp.f32 %v721_v16  ;;  %v733_v22 = vand.u32 2147483648, %v721_v16  ;;  %vm727_vm0 = vweird.f32 %v721_v16  ;;  %v731_v23 = vand.u32 2147483647, %v721_v16 }
 0x63f   :  { %v734_v25 = vor.u32 1.1754944e-38, %v733_v22  ;;  %vm732_vm3 = vcmp.eq.f32.partialorder %v731_v23, 8.507059e+37 }
 0x643   :  { %v3194_v17 = vpop.eup %3193 }
 0x644   :  { %v723_v18 = vmul.f32 %v3194_v17, %v721_v16  ;;  %vm728_vm15 = vweird.f32 %v3194_v17  ;;  %v3999_v16 = vld [vmem:[#allocation3 + $0xc] sm:$0x3] }
 0x645   :  { %vm729_vm1 = vmor %vm727_vm0, %vm728_vm15 }
 0x646   :  { %v724_v19 = vsub.f32 1.0, %v723_v18  ;;  %v4001_v18 = vld [vmem:[#allocation3 + $0xe] sm:$0x3] }
 0x648   :  { %v725_v20 = vmul.f32 %v3194_v17, %v724_v19  ;;  %v4003_v19 = vld [vmem:[#allocation3 + $0xa] sm:$0x3] }
 0x64a   :  { %v726_v21 = vadd.f32 %v3194_v17, %v725_v20 }
 0x64c   :  { %v730_v24 = vsel %vm729_vm1, %v3194_v17, %v726_v21 }
 0x64d   :  { %v735_v27 = vsel %vm732_vm3, %v734_v25, %v730_v24 }
 0x64e   :  { %v748_v32 = vsub.f32 1.0, %v735_v27  ;;  %v754_v34 = vmul.f32 %v735_v27, %v688_v7  ;;  %v1098_v7 = vld [vmem:[#allocation16] sm:$0xff] }
 0x64f   :  { %1118 = vmatpush.msrb.mxu2 %v1098_v7 }
 0x68a   :  { %v739_v26 = vpop.permute.xlu2 %738 }
 0x68b   :  { %v741_v28 = vmul.f32 %v739_v26, %v735_v27 }
 0x68d   :  { %743 = vrot.lane.b32.xlu0 %v741_v28, %s3690_s30 }
 0x6ff   :  { %v744_v29 = vpop.permute.xlu0 %743 }
 0x700   :  { %v746_v30 = vadd.f32 %v744_v29, %v694_v12  ;;  %v3171_v12 = vld [vmem:[#allocation19] ss:$0 sm:$0xff] }
 0x702   :  { %3195 = vtanh.f32 %v746_v30 }
 0x708   :  { %v3196_v31 = vpop.eup %3195 }
 0x709   :  { %750 = vrot.lane.b32.xlu1 %v3196_v31, %s3691_s6 }
 0x77b   :  { %v751_v33 = vpop.permute.xlu1 %750 }
 0x77c   :  { %v753_v35 = vmul.f32 %v751_v33, %v748_v32 }
 0x77e   :  { %v755_v36 = vadd.f32 %v754_v34, %v753_v35 }
 0x780   :  { %757 = vrot.lane.b32.xlu2 %v755_v36, %s3691_s6 }
 0x7da   :  { %v758_v37 = vpop.permute.xlu2 %757 }
 0x7db   :  { %760 = vst.msk [vmem:[#allocation4 + $0x4] sm:$0x3] %vm625_vm10, %v758_v37  ;;  %3078 = vmatmul.msk.f32.vlgmr.msra.gmra.mxu1 %vm308_vm2, %v758_v37 }
 0x858   :  { %v781_v38 = vpop.f32.mrf.mxu1 }
 0x859   :  { %v782_v39 = vadd.f32 %v3953_v4, %v781_v38 }
 0x85b   :  { %805 = vrot.lane.b32.xlu0 %v782_v39, %s3690_s30  ;;  %v784_v41 = vadd.f32 %v782_v39, %v761_v40 }
 0x85d   :  { %v3079_v42 = vmul.f32 -1.442695, %v784_v41 }
 0x85f   :  { %3197 = vpow2.f32 %v3079_v42 }
 0x865   :  { %v3198_v43 = vpop.eup %3197 }
 0x866   :  { %v788_v44 = vadd.f32 1.0, %v3198_v43  ;;  %v4012_v43 = vld [vmem:[#allocation18 + $0x18] sm:$0xff] }
 0x867   :  { %1154 = vmatpush.msra.mxu3 %v4012_v43  ;;  %1221 = vmatpush.msra.mxu0 %v4012_v43 }
 0x868   :  { %3199 = vrcp.f32 %v788_v44  ;;  %v800_v50 = vand.u32 2147483648, %v788_v44  ;;  %vm794_vm6 = vweird.f32 %v788_v44  ;;  %v798_v51 = vand.u32 2147483647, %v788_v44  ;;  %1288 = vmatpush.msra.mxu1 %v4012_v43 }
 0x86a   :  { %v801_v53 = vor.u32 1.1754944e-38, %v800_v50  ;;  %vm799_vm8 = vcmp.eq.f32.partialorder %v798_v51, 8.507059e+37  ;;  %v4049_v50 = vld [vmem:[#allocation21] ss:$0 sm:$0xff] }
 0x86e   :  { %v3200_v45 = vpop.eup %3199 }
 0x86f   :  { %v790_v46 = vmul.f32 %v3200_v45, %v788_v44  ;;  %vm795_vm4 = vweird.f32 %v3200_v45  ;;  %v4014_v44 = vld [vmem:[#allocation18 + $0x10] sm:$0xff] }
 0x870   :  { %vm796_vm7 = vmor %vm794_vm6, %vm795_vm4  ;;  %1155 = vmatpush.msra.mxu3 %v4014_v44  ;;  %1222 = vmatpush.msra.mxu0 %v4014_v44 }
 0x871   :  { %v791_v47 = vsub.f32 1.0, %v790_v46  ;;  %v4024_v46 = vld [vmem:[#allocation18] sm:$0xff]  ;;  %1289 = vmatpush.msra.mxu1 %v4014_v44 }
 0x873   :  { %v792_v48 = vmul.f32 %v3200_v45, %v791_v47 }
 0x875   :  { %v793_v49 = vadd.f32 %v3200_v45, %v792_v48 }
 0x877   :  { %v797_v52 = vsel %vm796_vm7, %v3200_v45, %v793_v49  ;;  %v4018_v45 = vld [vmem:[#allocation18 + $0x8] sm:$0xff] }
 0x878   :  { %v802_v55 = vsel %vm799_vm8, %v801_v53, %v797_v52  ;;  %1156 = vmatpush.msra.mxu3 %v4018_v45  ;;  %1223 = vmatpush.msra.mxu0 %v4018_v45 }
 0x879   :  { %v815_v60 = vsub.f32 1.0, %v802_v55  ;;  %v821_v62 = vmul.f32 %v802_v55, %v755_v36  ;;  %1290 = vmatpush.msra.mxu1 %v4018_v45 }
 0x87a   :  { %1157 = vmatpush.msra.mxu3 %v4024_v46  ;;  %1224 = vmatpush.msra.mxu0 %v4024_v46 }
 0x87b   :  { %1291 = vmatpush.msra.mxu1 %v4024_v46 }
 0x8cd   :  { %v806_v54 = vpop.permute.xlu0 %805 }
 0x8ce   :  { %v808_v56 = vmul.f32 %v806_v54, %v802_v55 }
 0x8d0   :  { %810 = vrot.lane.b32.xlu1 %v808_v56, %s3690_s30 }
 0x942   :  { %v811_v57 = vpop.permute.xlu1 %810 }
 0x943   :  { %v813_v58 = vadd.f32 %v811_v57, %v761_v40 }
 0x945   :  { %3201 = vtanh.f32 %v813_v58 }
 0x94b   :  { %v3202_v59 = vpop.eup %3201 }
 0x94c   :  { %817 = vrot.lane.b32.xlu2 %v3202_v59, %s3691_s6 }
 0x9a6   :  { %v818_v61 = vpop.permute.xlu2 %817 }
 0x9a7   :  { %v820_v63 = vmul.f32 %v818_v61, %v815_v60 }
 0x9a9   :  { %v822_v0 = vadd.f32 %v821_v62, %v820_v63 }
 0x9ab   :  { %824 = vrot.lane.b32.xlu0 %v822_v0, %s3691_s6 }
 0xa1d   :  { %v825_v8 = vpop.permute.xlu0 %824 }
 0xa1e   :  { %827 = vst.msk [vmem:[#allocation4 + $0x6] sm:$0x3] %vm625_vm10, %v825_v8  ;;  %3080 = vmatmul.msk.f32.vlgmr.msra.gmra.mxu2 %vm308_vm2, %v825_v8 }
 0xa1f   :  { %1556 = vmatpush.msra.mxu2 %v4012_v43 }
 0xa21   :  { %1557 = vmatpush.msra.mxu2 %v4014_v44 }
 0xa23   :  { %1558 = vmatpush.msra.mxu2 %v4018_v45 }
 0xa25   :  { %1559 = vmatpush.msra.mxu2 %v4024_v46 }
 0xa26   :  { %3088 = vmatmul.msk.f32.vlgmr.msrb.gmra.mxu2 %vm308_vm2, %v3949_v1  ;;  %v828_v1 = vld [vmem:[#allocation3 + $0x8] sm:$0x3] }
 0xa2e   :  { %3089 = vmatmul.msk.f32.gmra.mxu2 %vm308_vm2, %v3956_v10 }
 0xaa1   :  { %v848_v9 = vpop.f32.mrf.mxu2 }
 0xaa2   :  { %v849_v11 = vadd.f32 %v3953_v4, %v848_v9 }
 0xaa4   :  { %872 = vrot.lane.b32.xlu1 %v849_v11, %s3690_s30  ;;  %v851_v10 = vadd.f32 %v849_v11, %v828_v1 }
 0xaa6   :  { %v3081_v20 = vmul.f32 -1.442695, %v851_v10 }
 0xaa8   :  { %3203 = vpow2.f32 %v3081_v20 }
 0xaa9   :  { %v1120_v13 = vpop.f32.mrf.mxu2 }
 0xaaa   :  { %v1129_v14 = vadd.f32 %v3171_v12, %v1120_v13 }
 0xaac   :  { %1131 = vst.msk [vmem:[#allocation3] sm:$0xff] %vm547_vm5, %v1129_v14 }
 0xaae   :  { %v3204_v21 = vpop.eup %3203 }
 0xaaf   :  { %v855_v22 = vadd.f32 1.0, %v3204_v21 }
 0xab1   :  { %v1123_v15 = vpop.f32.mrf.mxu2  ;;  %3205 = vrcp.f32 %v855_v22  ;;  %v867_v28 = vand.u32 2147483648, %v855_v22  ;;  %vm861_vm11 = vweird.f32 %v855_v22  ;;  %v865_v29 = vand.u32 2147483647, %v855_v22 }
 0xab2   :  { %v1130_v17 = vadd.f32 %v3171_v12, %v1123_v15 }
 0xab3   :  { %v868_v31 = vor.u32 1.1754944e-38, %v867_v28  ;;  %vm866_vm13 = vcmp.eq.f32.partialorder %v865_v29, 8.507059e+37 }
 0xab4   :  { %1132 = vst.msk [vmem:[#allocation3 + $0x8] sm:$0xff] %vm547_vm5, %v1130_v17 }
 0xab7   :  { %v3206_v23 = vpop.eup %3205 }
 0xab8   :  { %v857_v24 = vmul.f32 %v3206_v23, %v855_v22  ;;  %vm862_vm9 = vweird.f32 %v3206_v23 }
 0xab9   :  { %vm863_vm12 = vmor %vm861_vm11, %vm862_vm9 }
 0xaba   :  { %v858_v25 = vsub.f32 1.0, %v857_v24 }
 0xabb   :  { %v1138_v59 = vld [vmem:[#allocation3 + $0xe] sm:$0x3] }
 0xabc   :  { %v859_v26 = vmul.f32 %v3206_v23, %v858_v25 }
 0xabe   :  { %v860_v27 = vadd.f32 %v3206_v23, %v859_v26 }
 0xac0   :  { %v864_v30 = vsel %vm863_vm12, %v3206_v23, %v860_v27 }
 0xac1   :  { %v869_v33 = vsel %vm866_vm13, %v868_v31, %v864_v30 }
 0xac2   :  { %v882_v38 = vsub.f32 1.0, %v869_v33  ;;  %v888_v40 = vmul.f32 %v869_v33, %v822_v0 }
 0xb16   :  { %v873_v32 = vpop.permute.xlu1 %872 }
 0xb17   :  { %v875_v34 = vmul.f32 %v873_v32, %v869_v33 }
 0xb19   :  { %877 = vrot.lane.b32.xlu2 %v875_v34, %s3690_s30 }
 0xb73   :  { %v878_v35 = vpop.permute.xlu2 %877 }
 0xb74   :  { %v880_v36 = vadd.f32 %v878_v35, %v828_v1 }
 0xb76   :  { %3207 = vtanh.f32 %v880_v36 }
 0xb7c   :  { %v3208_v37 = vpop.eup %3207 }
 0xb7d   :  { %884 = vrot.lane.b32.xlu0 %v3208_v37, %s3691_s6 }
 0xbef   :  { %v885_v39 = vpop.permute.xlu0 %884 }
 0xbf0   :  { %v887_v41 = vmul.f32 %v885_v39, %v882_v38 }
 0xbf2   :  { %v4008_v42 = vadd.f32 %v888_v40, %v887_v41 }
 0xbf4   :  { %891 = vrot.lane.b32.xlu1 %v4008_v42, %s3691_s6 }
 0xc66   :  { %v892_v47 = vpop.permute.xlu1 %891 }
 0xc67   :  { %894 = vst.msk [vmem:[#allocation4 + $0x8] sm:$0x3] %vm625_vm10, %v892_v47  ;;  %3082 = vmatmul.msk.f32.vlgmr.msrb.gmra.mxu3 %vm308_vm2, %v892_v47 }
 0xc68   :  { %1355 = vmatpush.msrb.mxu3 %v4012_v43 }
 0xc6a   :  { %1356 = vmatpush.msrb.mxu3 %v4014_v44 }
 0xc6c   :  { %1357 = vmatpush.msrb.mxu3 %v4018_v45 }
 0xc6e   :  { %1358 = vmatpush.msrb.mxu3 %v4024_v46 }
 0xc6f   :  { %1158 = vmatmul.f32.vlgmr.msra.gmra.mxu3 %v3689_v3 }
 0xc70   :  { %1623 = vmatpush.msra.mxu3 %v4012_v43 }
 0xc72   :  { %1624 = vmatpush.msra.mxu3 %v4014_v44 }
 0xc74   :  { %1625 = vmatpush.msra.mxu3 %v4018_v45 }
 0xc76   :  { %1626 = vmatpush.msra.mxu3 %v4024_v46 }
 0xcea   :  { %v915_v48 = vpop.f32.mrf.mxu3 }
 0xceb   :  { %v916_v49 = vadd.f32 %v3953_v4, %v915_v48 }
 0xced   :  { %939 = vrot.lane.b32.xlu2 %v916_v49, %s3690_s30  ;;  %v918_v53 = vadd.f32 %v916_v49, %v4003_v19 }
 0xcef   :  { %v3083_v54 = vmul.f32 -1.442695, %v918_v53 }
 0xcf1   :  { %3209 = vpow2.f32 %v3083_v54 }
 0xcf2   :  { %v1159_v51 = vpop.f32.mrf.mxu3 }
 0xcf3   :  { %v1160_v52 = vadd.f32 %v4049_v50, %v1159_v51 }
 0xcf5   :  { %1183 = vrot.lane.b32.xlu0 %v1160_v52, %s3690_s30  ;;  %v1162_v60 = vadd.f32 %v1160_v52, %v1138_v59 }
 0xcf7   :  { %v3210_v55 = vpop.eup %3209  ;;  %v3090_v62 = vmul.f32 -1.442695, %v1162_v60 }
 0xcf8   :  { %v922_v56 = vadd.f32 1.0, %v3210_v55  ;;  %v1206_v55 = vld [vmem:[#allocation3 + $0xc] sm:$0x3] }
 0xcfa   :  { %3211 = vrcp.f32 %v922_v56  ;;  %v934_v2 = vand.u32 2147483648, %v922_v56  ;;  %vm928_vm15 = vweird.f32 %v922_v56  ;;  %v932_v5 = vand.u32 2147483647, %v922_v56 }
 0xcfb   :  { %3213 = vpow2.f32 %v3090_v62 }
 0xcfc   :  { %v935_v8 = vor.u32 1.1754944e-38, %v934_v2  ;;  %vm933_vm1 = vcmp.eq.f32.partialorder %v932_v5, 8.507059e+37 }
 0xd00   :  { %v3212_v57 = vpop.eup %3211 }
 0xd01   :  { %v924_v58 = vmul.f32 %v3212_v57, %v922_v56  ;;  %vm929_vm14 = vweird.f32 %v3212_v57  ;;  %v3214_v6 = vpop.eup %3213 }
 0xd02   :  { %vm930_vm0 = vmor %vm928_vm15, %vm929_vm14  ;;  %v1166_v9 = vadd.f32 1.0, %v3214_v6 }
 0xd03   :  { %v925_v61 = vsub.f32 1.0, %v924_v58 }
 0xd04   :  { %3215 = vrcp.f32 %v1166_v9  ;;  %v1178_v20 = vand.u32 2147483648, %v1166_v9  ;;  %vm1172_vm4 = vweird.f32 %v1166_v9  ;;  %v1176_v21 = vand.u32 2147483647, %v1166_v9 }
 0xd05   :  { %v926_v63 = vmul.f32 %v3212_v57, %v925_v61 }
 0xd06   :  { %v1179_v23 = vor.u32 1.1754944e-38, %v1178_v20  ;;  %vm1177_vm7 = vcmp.eq.f32.partialorder %v1176_v21, 8.507059e+37 }
 0xd07   :  { %v927_v0 = vadd.f32 %v3212_v57, %v926_v63 }
 0xd09   :  { %v931_v7 = vsel %vm930_vm0, %v3212_v57, %v927_v0 }
 0xd0a   :  { %v936_v12 = vsel %vm933_vm1, %v935_v8, %v931_v7  ;;  %v3216_v14 = vpop.eup %3215 }
 0xd0b   :  { %v1168_v15 = vmul.f32 %v3216_v14, %v1166_v9  ;;  %vm1173_vm3 = vweird.f32 %v3216_v14  ;;  %v949_v33 = vsub.f32 1.0, %v936_v12  ;;  %v955_v35 = vmul.f32 %v936_v12, %v4008_v42 }
 0xd0c   :  { %vm1174_vm6 = vmor %vm1172_vm4, %vm1173_vm3 }
 0xd0d   :  { %v1169_v17 = vsub.f32 1.0, %v1168_v15 }
 0xd0f   :  { %v1170_v1 = vmul.f32 %v3216_v14, %v1169_v17 }
 0xd11   :  { %v1171_v10 = vadd.f32 %v3216_v14, %v1170_v1 }
 0xd13   :  { %v1175_v22 = vsel %vm1174_vm6, %v3216_v14, %v1171_v10 }
 0xd14   :  { %v1180_v25 = vsel %vm1177_vm7, %v1179_v23, %v1175_v22 }
 0xd15   :  { %v1199_v39 = vmul.f32 0.0, %v1180_v25 }
 0xd47   :  { %v940_v11 = vpop.permute.xlu2 %939 }
 0xd48   :  { %v942_v13 = vmul.f32 %v940_v11, %v936_v12 }
 0xd4a   :  { %944 = vrot.lane.b32.xlu1 %v942_v13, %s3690_s30 }
 0xd67   :  { %v1184_v24 = vpop.permute.xlu0 %1183 }
 0xd68   :  { %v1186_v26 = vmul.f32 %v1184_v24, %v1180_v25 }
 0xd6a   :  { %1188 = vrot.lane.b32.xlu2 %v1186_v26, %s3690_s30 }
 0xdbc   :  { %v945_v27 = vpop.permute.xlu1 %944 }
 0xdbd   :  { %v947_v28 = vadd.f32 %v945_v27, %v4003_v19  ;;  %v1193_v19 = vsub.f32 1.0, %v1180_v25 }
 0xdbf   :  { %3217 = vtanh.f32 %v947_v28 }
 0xdc4   :  { %v1189_v29 = vpop.permute.xlu2 %1188 }
 0xdc5   :  { %v3218_v30 = vpop.eup %3217  ;;  %v1191_v31 = vadd.f32 %v1189_v29, %v1138_v59 }
 0xdc6   :  { %951 = vrot.lane.b32.xlu0 %v3218_v30, %s3691_s6 }
 0xdc7   :  { %3219 = vtanh.f32 %v1191_v31 }
 0xdcd   :  { %v3220_v32 = vpop.eup %3219 }
 0xdce   :  { %1195 = vrot.lane.b32.xlu1 %v3220_v32, %s3691_s6 }
 0xe38   :  { %v952_v34 = vpop.permute.xlu0 %951 }
 0xe39   :  { %v954_v36 = vmul.f32 %v952_v34, %v949_v33 }
 0xe3b   :  { %v4060_v37 = vadd.f32 %v955_v35, %v954_v36 }
 0xe3d   :  { %958 = vrot.lane.b32.xlu2 %v4060_v37, %s3691_s6 }
 0xe40   :  { %v1196_v38 = vpop.permute.xlu1 %1195 }
 0xe41   :  { %v1198_v40 = vmul.f32 %v1196_v38, %v1193_v19 }
 0xe43   :  { %v4064_v41 = vadd.f32 %v1199_v39, %v1198_v40 }
 0xe45   :  { %1202 = vrot.lane.b32.xlu0 %v4064_v41, %s3691_s6 }
 0xe97   :  { %v959_v47 = vpop.permute.xlu2 %958 }
 0xe98   :  { %961 = vst.msk [vmem:[#allocation4 + $0xa] sm:$0x3] %vm625_vm10, %v959_v47  ;;  %3084 = vmatmul.msk.f32.vlgmr.msrb.gmra.mxu0 %vm308_vm2, %v959_v47 }
 0xe99   :  { %1422 = vmatpush.msrb.mxu0 %v4012_v43 }
 0xe9b   :  { %1423 = vmatpush.msrb.mxu0 %v4014_v44 }
 0xe9d   :  { %1424 = vmatpush.msrb.mxu0 %v4018_v45 }
 0xe9f   :  { %1425 = vmatpush.msrb.mxu0 %v4024_v46 }
 0xeb7   :  { %v1203_v42 = vpop.permute.xlu0 %1202 }
 0xeb8   :  { %1205 = vst.msk [vmem:[#allocation5 + $0xe] sm:$0x3] %vm625_vm10, %v1203_v42  ;;  %3091 = vmatmul.msk.f32.vlgmr.msra.gmra.mxu0 %vm308_vm2, %v1203_v42 }
 0xf15   :  { %v982_v48 = vpop.f32.mrf.mxu0 }
 0xf16   :  { %v983_v49 = vadd.f32 %v3953_v4, %v982_v48 }
 0xf18   :  { %1006 = vrot.lane.b32.xlu1 %v983_v49, %s3690_s30  ;;  %v985_v53 = vadd.f32 %v983_v49, %v3999_v16  ;;  %v1273_v49 = vld [vmem:[#allocation3 + $0xa] sm:$0x3] }
 0xf1a   :  { %v3085_v54 = vmul.f32 -1.442695, %v985_v53 }
 0xf1c   :  { %3221 = vpow2.f32 %v3085_v54 }
 0xf22   :  { %v3222_v58 = vpop.eup %3221 }
 0xf23   :  { %v989_v59 = vadd.f32 1.0, %v3222_v58 }
 0xf25   :  { %v1001_v8 = vand.u32 2147483648, %v989_v59  ;;  %vm995_vm9 = vweird.f32 %v989_v59  ;;  %v999_v9 = vand.u32 2147483647, %v989_v59 }
 0xf27   :  { %v1002_v13 = vor.u32 1.1754944e-38, %v1001_v8  ;;  %vm1000_vm12 = vcmp.eq.f32.partialorder %v999_v9, 8.507059e+37 }
 0xf35   :  { %v1226_v51 = vpop.f32.mrf.mxu0 }
 0xf36   :  { %v1227_v52 = vadd.f32 %v4049_v50, %v1226_v51 }
 0xf38   :  { %1250 = vrot.lane.b32.xlu2 %v1227_v52, %s3690_s30  ;;  %v1229_v56 = vadd.f32 %v1227_v52, %v1206_v55 }
 0xf3a   :  { %v3092_v57 = vmul.f32 -1.442695, %v1229_v56 }
 0xf3c   :  { %3223 = vpow2.f32 %v3092_v57 }
 0xf3d   :  { %3225 = vrcp.f32 %v989_v59 }
 0xf42   :  { %v3224_v60 = vpop.eup %3223 }
 0xf43   :  { %v1233_v4 = vadd.f32 1.0, %v3224_v60  ;;  %v3226_v61 = vpop.eup %3225 }
 0xf44   :  { %v991_v62 = vmul.f32 %v3226_v61, %v989_v59  ;;  %vm996_vm8 = vweird.f32 %v3226_v61 }
 0xf45   :  { %3227 = vrcp.f32 %v1233_v4  ;;  %vm997_vm11 = vmor %vm995_vm9, %vm996_vm8  ;;  %v1245_v10 = vand.u32 2147483648, %v1233_v4  ;;  %vm1239_vm14 = vweird.f32 %v1233_v4  ;;  %v1243_v20 = vand.u32 2147483647, %v1233_v4 }
 0xf46   :  { %v992_v63 = vsub.f32 1.0, %v991_v62 }
 0xf47   :  { %v1246_v22 = vor.u32 1.1754944e-38, %v1245_v10  ;;  %vm1244_vm0 = vcmp.eq.f32.partialorder %v1243_v20, 8.507059e+37 }
 0xf48   :  { %v993_v2 = vmul.f32 %v3226_v61, %v992_v63 }
 0xf4a   :  { %v994_v6 = vadd.f32 %v3226_v61, %v993_v2 }
 0xf4b   :  { %v3228_v0 = vpop.eup %3227 }
 0xf4c   :  { %v1235_v5 = vmul.f32 %v3228_v0, %v1233_v4  ;;  %v998_v11 = vsel %vm997_vm11, %v3226_v61, %v994_v6  ;;  %vm1240_vm13 = vweird.f32 %v3228_v0 }
 0xf4d   :  { %v1003_v14 = vsel %vm1000_vm12, %v1002_v13, %v998_v11  ;;  %vm1241_vm15 = vmor %vm1239_vm14, %vm1240_vm13  ;;  %v1340_v13 = vld [vmem:[#allocation3 + $0x8] sm:$0x3] }
 0xf4e   :  { %v1236_v7 = vsub.f32 1.0, %v1235_v5  ;;  %v1016_v32 = vsub.f32 1.0, %v1003_v14  ;;  %v1022_v34 = vmul.f32 %v1003_v14, %v4060_v37 }
 0xf50   :  { %v1237_v12 = vmul.f32 %v3228_v0, %v1236_v7 }
 0xf52   :  { %v1238_v1 = vadd.f32 %v3228_v0, %v1237_v12 }
 0xf54   :  { %v1242_v21 = vsel %vm1241_vm15, %v3228_v0, %v1238_v1 }
 0xf55   :  { %v1247_v24 = vsel %vm1244_vm0, %v1246_v22, %v1242_v21 }
 0xf56   :  { %v1266_v38 = vmul.f32 %v1247_v24, %v4064_v41 }
 0xf8a   :  { %v1007_v15 = vpop.permute.xlu1 %1006 }
 0xf8b   :  { %v1009_v17 = vmul.f32 %v1007_v15, %v1003_v14 }
 0xf8d   :  { %1011 = vrot.lane.b32.xlu0 %v1009_v17, %s3690_s30 }
 0xf92   :  { %v1251_v23 = vpop.permute.xlu2 %1250 }
 0xf93   :  { %v1253_v25 = vmul.f32 %v1251_v23, %v1247_v24 }
 0xf95   :  { %1255 = vrot.lane.b32.xlu1 %v1253_v25, %s3690_s30 }
 0xfff   :  { %v1012_v26 = vpop.permute.xlu0 %1011 }
0x1000   :  { %v1014_v27 = vadd.f32 %v1012_v26, %v3999_v16  ;;  %v1260_v16 = vsub.f32 1.0, %v1247_v24 }
0x1002   :  { %3229 = vtanh.f32 %v1014_v27 }
0x1007   :  { %v1256_v28 = vpop.permute.xlu1 %1255 }
0x1008   :  { %v3230_v29 = vpop.eup %3229  ;;  %v1258_v30 = vadd.f32 %v1256_v28, %v1206_v55 }
0x1009   :  { %1018 = vrot.lane.b32.xlu2 %v3230_v29, %s3691_s6 }
0x100a   :  { %3231 = vtanh.f32 %v1258_v30 }
0x1010   :  { %v3232_v31 = vpop.eup %3231 }
0x1011   :  { %1262 = vrot.lane.b32.xlu0 %v3232_v31, %s3691_s6 }
0x1063   :  { %v1019_v33 = vpop.permute.xlu2 %1018 }
0x1064   :  { %v1021_v35 = vmul.f32 %v1019_v33, %v1016_v32 }
0x1066   :  { %v4087_v36 = vadd.f32 %v1022_v34, %v1021_v35 }
0x1068   :  { %1025 = vrot.lane.b32.xlu1 %v4087_v36, %s3691_s6 }
0x1083   :  { %v1263_v19 = vpop.permute.xlu0 %1262 }
0x1084   :  { %v1265_v39 = vmul.f32 %v1263_v19, %v1260_v16 }
0x1086   :  { %v1267_v40 = vadd.f32 %v1266_v38, %v1265_v39  ;;  %v1680_v39 = vld [vmem:[%s4516_s15 + $0x18] sm:$0xff] }
0x1087   :  { %1704 = vmatpush.msra.mxu0 %v1680_v39 }
0x1088   :  { %1269 = vrot.lane.b32.xlu2 %v1267_v40, %s3691_s6 }
0x10da   :  { %v1026_v47 = vpop.permute.xlu1 %1025 }
0x10db   :  { %1028 = vst.msk [vmem:[#allocation4 + $0xc] sm:$0x3] %vm625_vm10, %v1026_v47  ;;  %3086 = vmatmul.msk.f32.vlgmr.msrb.gmra.mxu1 %vm308_vm2, %v1026_v47  ;;  %v1678_v47 = vld [vmem:[%s4516_s15 + $0x8] sm:$0xff] }
0x10dc   :  { %1489 = vmatpush.msrb.mxu1 %v4012_v43 }
0x10de   :  { %1490 = vmatpush.msrb.mxu1 %v4014_v44 }
0x10e0   :  { %1491 = vmatpush.msrb.mxu1 %v4018_v45 }
0x10e2   :  { %v1270_v37 = vpop.permute.xlu2 %1269  ;;  %1492 = vmatpush.msrb.mxu1 %v4024_v46 }
0x10e3   :  { %1272 = vst.msk [vmem:[#allocation5 + $0xc] sm:$0x3] %vm625_vm10, %v1270_v37  ;;  %3093 = vmatmul.msk.f32.vlgmr.msra.gmra.mxu1 %vm308_vm2, %v1270_v37  ;;  %v1677_v37 = vld [vmem:[%s4516_s15] sm:$0xff] }
0x1158   :  { %v4101_v41 = vpop.f32.mrf.mxu1 }
0x1160   :  { %v1293_v42 = vpop.f32.mrf.mxu1 }
0x1161   :  { %v1294_v48 = vadd.f32 %v4049_v50, %v1293_v42 }
0x1163   :  { %1317 = vrot.lane.b32.xlu0 %v1294_v48, %s3690_s30  ;;  %v1296_v43 = vadd.f32 %v1294_v48, %v1273_v49  ;;  %v4129_v48 = vld [vmem:[#allocation4] sm:$0xff] }
0x1165   :  { %v3094_v51 = vmul.f32 -1.442695, %v1296_v43 }
0x1167   :  { %3233 = vpow2.f32 %v3094_v51  ;;  %v1407_v51 = vld [vmem:[#allocation3 + $0x6] sm:$0x3] }
0x116d   :  { %v3234_v44 = vpop.eup %3233 }
0x116e   :  { %v1300_v45 = vadd.f32 1.0, %v3234_v44 }
0x1170   :  { %3235 = vrcp.f32 %v1300_v45  ;;  %v1312_v56 = vand.u32 2147483648, %v1300_v45  ;;  %vm1306_vm3 = vweird.f32 %v1300_v45  ;;  %v1310_v57 = vand.u32 2147483647, %v1300_v45 }
0x1172   :  { %v1313_v59 = vor.u32 1.1754944e-38, %v1312_v56  ;;  %vm1311_vm6 = vcmp.eq.f32.partialorder %v1310_v57, 8.507059e+37 }
0x1176   :  { %v3236_v52 = vpop.eup %3235 }
0x1177   :  { %v1302_v46 = vmul.f32 %v3236_v52, %v1300_v45  ;;  %vm1307_vm1 = vweird.f32 %v3236_v52 }
0x1178   :  { %vm1308_vm4 = vmor %vm1306_vm3, %vm1307_vm1 }
0x1179   :  { %v1303_v53 = vsub.f32 1.0, %v1302_v46 }
0x117b   :  { %v1304_v54 = vmul.f32 %v3236_v52, %v1303_v53 }
0x117d   :  { %v1305_v55 = vadd.f32 %v3236_v52, %v1304_v54 }
0x117f   :  { %v1309_v58 = vsel %vm1308_vm4, %v3236_v52, %v1305_v55 }
0x1180   :  { %v1314_v4 = vsel %vm1311_vm6, %v1313_v59, %v1309_v58 }
0x1181   :  { %v1327_v2 = vsub.f32 1.0, %v1314_v4  ;;  %v1333_v6 = vmul.f32 %v1314_v4, %v1267_v40  ;;  %v1679_v40 = vld [vmem:[%s4516_s15 + $0x10] sm:$0xff] }
0x1182   :  { %1705 = vmatpush.msra.mxu0 %v1679_v40 }
0x1184   :  { %1706 = vmatpush.msra.mxu0 %v1678_v47 }
0x1186   :  { %1707 = vmatpush.msra.mxu0 %v1677_v37 }
0x11d5   :  { %v1318_v60 = vpop.permute.xlu0 %1317 }
0x11d6   :  { %v1320_v61 = vmul.f32 %v1318_v60, %v1314_v4 }
0x11d8   :  { %1322 = vrot.lane.b32.xlu1 %v1320_v61, %s3690_s30 }
0x124a   :  { %v1323_v62 = vpop.permute.xlu1 %1322 }
0x124b   :  { %v1325_v63 = vadd.f32 %v1323_v62, %v1273_v49 }
0x124d   :  { %3237 = vtanh.f32 %v1325_v63 }
0x1253   :  { %v3238_v0 = vpop.eup %3237 }
0x1254   :  { %1329 = vrot.lane.b32.xlu2 %v3238_v0, %s3691_s6 }
0x12ae   :  { %v1330_v5 = vpop.permute.xlu2 %1329 }
0x12af   :  { %v1332_v7 = vmul.f32 %v1330_v5, %v1327_v2 }
0x12b1   :  { %v1334_v8 = vadd.f32 %v1333_v6, %v1332_v7 }
0x12b3   :  { %1336 = vrot.lane.b32.xlu0 %v1334_v8, %s3691_s6 }
0x1325   :  { %v1337_v9 = vpop.permute.xlu0 %1336 }
0x1326   :  { %1339 = vst.msk [vmem:[#allocation5 + $0xa] sm:$0x3] %vm625_vm10, %v1337_v9  ;;  %3095 = vmatmul.msk.f32.vlgmr.msrb.gmra.mxu3 %vm308_vm2, %v1337_v9 }
0x13a9   :  { %v1360_v11 = vpop.f32.mrf.mxu3 }
0x13aa   :  { %v1361_v12 = vadd.f32 %v4049_v50, %v1360_v11 }
0x13ac   :  { %1384 = vrot.lane.b32.xlu1 %v1361_v12, %s3690_s30  ;;  %v1363_v14 = vadd.f32 %v1361_v12, %v1340_v13 }
0x13ae   :  { %v3096_v15 = vmul.f32 -1.442695, %v1363_v14 }
0x13b0   :  { %3239 = vpow2.f32 %v3096_v15  ;;  %v1474_v15 = vld [vmem:[#allocation3 + $0x4] sm:$0x3] }
0x13b6   :  { %v3240_v17 = vpop.eup %3239 }
0x13b7   :  { %v1367_v1 = vadd.f32 1.0, %v3240_v17 }
0x13b9   :  { %3241 = vrcp.f32 %v1367_v1  ;;  %v1379_v24 = vand.u32 2147483648, %v1367_v1  ;;  %vm1373_vm8 = vweird.f32 %v1367_v1  ;;  %v1377_v25 = vand.u32 2147483647, %v1367_v1 }
0x13bb   :  { %v1380_v27 = vor.u32 1.1754944e-38, %v1379_v24  ;;  %vm1378_vm11 = vcmp.eq.f32.partialorder %v1377_v25, 8.507059e+37 }
0x13bf   :  { %v3242_v10 = vpop.eup %3241 }
0x13c0   :  { %v1369_v20 = vmul.f32 %v3242_v10, %v1367_v1  ;;  %vm1374_vm7 = vweird.f32 %v3242_v10 }
0x13c1   :  { %vm1375_vm9 = vmor %vm1373_vm8, %vm1374_vm7 }
0x13c2   :  { %v1370_v21 = vsub.f32 1.0, %v1369_v20 }
0x13c4   :  { %v1371_v22 = vmul.f32 %v3242_v10, %v1370_v21 }
0x13c6   :  { %v1372_v23 = vadd.f32 %v3242_v10, %v1371_v22 }
0x13c8   :  { %v1376_v26 = vsel %vm1375_vm9, %v3242_v10, %v1372_v23 }
0x13c9   :  { %v1381_v29 = vsel %vm1378_vm11, %v1380_v27, %v1376_v26 }
0x13ca   :  { %v1394_v34 = vsub.f32 1.0, %v1381_v29  ;;  %v1400_v16 = vmul.f32 %v1381_v29, %v1334_v8 }
0x141e   :  { %v1385_v28 = vpop.permute.xlu1 %1384 }
0x141f   :  { %v1387_v30 = vmul.f32 %v1385_v28, %v1381_v29 }
0x1421   :  { %1389 = vrot.lane.b32.xlu2 %v1387_v30, %s3690_s30 }
0x147b   :  { %v1390_v31 = vpop.permute.xlu2 %1389 }
0x147c   :  { %v1392_v32 = vadd.f32 %v1390_v31, %v1340_v13 }
0x147e   :  { %3243 = vtanh.f32 %v1392_v32 }
0x1484   :  { %v3244_v33 = vpop.eup %3243 }
0x1485   :  { %1396 = vrot.lane.b32.xlu0 %v3244_v33, %s3691_s6 }
0x14f7   :  { %v1397_v35 = vpop.permute.xlu0 %1396 }
0x14f8   :  { %v1399_v19 = vmul.f32 %v1397_v35, %v1394_v34 }
0x14fa   :  { %v1401_v38 = vadd.f32 %v1400_v16, %v1399_v19 }
0x14fc   :  { %1403 = vrot.lane.b32.xlu1 %v1401_v38, %s3691_s6 }
0x156e   :  { %v1404_v42 = vpop.permute.xlu1 %1403 }
0x156f   :  { %1406 = vst.msk [vmem:[#allocation5 + $0x8] sm:$0x3] %vm625_vm10, %v1404_v42  ;;  %3097 = vmatmul.msk.f32.vlgmr.msrb.gmra.mxu0 %vm308_vm2, %v1404_v42 }
0x1577   :  { %3105 = vmatmul.msk.f32.vlgmr.msra.gmra.mxu0 %vm308_vm2, %v4129_v48 }
0x15ec   :  { %v1427_v49 = vpop.f32.mrf.mxu0 }
0x15ed   :  { %v1428_v43 = vadd.f32 %v4049_v50, %v1427_v49  ;;  %v1541_v49 = vld [vmem:[#allocation3 + $0x2] sm:$0x3] }
0x15ef   :  { %1451 = vrot.lane.b32.xlu2 %v1428_v43, %s3690_s30  ;;  %v1430_v44 = vadd.f32 %v1428_v43, %v1407_v51 }
0x15f1   :  { %v3098_v45 = vmul.f32 -1.442695, %v1430_v44 }
0x15f3   :  { %3245 = vpow2.f32 %v3098_v45 }
0x15f9   :  { %v3246_v52 = vpop.eup %3245 }
0x15fa   :  { %v1434_v46 = vadd.f32 1.0, %v3246_v52 }
0x15fc   :  { %3247 = vrcp.f32 %v1434_v46  ;;  %v1446_v58 = vand.u32 2147483648, %v1434_v46  ;;  %vm1440_vm13 = vweird.f32 %v1434_v46  ;;  %v1444_v59 = vand.u32 2147483647, %v1434_v46 }
0x15fe   :  { %v1447_v4 = vor.u32 1.1754944e-38, %v1446_v58  ;;  %vm1445_vm15 = vcmp.eq.f32.partialorder %v1444_v59, 8.507059e+37 }
0x1602   :  { %v3248_v53 = vpop.eup %3247 }
0x1603   :  { %v1436_v54 = vmul.f32 %v3248_v53, %v1434_v46  ;;  %vm1441_vm12 = vweird.f32 %v3248_v53 }
0x1604   :  { %vm1442_vm14 = vmor %vm1440_vm13, %vm1441_vm12 }
0x1605   :  { %v1437_v55 = vsub.f32 1.0, %v1436_v54 }
0x1607   :  { %v1438_v56 = vmul.f32 %v3248_v53, %v1437_v55 }
0x1609   :  { %v1439_v57 = vadd.f32 %v3248_v53, %v1438_v56 }
0x160b   :  { %v1443_v60 = vsel %vm1442_vm14, %v3248_v53, %v1439_v57 }
0x160c   :  { %v1448_v62 = vsel %vm1445_vm15, %v1447_v4, %v1443_v60 }
0x160d   :  { %v1461_v6 = vsub.f32 1.0, %v1448_v62  ;;  %v1467_v8 = vmul.f32 %v1448_v62, %v1401_v38 }
0x1649   :  { %v1452_v61 = vpop.permute.xlu2 %1451 }
0x164a   :  { %v1454_v63 = vmul.f32 %v1452_v61, %v1448_v62 }
0x164c   :  { %1456 = vrot.lane.b32.xlu0 %v1454_v63, %s3690_s30 }
0x16be   :  { %v1457_v0 = vpop.permute.xlu0 %1456 }
0x16bf   :  { %v1459_v2 = vadd.f32 %v1457_v0, %v1407_v51 }
0x16c1   :  { %3249 = vtanh.f32 %v1459_v2 }
0x16c7   :  { %v3250_v5 = vpop.eup %3249 }
0x16c8   :  { %1463 = vrot.lane.b32.xlu1 %v3250_v5, %s3691_s6 }
0x173a   :  { %v1464_v7 = vpop.permute.xlu1 %1463 }
0x173b   :  { %v1466_v9 = vmul.f32 %v1464_v7, %v1461_v6 }
0x173d   :  { %v1468_v11 = vadd.f32 %v1467_v8, %v1466_v9 }
0x173f   :  { %1470 = vrot.lane.b32.xlu2 %v1468_v11, %s3691_s6 }
0x1799   :  { %v1471_v12 = vpop.permute.xlu2 %1470 }
0x179a   :  { %1473 = vst.msk [vmem:[#allocation5 + $0x6] sm:$0x3] %vm625_vm10, %v1471_v12  ;;  %3099 = vmatmul.msk.f32.vlgmr.msrb.gmra.mxu1 %vm308_vm2, %v1471_v12 }
0x1817   :  { %v1494_v13 = vpop.f32.mrf.mxu1 }
0x1818   :  { %v1495_v14 = vadd.f32 %v4049_v50, %v1494_v13  ;;  %v1608_v13 = vld [vmem:[#allocation3] sm:$0x3] }
0x181a   :  { %1518 = vrot.lane.b32.xlu0 %v1495_v14, %s3690_s30  ;;  %v1497_v17 = vadd.f32 %v1495_v14, %v1474_v15 }
0x181c   :  { %v3100_v1 = vmul.f32 -1.442695, %v1497_v17 }
0x181e   :  { %3251 = vpow2.f32 %v3100_v1 }
0x1824   :  { %v3252_v10 = vpop.eup %3251 }
0x1825   :  { %v1501_v20 = vadd.f32 1.0, %v3252_v10 }
0x1827   :  { %3253 = vrcp.f32 %v1501_v20  ;;  %v1513_v26 = vand.u32 2147483648, %v1501_v20  ;;  %vm1507_vm1 = vweird.f32 %v1501_v20  ;;  %v1511_v27 = vand.u32 2147483647, %v1501_v20 }
0x1829   :  { %v1514_v29 = vor.u32 1.1754944e-38, %v1513_v26  ;;  %vm1512_vm4 = vcmp.eq.f32.partialorder %v1511_v27, 8.507059e+37 }
0x182d   :  { %v3254_v21 = vpop.eup %3253 }
0x182e   :  { %v1503_v22 = vmul.f32 %v3254_v21, %v1501_v20  ;;  %vm1508_vm0 = vweird.f32 %v3254_v21 }
0x182f   :  { %vm1509_vm3 = vmor %vm1507_vm1, %vm1508_vm0 }
0x1830   :  { %v1504_v23 = vsub.f32 1.0, %v1503_v22 }
0x1832   :  { %v1505_v24 = vmul.f32 %v3254_v21, %v1504_v23 }
0x1834   :  { %v1506_v25 = vadd.f32 %v3254_v21, %v1505_v24 }
0x1836   :  { %v1510_v28 = vsel %vm1509_vm3, %v3254_v21, %v1506_v25 }
0x1837   :  { %v1515_v31 = vsel %vm1512_vm4, %v1514_v29, %v1510_v28 }
0x1838   :  { %v1528_v16 = vsub.f32 1.0, %v1515_v31  ;;  %v1534_v38 = vmul.f32 %v1515_v31, %v1468_v11 }
0x188c   :  { %v1519_v30 = vpop.permute.xlu0 %1518 }
0x188d   :  { %v1521_v32 = vmul.f32 %v1519_v30, %v1515_v31 }
0x188f   :  { %1523 = vrot.lane.b32.xlu1 %v1521_v32, %s3690_s30 }
0x1901   :  { %v1524_v33 = vpop.permute.xlu1 %1523 }
0x1902   :  { %v1526_v34 = vadd.f32 %v1524_v33, %v1474_v15  ;;  %v4164_v33 = vld [vmem:[%s4517_s16 + $0x18] sm:$0xff] }
0x1903   :  { %1774 = vmatpush.msrb.mxu2 %v4164_v33  ;;  %1841 = vmatpush.msrb.mxu3 %v4164_v33 }
0x1904   :  { %3255 = vtanh.f32 %v1526_v34  ;;  %v4169_v34 = vld [vmem:[%s4517_s16 + $0x10] sm:$0xff]  ;;  %2042 = vmatpush.msrb.mxu0 %v4164_v33 }
0x1905   :  { %1775 = vmatpush.msrb.mxu2 %v4169_v34  ;;  %1842 = vmatpush.msrb.mxu3 %v4169_v34 }
0x1906   :  { %2043 = vmatpush.msrb.mxu0 %v4169_v34 }
0x190a   :  { %v3256_v35 = vpop.eup %3255 }
0x190b   :  { %1530 = vrot.lane.b32.xlu2 %v3256_v35, %s3691_s6  ;;  %v4176_v35 = vld [vmem:[%s4517_s16 + $0x8] sm:$0xff] }
0x190c   :  { %1776 = vmatpush.msrb.mxu2 %v4176_v35  ;;  %1843 = vmatpush.msrb.mxu3 %v4176_v35 }
0x190d   :  { %2044 = vmatpush.msrb.mxu0 %v4176_v35 }
0x1965   :  { %v1531_v19 = vpop.permute.xlu2 %1530 }
0x1966   :  { %v1533_v39 = vmul.f32 %v1531_v19, %v1528_v16  ;;  %v4184_v16 = vld [vmem:[%s4517_s16] sm:$0xff] }
0x1967   :  { %1777 = vmatpush.msrb.mxu2 %v4184_v16  ;;  %1844 = vmatpush.msrb.mxu3 %v4184_v16 }
0x1968   :  { %v1535_v40 = vadd.f32 %v1534_v38, %v1533_v39  ;;  %2045 = vmatpush.msrb.mxu0 %v4184_v16 }
0x196a   :  { %1537 = vrot.lane.b32.xlu0 %v1535_v40, %s3691_s6 }
0x19dc   :  { %v1538_v47 = vpop.permute.xlu0 %1537 }
0x19dd   :  { %1540 = vst.msk [vmem:[#allocation5 + $0x4] sm:$0x3] %vm625_vm10, %v1538_v47  ;;  %3101 = vmatmul.msk.f32.vlgmr.msra.gmra.mxu2 %vm308_vm2, %v1538_v47 }
0x19de   :  { %1908 = vmatpush.msra.mxu2 %v4164_v33 }
0x19e0   :  { %1909 = vmatpush.msra.mxu2 %v4169_v34 }
0x19e2   :  { %1910 = vmatpush.msra.mxu2 %v4176_v35 }
0x19e4   :  { %1911 = vmatpush.msra.mxu2 %v4184_v16 }
0x19e5   :  { %1778 = vmatmul.f32.vlgmr.msrb.gmra.mxu2 %v3689_v3 }
0x19e6   :  { %2176 = vmatpush.msrb.mxu2 %v4164_v33 }
0x19e8   :  { %2177 = vmatpush.msrb.mxu2 %v4169_v34 }
0x19ea   :  { %2178 = vmatpush.msrb.mxu2 %v4176_v35 }
0x19ec   :  { %2179 = vmatpush.msrb.mxu2 %v4184_v16 }
0x1a60   :  { %v1561_v37 = vpop.f32.mrf.mxu2 }
0x1a61   :  { %v1562_v42 = vadd.f32 %v4049_v50, %v1561_v37  ;;  %v1684_v37 = vld [vmem:[%s4516_s15 + $0x38] sm:$0xff] }
0x1a62   :  { %1738 = vmatpush.msra.mxu1 %v1684_v37 }
0x1a63   :  { %1585 = vrot.lane.b32.xlu1 %v1562_v42, %s3690_s30  ;;  %v1564_v43 = vadd.f32 %v1562_v42, %v1541_v49  ;;  %v1683_v42 = vld [vmem:[%s4516_s15 + $0x30] sm:$0xff] }
0x1a64   :  { %1739 = vmatpush.msra.mxu1 %v1683_v42 }
0x1a65   :  { %v3102_v51 = vmul.f32 -1.442695, %v1564_v43  ;;  %v1681_v43 = vld [vmem:[%s4516_s15 + $0x20] sm:$0xff] }
0x1a67   :  { %3257 = vpow2.f32 %v3102_v51 }
0x1a6d   :  { %v3258_v44 = vpop.eup %3257 }
0x1a6e   :  { %v1568_v45 = vadd.f32 1.0, %v3258_v44 }
0x1a70   :  { %3259 = vrcp.f32 %v1568_v45  ;;  %v1580_v56 = vand.u32 2147483648, %v1568_v45  ;;  %vm1574_vm7 = vweird.f32 %v1568_v45  ;;  %v1578_v57 = vand.u32 2147483647, %v1568_v45 }
0x1a72   :  { %v1581_v59 = vor.u32 1.1754944e-38, %v1580_v56  ;;  %vm1579_vm9 = vcmp.eq.f32.partialorder %v1578_v57, 8.507059e+37 }
0x1a76   :  { %v3260_v52 = vpop.eup %3259 }
0x1a77   :  { %v1570_v46 = vmul.f32 %v3260_v52, %v1568_v45  ;;  %vm1575_vm6 = vweird.f32 %v3260_v52  ;;  %v4232_v45 = vld [vmem:[%s4519_s18] ss:$0 sm:$0xff] }
0x1a78   :  { %vm1576_vm8 = vmor %vm1574_vm7, %vm1575_vm6 }
0x1a79   :  { %v1571_v53 = vsub.f32 1.0, %v1570_v46  ;;  %v1779_v46 = vpop.f32.mrf.mxu2 }
0x1a7b   :  { %v1572_v54 = vmul.f32 %v3260_v52, %v1571_v53  ;;  %v1780_v53 = vadd.f32 %v4232_v45, %v1779_v46 }
0x1a7d   :  { %v1573_v55 = vadd.f32 %v3260_v52, %v1572_v54  ;;  %v4240_v54 = vld [vmem:[#allocation22] ss:$0 sm:$0xff] }
0x1a7f   :  { %v1577_v58 = vsel %vm1576_vm8, %v3260_v52, %v1573_v55  ;;  %v4234_v52 = vld [vmem:[#allocation5 + $0x8] sm:$0xff]  ;;  %v1709_v55 = vpop.f32.mrf.mxu0 }
0x1a80   :  { %v1582_v4 = vsel %vm1579_vm9, %v1581_v59, %v1577_v58  ;;  %v1718_v56 = vadd.f32 %v4240_v54, %v1709_v55 }
0x1a81   :  { %v1595_v2 = vsub.f32 1.0, %v1582_v4  ;;  %v1601_v6 = vmul.f32 %v1582_v4, %v1535_v40 }
0x1ad5   :  { %v1586_v60 = vpop.permute.xlu1 %1585 }
0x1ad6   :  { %v1588_v61 = vmul.f32 %v1586_v60, %v1582_v4 }
0x1ad8   :  { %1590 = vrot.lane.b32.xlu2 %v1588_v61, %s3690_s30 }
0x1b32   :  { %v1591_v62 = vpop.permute.xlu2 %1590 }
0x1b33   :  { %v1593_v63 = vadd.f32 %v1591_v62, %v1541_v49  ;;  %v1682_v49 = vld [vmem:[%s4516_s15 + $0x28] sm:$0xff] }
0x1b34   :  { %1740 = vmatpush.msra.mxu1 %v1682_v49 }
0x1b35   :  { %3261 = vtanh.f32 %v1593_v63 }
0x1b36   :  { %1741 = vmatpush.msra.mxu1 %v1681_v43 }
0x1b38   :  { %2109 = vmatpush.msrb.mxu1 %v4164_v33 }
0x1b3a   :  { %2110 = vmatpush.msrb.mxu1 %v4169_v34 }
0x1b3b   :  { %v3262_v0 = vpop.eup %3261 }
0x1b3c   :  { %1597 = vrot.lane.b32.xlu0 %v3262_v0, %s3691_s6  ;;  %2111 = vmatpush.msrb.mxu1 %v4176_v35 }
0x1b3e   :  { %2112 = vmatpush.msrb.mxu1 %v4184_v16 }
0x1bae   :  { %v1598_v5 = vpop.permute.xlu0 %1597 }
0x1baf   :  { %v1600_v7 = vmul.f32 %v1598_v5, %v1595_v2 }
0x1bb1   :  { %v4151_v8 = vadd.f32 %v1601_v6, %v1600_v7 }
0x1bb3   :  { %1604 = vrot.lane.b32.xlu1 %v4151_v8, %s3691_s6 }
0x1c25   :  { %v1605_v9 = vpop.permute.xlu1 %1604 }
0x1c26   :  { %1607 = vst.msk [vmem:[#allocation5 + $0x2] sm:$0x3] %vm625_vm10, %v1605_v9  ;;  %3103 = vmatmul.msk.f32.vlgmr.msra.gmra.mxu3 %vm308_vm2, %v1605_v9 }
0x1c27   :  { %1975 = vmatpush.msra.mxu3 %v4164_v33 }
0x1c29   :  { %1976 = vmatpush.msra.mxu3 %v4169_v34 }
0x1c2b   :  { %1977 = vmatpush.msra.mxu3 %v4176_v35 }
0x1c2d   :  { %1978 = vmatpush.msra.mxu3 %v4184_v16 }
0x1ca9   :  { %v1628_v11 = vpop.f32.mrf.mxu3 }
0x1caa   :  { %v1629_v12 = vadd.f32 %v4049_v50, %v1628_v11 }
0x1cac   :  { %1652 = vrot.lane.b32.xlu2 %v1629_v12, %s3690_s30  ;;  %v1631_v14 = vadd.f32 %v1629_v12, %v1608_v13 }
0x1cae   :  { %v3104_v15 = vmul.f32 -1.442695, %v1631_v14 }
0x1cb0   :  { %3263 = vpow2.f32 %v3104_v15 }
0x1cb6   :  { %v3264_v17 = vpop.eup %3263 }
0x1cb7   :  { %v1635_v1 = vadd.f32 1.0, %v3264_v17 }
0x1cb9   :  { %3265 = vrcp.f32 %v1635_v1  ;;  %v1647_v24 = vand.u32 2147483648, %v1635_v1  ;;  %vm1641_vm12 = vweird.f32 %v1635_v1  ;;  %v1645_v25 = vand.u32 2147483647, %v1635_v1 }
0x1cbb   :  { %v1648_v26 = vor.u32 1.1754944e-38, %v1647_v24  ;;  %vm1646_vm14 = vcmp.eq.f32.partialorder %v1645_v25, 8.507059e+37 }
0x1cbf   :  { %v3266_v10 = vpop.eup %3265 }
0x1cc0   :  { %v1637_v20 = vmul.f32 %v3266_v10, %v1635_v1  ;;  %vm1642_vm11 = vweird.f32 %v3266_v10 }
0x1cc1   :  { %vm1643_vm13 = vmor %vm1641_vm12, %vm1642_vm11 }
0x1cc2   :  { %v1638_v21 = vsub.f32 1.0, %v1637_v20 }
0x1cc4   :  { %v1639_v22 = vmul.f32 %v3266_v10, %v1638_v21 }
0x1cc6   :  { %v1640_v23 = vadd.f32 %v3266_v10, %v1639_v22 }
0x1cc8   :  { %v1644_v50 = vsel %vm1643_vm13, %v3266_v10, %v1640_v23 }
0x1cc9   :  { %v1649_v28 = vsel %vm1646_vm14, %v1648_v26, %v1644_v50 }
0x1cca   :  { %v1662_v19 = vsub.f32 1.0, %v1649_v28  ;;  %v1668_v39 = vmul.f32 %v1649_v28, %v4151_v8 }
0x1d06   :  { %v1653_v27 = vpop.permute.xlu2 %1652 }
0x1d07   :  { %v1655_v29 = vmul.f32 %v1653_v27, %v1649_v28 }
0x1d09   :  { %1657 = vrot.lane.b32.xlu0 %v1655_v29, %s3690_s30 }
0x1d11   :  { %1803 = vrot.lane.b32.xlu0 %v1780_v53, %s3690_s30 }
0x1d7b   :  { %v1658_v30 = vpop.permute.xlu0 %1657 }
0x1d7c   :  { %v1660_v31 = vadd.f32 %v1658_v30, %v1608_v13 }
0x1d7e   :  { %3267 = vtanh.f32 %v1660_v31 }
0x1d83   :  { %v1804_v9 = vpop.permute.xlu0 %1803 }
0x1d84   :  { %v3268_v32 = vpop.eup %3267 }
0x1d85   :  { %1664 = vrot.lane.b32.xlu1 %v3268_v32, %s3691_s6 }
0x1df7   :  { %v1665_v38 = vpop.permute.xlu1 %1664 }
0x1df8   :  { %v1667_v40 = vmul.f32 %v1665_v38, %v1662_v19 }
0x1dfa   :  { %v1669_v47 = vadd.f32 %v1668_v39, %v1667_v40 }
0x1dfc   :  { %1671 = vrot.lane.b32.xlu2 %v1669_v47, %s3691_s6 }
0x1e56   :  { %v1672_v51 = vpop.permute.xlu2 %1671 }
0x1e57   :  { %1674 = vst.msk [vmem:[#allocation5] sm:$0x3] %vm625_vm10, %v1672_v51 }
0x1e5e   :  { %v4225_v44 = vld [vmem:[#allocation5] sm:$0xff] }
0x1e5f   :  { %3107 = vmatmul.msk.f32.vlgmr.msra.gmra.mxu1 %vm308_vm2, %v4225_v44 }
0x1e67   :  { %3108 = vmatmul.msk.f32.gmra.mxu1 %vm308_vm2, %v4234_v52 }
0x1edc   :  { %v1743_v57 = vpop.f32.mrf.mxu1 }
0x1edd   :  { %v1749_v58 = vadd.f32 %v1743_v57, %v1718_v56 }
0x1edf   :  { %1751 = vst.msk [vmem:[#allocation3] sm:$0xff] %vm547_vm5, %v1749_v58 }
0x1ee6   :  { %v1758_v59 = vld [vmem:[#allocation3] sm:$0x3]  ;;  %v1826_v26 = vld [vmem:[#allocation3 + $0x2] sm:$0x3] }
0x1ee7   :  { %v1782_v60 = vadd.f32 %v1780_v53, %v1758_v59 }
0x1ee9   :  { %v3109_v4 = vmul.f32 -1.442695, %v1782_v60  ;;  %v1893_v60 = vld [vmem:[#allocation3 + $0x4] sm:$0x3] }
0x1eeb   :  { %3269 = vpow2.f32 %v3109_v4 }
0x1ef1   :  { %v3270_v61 = vpop.eup %3269 }
0x1ef2   :  { %v1786_v62 = vadd.f32 1.0, %v3270_v61 }
0x1ef4   :  { %3271 = vrcp.f32 %v1786_v62  ;;  %v1798_v5 = vand.u32 2147483648, %v1786_v62  ;;  %v1796_v7 = vand.u32 2147483647, %v1786_v62  ;;  %vm1792_vm0 = vweird.f32 %v1786_v62 }
0x1ef6   :  { %v1799_v11 = vor.u32 1.1754944e-38, %v1798_v5  ;;  %vm1797_vm3 = vcmp.eq.f32.partialorder %v1796_v7, 8.507059e+37 }
0x1efa   :  { %v3272_v63 = vpop.eup %3271 }
0x1efb   :  { %v1788_v0 = vmul.f32 %v3272_v63, %v1786_v62  ;;  %vm1793_vm15 = vweird.f32 %v3272_v63 }
0x1efc   :  { %vm1794_vm1 = vmor %vm1792_vm0, %vm1793_vm15 }
0x1efd   :  { %v1789_v2 = vsub.f32 1.0, %v1788_v0 }
0x1eff   :  { %v1790_v6 = vmul.f32 %v3272_v63, %v1789_v2 }
0x1f01   :  { %v1791_v8 = vadd.f32 %v3272_v63, %v1790_v6 }
0x1f03   :  { %v1795_v12 = vsel %vm1794_vm1, %v3272_v63, %v1791_v8 }
0x1f04   :  { %v1800_v13 = vsel %vm1797_vm3, %v1799_v11, %v1795_v12 }
0x1f05   :  { %v1806_v14 = vmul.f32 %v1804_v9, %v1800_v13  ;;  %v1813_v10 = vsub.f32 1.0, %v1800_v13  ;;  %v1819_v21 = vmul.f32 0.0, %v1800_v13 }
0x1f07   :  { %1808 = vrot.lane.b32.xlu1 %v1806_v14, %s3690_s30 }
0x1f79   :  { %v1809_v15 = vpop.permute.xlu1 %1808 }
0x1f7a   :  { %v1811_v17 = vadd.f32 %v1809_v15, %v1758_v59 }
0x1f7c   :  { %3273 = vtanh.f32 %v1811_v17  ;;  %v3371_v17 = vld [vmem:[#allocation15] ss:$0 sm:$0xff] }
0x1f82   :  { %v3274_v1 = vpop.eup %3273 }
0x1f83   :  { %1815 = vrot.lane.b32.xlu2 %v3274_v1, %s3691_s6  ;;  %v1050_v1 = vadd.f32 %v3371_v17, %v4101_v41 }
0x1fdd   :  { %v1816_v20 = vpop.permute.xlu2 %1815 }
0x1fde   :  { %v1818_v22 = vmul.f32 %v1816_v20, %v1813_v10 }
0x1fe0   :  { %v1820_v23 = vadd.f32 %v1819_v21, %v1818_v22  ;;  %v1052_v22 = vadd.f32 %v1050_v1, %v4001_v18 }
0x1fe2   :  { %1822 = vrot.lane.b32.xlu0 %v1820_v23, %s3691_s6 }
0x2054   :  { %v1823_v24 = vpop.permute.xlu0 %1822 }
0x2055   :  { %1825 = vst.msk [vmem:[#allocation6] sm:$0x3] %vm625_vm10, %v1823_v24  ;;  %3110 = vmatmul.msk.f32.vlgmr.msrb.gmra.mxu3 %vm308_vm2, %v1823_v24 }
0x2056   :  { %2243 = vmatpush.msrb.mxu3 %v4164_v33 }
0x2058   :  { %2244 = vmatpush.msrb.mxu3 %v4169_v34 }
0x205a   :  { %2245 = vmatpush.msrb.mxu3 %v4176_v35 }
0x205c   :  { %2246 = vmatpush.msrb.mxu3 %v4184_v16 }
0x20d8   :  { %v1846_v25 = vpop.f32.mrf.mxu3 }
0x20d9   :  { %v1847_v50 = vadd.f32 %v4232_v45, %v1846_v25 }
0x20db   :  { %1870 = vrot.lane.b32.xlu1 %v1847_v50, %s3690_s30  ;;  %v1849_v27 = vadd.f32 %v1847_v50, %v1826_v26 }
0x20dd   :  { %v3111_v28 = vmul.f32 -1.442695, %v1849_v27 }
0x20df   :  { %3275 = vpow2.f32 %v3111_v28 }
0x20e5   :  { %v3276_v29 = vpop.eup %3275 }
0x20e6   :  { %v1853_v30 = vadd.f32 1.0, %v3276_v29 }
0x20e8   :  { %3277 = vrcp.f32 %v1853_v30  ;;  %v1865_v35 = vand.u32 2147483648, %v1853_v30  ;;  %vm1859_vm6 = vweird.f32 %v1853_v30  ;;  %v1863_v16 = vand.u32 2147483647, %v1853_v30 }
0x20ea   :  { %v1866_v39 = vor.u32 1.1754944e-38, %v1865_v35  ;;  %vm1864_vm8 = vcmp.eq.f32.partialorder %v1863_v16, 8.507059e+37 }
0x20ee   :  { %v3278_v31 = vpop.eup %3277 }
0x20ef   :  { %v1855_v32 = vmul.f32 %v3278_v31, %v1853_v30  ;;  %vm1860_vm4 = vweird.f32 %v3278_v31 }
0x20f0   :  { %vm1861_vm7 = vmor %vm1859_vm6, %vm1860_vm4 }
0x20f1   :  { %v1856_v33 = vsub.f32 1.0, %v1855_v32 }
0x20f3   :  { %v1857_v34 = vmul.f32 %v3278_v31, %v1856_v33 }
0x20f5   :  { %v1858_v19 = vadd.f32 %v3278_v31, %v1857_v34 }
0x20f7   :  { %v1862_v38 = vsel %vm1861_vm7, %v3278_v31, %v1858_v19 }
0x20f8   :  { %v1867_v47 = vsel %vm1864_vm8, %v1866_v39, %v1862_v38 }
0x20f9   :  { %v1880_v51 = vsub.f32 1.0, %v1867_v47  ;;  %v1886_v53 = vmul.f32 %v1867_v47, %v1820_v23  ;;  %v3087_v23 = vmul.f32 -1.442695, %v1052_v22 }
0x214d   :  { %v1871_v40 = vpop.permute.xlu1 %1870 }
0x214e   :  { %v1873_v37 = vmul.f32 %v1871_v40, %v1867_v47 }
0x2150   :  { %1875 = vrot.lane.b32.xlu2 %v1873_v37, %s3690_s30 }
0x21aa   :  { %v1876_v42 = vpop.permute.xlu2 %1875 }
0x21ab   :  { %v1878_v49 = vadd.f32 %v1876_v42, %v1826_v26 }
0x21ad   :  { %3279 = vtanh.f32 %v1878_v49 }
0x21b3   :  { %v3280_v43 = vpop.eup %3279 }
0x21b4   :  { %1882 = vrot.lane.b32.xlu0 %v3280_v43, %s3691_s6 }
0x2226   :  { %v1883_v46 = vpop.permute.xlu0 %1882 }
0x2227   :  { %v1885_v55 = vmul.f32 %v1883_v46, %v1880_v51  ;;  %v1960_v46 = vld [vmem:[#allocation3 + $0x6] sm:$0x3] }
0x2229   :  { %v1887_v56 = vadd.f32 %v1886_v53, %v1885_v55 }
0x222b   :  { %1889 = vrot.lane.b32.xlu1 %v1887_v56, %s3691_s6 }
0x229d   :  { %v1890_v57 = vpop.permute.xlu1 %1889 }
0x229e   :  { %1892 = vst.msk [vmem:[#allocation6 + $0x2] sm:$0x3] %vm625_vm10, %v1890_v57  ;;  %3112 = vmatmul.msk.f32.vlgmr.msra.gmra.mxu2 %vm308_vm2, %v1890_v57 }
0x2321   :  { %v1913_v58 = vpop.f32.mrf.mxu2 }
0x2322   :  { %v1914_v59 = vadd.f32 %v4232_v45, %v1913_v58 }
0x2324   :  { %1937 = vrot.lane.b32.xlu2 %v1914_v59, %s3690_s30  ;;  %v1916_v4 = vadd.f32 %v1914_v59, %v1893_v60 }
0x2326   :  { %v3113_v61 = vmul.f32 -1.442695, %v1916_v4 }
0x2328   :  { %3281 = vpow2.f32 %v3113_v61 }
0x232e   :  { %v3282_v62 = vpop.eup %3281 }
0x232f   :  { %v1920_v63 = vadd.f32 1.0, %v3282_v62 }
0x2331   :  { %3283 = vrcp.f32 %v1920_v63  ;;  %v1932_v8 = vand.u32 2147483648, %v1920_v63  ;;  %vm1926_vm11 = vweird.f32 %v1920_v63  ;;  %v1930_v9 = vand.u32 2147483647, %v1920_v63 }
0x2333   :  { %v1933_v12 = vor.u32 1.1754944e-38, %v1932_v8  ;;  %vm1931_vm13 = vcmp.eq.f32.partialorder %v1930_v9, 8.507059e+37 }
0x2337   :  { %v3284_v0 = vpop.eup %3283 }
0x2338   :  { %v1922_v2 = vmul.f32 %v3284_v0, %v1920_v63  ;;  %vm1927_vm9 = vweird.f32 %v3284_v0 }
0x2339   :  { %vm1928_vm12 = vmor %vm1926_vm11, %vm1927_vm9 }
0x233a   :  { %v1923_v5 = vsub.f32 1.0, %v1922_v2 }
0x233c   :  { %v1924_v6 = vmul.f32 %v3284_v0, %v1923_v5 }
0x233e   :  { %v1925_v7 = vadd.f32 %v3284_v0, %v1924_v6 }
0x2340   :  { %v1929_v11 = vsel %vm1928_vm12, %v3284_v0, %v1925_v7 }
0x2341   :  { %v1934_v14 = vsel %vm1931_vm13, %v1933_v12, %v1929_v11 }
0x2342   :  { %v1947_v41 = vsub.f32 1.0, %v1934_v14  ;;  %v1953_v30 = vmul.f32 %v1934_v14, %v1887_v56 }
0x237e   :  { %v1938_v13 = vpop.permute.xlu2 %1937 }
0x237f   :  { %v1940_v15 = vmul.f32 %v1938_v13, %v1934_v14 }
0x2381   :  { %1942 = vrot.lane.b32.xlu0 %v1940_v15, %s3690_s30 }
0x2389   :  { %1073 = vrot.lane.b32.xlu0 %v1050_v1, %s3690_s30 }
0x23f3   :  { %v1943_v10 = vpop.permute.xlu0 %1942 }
0x23f4   :  { %v1945_v20 = vadd.f32 %v1943_v10, %v1893_v60 }
0x23f6   :  { %3285 = vtanh.f32 %v1945_v20 }
0x23f7   :  { %3287 = vpow2.f32 %v3087_v23 }
0x23fb   :  { %v1074_v16 = vpop.permute.xlu0 %1073 }
0x23fc   :  { %v3286_v21 = vpop.eup %3285 }
0x23fd   :  { %1949 = vrot.lane.b32.xlu1 %v3286_v21, %s3691_s6  ;;  %v3288_v24 = vpop.eup %3287 }
0x23fe   :  { %v1056_v25 = vadd.f32 1.0, %v3288_v24 }
0x2400   :  { %3289 = vrcp.f32 %v1056_v25  ;;  %v1068_v34 = vand.u32 2147483648, %v1056_v25  ;;  %vm1062_vm15 = vweird.f32 %v1056_v25  ;;  %v1066_v19 = vand.u32 2147483647, %v1056_v25 }
0x2402   :  { %v1069_v38 = vor.u32 1.1754944e-38, %v1068_v34  ;;  %vm1067_vm1 = vcmp.eq.f32.partialorder %v1066_v19, 8.507059e+37 }
0x2406   :  { %v3290_v50 = vpop.eup %3289 }
0x2407   :  { %v1058_v26 = vmul.f32 %v3290_v50, %v1056_v25  ;;  %vm1063_vm14 = vweird.f32 %v3290_v50  ;;  %v1746_v25 = vpop.f32.mrf.mxu1 }
0x2408   :  { %vm1064_vm0 = vmor %vm1062_vm15, %vm1063_vm14 }
0x2409   :  { %v1059_v27 = vsub.f32 1.0, %v1058_v26  ;;  %v2300_v26 = vld [vmem:[#allocation24 + $0x18] sm:$0xff] }
0x240a   :  { %2318 = vmatpush.msra.mxu0 %v2300_v26 }
0x240b   :  { %v1060_v28 = vmul.f32 %v3290_v50, %v1059_v27  ;;  %v2299_v27 = vld [vmem:[#allocation24 + $0x10] sm:$0xff] }
0x240c   :  { %2319 = vmatpush.msra.mxu0 %v2299_v27 }
0x240d   :  { %v1061_v32 = vadd.f32 %v3290_v50, %v1060_v28  ;;  %v2298_v28 = vld [vmem:[#allocation24 + $0x8] sm:$0xff] }
0x240e   :  { %2320 = vmatpush.msra.mxu0 %v2298_v28 }
0x240f   :  { %v1065_v35 = vsel %vm1064_vm0, %v3290_v50, %v1061_v32 }
0x2410   :  { %v1070_v39 = vsel %vm1067_vm1, %v1069_v38, %v1065_v35 }
0x2411   :  { %v1076_v40 = vmul.f32 %v1074_v16, %v1070_v39  ;;  %v1083_v7 = vsub.f32 1.0, %v1070_v39  ;;  %v1089_v9 = vmul.f32 %v1070_v39, %v4087_v36 }
0x246f   :  { %v1950_v29 = vpop.permute.xlu1 %1949 }
0x2470   :  { %v1952_v31 = vmul.f32 %v1950_v29, %v1947_v41  ;;  %v2297_v41 = vld [vmem:[#allocation24] sm:$0xff] }
0x2471   :  { %2321 = vmatpush.msra.mxu0 %v2297_v41 }
0x2472   :  { %v4267_v33 = vadd.f32 %v1953_v30, %v1952_v31 }
0x2474   :  { %1956 = vrot.lane.b32.xlu2 %v4267_v33, %s3691_s6 }
0x247c   :  { %1078 = vrot.lane.b32.xlu2 %v1076_v40, %s3690_s30 }
0x24ce   :  { %v1957_v47 = vpop.permute.xlu2 %1956 }
0x24cf   :  { %1959 = vst.msk [vmem:[#allocation6 + $0x4] sm:$0x3] %vm625_vm10, %v1957_v47  ;;  %3114 = vmatmul.msk.f32.vlgmr.msra.gmra.mxu3 %vm308_vm2, %v1957_v47 }
0x24d6   :  { %v1079_v37 = vpop.permute.xlu2 %1078 }
0x24d7   :  { %v1081_v42 = vadd.f32 %v1079_v37, %v4001_v18 }
0x24d9   :  { %3291 = vtanh.f32 %v1081_v42 }
0x24df   :  { %v3292_v51 = vpop.eup %3291 }
0x2552   :  { %v1980_v49 = vpop.f32.mrf.mxu3 }
0x2553   :  { %v1981_v43 = vadd.f32 %v4232_v45, %v1980_v49 }
0x2555   :  { %2004 = vrot.lane.b32.xlu1 %v1981_v43, %s3690_s30  ;;  %v1983_v53 = vadd.f32 %v1981_v43, %v1960_v46 }
0x2557   :  { %v3115_v55 = vmul.f32 -1.442695, %v1983_v53 }
0x2559   :  { %3293 = vpow2.f32 %v3115_v55 }
0x255d   :  { %1085 = vrot.lane.b32.xlu1 %v3292_v51, %s3691_s6 }
0x255f   :  { %v3294_v56 = vpop.eup %3293 }
0x2560   :  { %v1987_v57 = vadd.f32 1.0, %v3294_v56 }
0x2562   :  { %3295 = vrcp.f32 %v1987_v57  ;;  %v1999_v61 = vand.u32 2147483648, %v1987_v57  ;;  %vm1993_vm4 = vweird.f32 %v1987_v57  ;;  %v1997_v62 = vand.u32 2147483647, %v1987_v57 }
0x2564   :  { %v2000_v0 = vor.u32 1.1754944e-38, %v1999_v61  ;;  %vm1998_vm7 = vcmp.eq.f32.partialorder %v1997_v62, 8.507059e+37  ;;  %v2302_v61 = vld [vmem:[#allocation24 + $0x28] sm:$0xff]  ;;  %v2301_v62 = vld [vmem:[#allocation24 + $0x20] sm:$0xff] }
0x2568   :  { %v3296_v58 = vpop.eup %3295 }
0x2569   :  { %v1989_v59 = vmul.f32 %v3296_v58, %v1987_v57  ;;  %vm1994_vm3 = vweird.f32 %v3296_v58 }
0x256a   :  { %vm1995_vm6 = vmor %vm1993_vm4, %vm1994_vm3 }
0x256b   :  { %v1990_v60 = vsub.f32 1.0, %v1989_v59 }
0x256d   :  { %v1991_v18 = vmul.f32 %v3296_v58, %v1990_v60 }
0x256f   :  { %v1992_v4 = vadd.f32 %v3296_v58, %v1991_v18  ;;  %v2304_v18 = vld [vmem:[#allocation24 + $0x38] sm:$0xff] }
0x2570   :  { %2346 = vmatpush.msra.mxu1 %v2304_v18 }
0x2571   :  { %v1996_v63 = vsel %vm1995_vm6, %v3296_v58, %v1992_v4  ;;  %v2303_v4 = vld [vmem:[#allocation24 + $0x30] sm:$0xff] }
0x2572   :  { %v2001_v5 = vsel %vm1998_vm7, %v2000_v0, %v1996_v63  ;;  %2347 = vmatpush.msra.mxu1 %v2303_v4 }
0x2573   :  { %v2014_v10 = vsub.f32 1.0, %v2001_v5  ;;  %v2020_v36 = vmul.f32 %v2001_v5, %v4267_v33 }
0x2574   :  { %2348 = vmatpush.msra.mxu1 %v2302_v61 }
0x2576   :  { %2349 = vmatpush.msra.mxu1 %v2301_v62 }
0x25c7   :  { %v2005_v2 = vpop.permute.xlu1 %2004 }
0x25c8   :  { %v2007_v6 = vmul.f32 %v2005_v2, %v2001_v5 }
0x25ca   :  { %2009 = vrot.lane.b32.xlu0 %v2007_v6, %s3690_s30  ;;  %v3175_v6 = vld [vmem:[%s4522_s21] ss:$0 sm:$0xff]  ;;  %s4560_s21 = sld [smem:[#allocation45_spill]] }
0x25cf   :  { %v1086_v8 = vpop.permute.xlu1 %1085 }
0x25d0   :  { %v1088_v11 = vmul.f32 %v1086_v8, %v1083_v7 }
0x25d2   :  { %v1090_v12 = vadd.f32 %v1089_v9, %v1088_v11 }
0x25d4   :  { %1092 = vrot.lane.b32.xlu0 %v1090_v12, %s3691_s6 }
0x263c   :  { %v2010_v13 = vpop.permute.xlu0 %2009 }
0x263d   :  { %v2012_v14 = vadd.f32 %v2010_v13, %v1960_v46 }
0x263f   :  { %3297 = vtanh.f32 %v2012_v14 }
0x2645   :  { %v3298_v15 = vpop.eup %3297 }
0x2646   :  { %2016 = vrot.lane.b32.xlu2 %v3298_v15, %s3691_s6  ;;  %v1093_v17 = vpop.permute.xlu0 %1092 }
0x2647   :  { %1095 = vst.msk [vmem:[#allocation4 + $0xe] sm:$0x3] %vm625_vm10, %v1093_v17 }
0x264e   :  { %v1097_v1 = vld [vmem:[#allocation4 + $0x8] sm:$0xff] }
0x264f   :  { %3106 = vmatmul.msk.f32.gmra.mxu0 %vm308_vm2, %v1097_v1 }
0x26a0   :  { %v2017_v20 = vpop.permute.xlu2 %2016 }
0x26a1   :  { %v2019_v21 = vmul.f32 %v2017_v20, %v2014_v10 }
0x26a3   :  { %v2021_v22 = vadd.f32 %v2020_v36, %v2019_v21 }
0x26a5   :  { %2023 = vrot.lane.b32.xlu1 %v2021_v22, %s3691_s6 }
0x26cc   :  { %v1712_v23 = vpop.f32.mrf.mxu0 }
0x26cd   :  { %v1719_v24 = vadd.f32 %v4240_v54, %v1712_v23 }
0x26cf   :  { %v1750_v50 = vadd.f32 %v1746_v25, %v1719_v24 }
0x26d1   :  { %1752 = vst.msk [vmem:[#allocation3 + $0x8] sm:$0xff] %vm547_vm5, %v1750_v50 }
0x26d8   :  { %v2027_v31 = vld [vmem:[#allocation3 + $0x8] sm:$0x3]  ;;  %v4310_v14 = vld [vmem:[#allocation3 + $0xc] sm:$0x3]  ;;  %v4312_v15 = vld [vmem:[#allocation3 + $0xe] sm:$0x3] }
0x2717   :  { %v2024_v29 = vpop.permute.xlu1 %2023 }
0x2718   :  { %2026 = vst.msk [vmem:[#allocation6 + $0x6] sm:$0x3] %vm625_vm10, %v2024_v29  ;;  %3116 = vmatmul.msk.f32.vlgmr.msrb.gmra.mxu0 %vm308_vm2, %v2024_v29 }
0x2720   :  { %3124 = vmatmul.msk.f32.vlgmr.msra.gmra.mxu0 %vm308_vm2, %v4129_v48 }
0x2728   :  { %3125 = vmatmul.msk.f32.gmra.mxu0 %vm308_vm2, %v1097_v1 }
0x2795   :  { %v2047_v54 = vpop.f32.mrf.mxu0 }
0x2796   :  { %v2048_v30 = vadd.f32 %v4232_v45, %v2047_v54 }
0x2798   :  { %2071 = vrot.lane.b32.xlu2 %v2048_v30, %s3690_s30  ;;  %v2050_v32 = vadd.f32 %v2048_v30, %v2027_v31 }
0x279a   :  { %v3117_v33 = vmul.f32 -1.442695, %v2050_v32 }
0x279c   :  { %3299 = vpow2.f32 %v3117_v33 }
0x279d   :  { %v2323_v5 = vpop.f32.mrf.mxu0 }
0x279e   :  { %v2332_v7 = vadd.f32 %v3175_v6, %v2323_v5 }
0x27a2   :  { %v3300_v34 = vpop.eup %3299 }
0x27a3   :  { %v2054_v19 = vadd.f32 1.0, %v3300_v34 }
0x27a5   :  { %3301 = vrcp.f32 %v2054_v19  ;;  %v2066_v48 = vand.u32 2147483648, %v2054_v19  ;;  %vm2060_vm9 = vweird.f32 %v2054_v19  ;;  %v2064_v47 = vand.u32 2147483647, %v2054_v19  ;;  %v2326_v11 = vpop.f32.mrf.mxu0 }
0x27a7   :  { %v2067_v42 = vor.u32 1.1754944e-38, %v2066_v48  ;;  %vm2065_vm12 = vcmp.eq.f32.partialorder %v2064_v47, 8.507059e+37 }
0x27ab   :  { %v3302_v35 = vpop.eup %3301 }
0x27ac   :  { %v2056_v16 = vmul.f32 %v3302_v35, %v2054_v19  ;;  %vm2061_vm8 = vweird.f32 %v3302_v35 }
0x27ad   :  { %vm2062_vm11 = vmor %vm2060_vm9, %vm2061_vm8 }
0x27ae   :  { %v2057_v38 = vsub.f32 1.0, %v2056_v16  ;;  %v4321_v16 = vld [vmem:[#allocation25 + $0x18] sm:$0xff] }
0x27af   :  { %2382 = vmatpush.msra.mxu2 %v4321_v16  ;;  %2449 = vmatpush.msra.mxu3 %v4321_v16 }
0x27b0   :  { %v2058_v39 = vmul.f32 %v3302_v35, %v2057_v38  ;;  %v4323_v38 = vld [vmem:[#allocation25 + $0x10] sm:$0xff]  ;;  %2650 = vmatpush.msrb.mxu0 %v4321_v16 }
0x27b1   :  { %2383 = vmatpush.msra.mxu2 %v4323_v38  ;;  %2450 = vmatpush.msra.mxu3 %v4323_v38 }
0x27b2   :  { %v2059_v40 = vadd.f32 %v3302_v35, %v2058_v39  ;;  %v4327_v39 = vld [vmem:[#allocation25 + $0x8] sm:$0xff]  ;;  %2651 = vmatpush.msrb.mxu0 %v4323_v38 }
0x27b3   :  { %2384 = vmatpush.msra.mxu2 %v4327_v39  ;;  %2451 = vmatpush.msra.mxu3 %v4327_v39 }
0x27b4   :  { %v2063_v37 = vsel %vm2062_vm11, %v3302_v35, %v2059_v40  ;;  %v4333_v40 = vld [vmem:[#allocation25] sm:$0xff]  ;;  %2652 = vmatpush.msrb.mxu0 %v4327_v39 }
0x27b5   :  { %v2068_v43 = vsel %vm2065_vm12, %v2067_v42, %v2063_v37  ;;  %2385 = vmatpush.msra.mxu2 %v4333_v40  ;;  %2452 = vmatpush.msra.mxu3 %v4333_v40  ;;  %v4361_v42 = vld [vmem:[%s4523_s22] ss:$0 sm:$0xff] }
0x27b6   :  { %v2081_v56 = vsub.f32 1.0, %v2068_v43  ;;  %v2087_v58 = vmul.f32 %v2068_v43, %v2021_v22  ;;  %2653 = vmatpush.msrb.mxu0 %v4333_v40 }
0x27f2   :  { %v2072_v49 = vpop.permute.xlu2 %2071 }
0x27f3   :  { %v2074_v51 = vmul.f32 %v2072_v49, %v2068_v43 }
0x27f5   :  { %2076 = vrot.lane.b32.xlu0 %v2074_v51, %s3690_s30 }
0x2867   :  { %v2077_v46 = vpop.permute.xlu0 %2076 }
0x2868   :  { %v2079_v53 = vadd.f32 %v2077_v46, %v2027_v31 }
0x286a   :  { %3303 = vtanh.f32 %v2079_v53 }
0x2870   :  { %v3304_v55 = vpop.eup %3303 }
0x2871   :  { %2083 = vrot.lane.b32.xlu1 %v3304_v55, %s3691_s6 }
0x28e3   :  { %v2084_v57 = vpop.permute.xlu1 %2083 }
0x28e4   :  { %v2086_v59 = vmul.f32 %v2084_v57, %v2081_v56 }
0x28e6   :  { %v2088_v60 = vadd.f32 %v2087_v58, %v2086_v59 }
0x28e8   :  { %2090 = vrot.lane.b32.xlu2 %v2088_v60, %s3691_s6 }
0x2942   :  { %v2091_v63 = vpop.permute.xlu2 %2090 }
0x2943   :  { %2093 = vst.msk [vmem:[#allocation6 + $0x8] sm:$0x3] %vm625_vm10, %v2091_v63  ;;  %3118 = vmatmul.msk.f32.vlgmr.msrb.gmra.mxu1 %vm308_vm2, %v2091_v63 }
0x2944   :  { %2717 = vmatpush.msrb.mxu1 %v4321_v16 }
0x2946   :  { %2718 = vmatpush.msrb.mxu1 %v4323_v38 }
0x2948   :  { %2719 = vmatpush.msrb.mxu1 %v4327_v39 }
0x294a   :  { %2720 = vmatpush.msrb.mxu1 %v4333_v40 }
0x294b   :  { %3126 = vmatmul.msk.f32.vlgmr.msra.gmra.mxu1 %vm308_vm2, %v4225_v44  ;;  %v2333_v44 = vadd.f32 %v3175_v6, %v2326_v11 }
0x2953   :  { %3127 = vmatmul.msk.f32.gmra.mxu1 %vm308_vm2, %v4234_v52  ;;  %v2094_v52 = vld [vmem:[#allocation3 + $0xa] sm:$0x3] }
0x29c0   :  { %v2114_v0 = vpop.f32.mrf.mxu1 }
0x29c1   :  { %v2115_v2 = vadd.f32 %v4232_v45, %v2114_v0 }
0x29c3   :  { %2138 = vrot.lane.b32.xlu0 %v2115_v2, %s3690_s30  ;;  %v2117_v17 = vadd.f32 %v2115_v2, %v2094_v52 }
0x29c5   :  { %v3119_v1 = vmul.f32 -1.442695, %v2117_v17 }
0x29c7   :  { %3305 = vpow2.f32 %v3119_v1 }
0x29c8   :  { %v2351_v8 = vpop.f32.mrf.mxu1 }
0x29c9   :  { %v2357_v9 = vadd.f32 %v2351_v8, %v2332_v7 }
0x29cb   :  { %2359 = vst.msk [vmem:[#allocation3] sm:$0xff] %vm547_vm5, %v2357_v9 }
0x29cd   :  { %v3306_v10 = vpop.eup %3305 }
0x29ce   :  { %v2121_v20 = vadd.f32 1.0, %v3306_v10 }
0x29d0   :  { %v2354_v12 = vpop.f32.mrf.mxu1  ;;  %3307 = vrcp.f32 %v2121_v20  ;;  %v2133_v25 = vand.u32 2147483648, %v2121_v20  ;;  %vm2127_vm14 = vweird.f32 %v2121_v20  ;;  %v2131_v50 = vand.u32 2147483647, %v2121_v20 }
0x29d1   :  { %v2358_v13 = vadd.f32 %v2354_v12, %v2333_v44 }
0x29d2   :  { %v2134_v27 = vor.u32 1.1754944e-38, %v2133_v25  ;;  %vm2132_vm0 = vcmp.eq.f32.partialorder %v2131_v50, 8.507059e+37 }
0x29d3   :  { %2360 = vst.msk [vmem:[#allocation3 + $0x8] sm:$0xff] %vm547_vm5, %v2358_v13 }
0x29d6   :  { %v3308_v36 = vpop.eup %3307 }
0x29d7   :  { %v2123_v21 = vmul.f32 %v3308_v36, %v2121_v20  ;;  %vm2128_vm13 = vweird.f32 %v3308_v36 }
0x29d8   :  { %vm2129_vm15 = vmor %vm2127_vm14, %vm2128_vm13 }
0x29d9   :  { %v2124_v22 = vsub.f32 1.0, %v2123_v21 }
0x29da   :  { %v2366_v43 = vld [vmem:[#allocation3 + $0xe] sm:$0x3] }
0x29db   :  { %v2125_v23 = vmul.f32 %v3308_v36, %v2124_v22 }
0x29dd   :  { %v2126_v24 = vadd.f32 %v3308_v36, %v2125_v23 }
0x29df   :  { %v2130_v26 = vsel %vm2129_vm15, %v3308_v36, %v2126_v24 }
0x29e0   :  { %v2135_v41 = vsel %vm2132_vm0, %v2134_v27, %v2130_v26 }
0x29e1   :  { %v2148_v32 = vsub.f32 1.0, %v2135_v41  ;;  %v2154_v34 = vmul.f32 %v2135_v41, %v2088_v60 }
0x2a35   :  { %v2139_v28 = vpop.permute.xlu0 %2138 }
0x2a36   :  { %v2141_v29 = vmul.f32 %v2139_v28, %v2135_v41 }
0x2a38   :  { %2143 = vrot.lane.b32.xlu1 %v2141_v29, %s3690_s30 }
0x2aaa   :  { %v2144_v54 = vpop.permute.xlu1 %2143 }
0x2aab   :  { %v2146_v30 = vadd.f32 %v2144_v54, %v2094_v52 }
0x2aad   :  { %3309 = vtanh.f32 %v2146_v30 }
0x2ab3   :  { %v3310_v31 = vpop.eup %3309 }
0x2ab4   :  { %2150 = vrot.lane.b32.xlu2 %v3310_v31, %s3691_s6 }
0x2b0e   :  { %v2151_v33 = vpop.permute.xlu2 %2150 }
0x2b0f   :  { %v2153_v19 = vmul.f32 %v2151_v33, %v2148_v32 }
0x2b11   :  { %v4317_v35 = vadd.f32 %v2154_v34, %v2153_v19 }
0x2b13   :  { %2157 = vrot.lane.b32.xlu0 %v4317_v35, %s3691_s6 }
0x2b85   :  { %v2158_v48 = vpop.permute.xlu0 %2157 }
0x2b86   :  { %2160 = vst.msk [vmem:[#allocation6 + $0xa] sm:$0x3] %vm625_vm10, %v2158_v48  ;;  %3120 = vmatmul.msk.f32.vlgmr.msrb.gmra.mxu2 %vm308_vm2, %v2158_v48 }
0x2b87   :  { %2516 = vmatpush.msrb.mxu2 %v4321_v16 }
0x2b89   :  { %2517 = vmatpush.msrb.mxu2 %v4323_v38 }
0x2b8b   :  { %2518 = vmatpush.msrb.mxu2 %v4327_v39 }
0x2b8d   :  { %2519 = vmatpush.msrb.mxu2 %v4333_v40 }
0x2b8e   :  { %2386 = vmatmul.f32.vlgmr.msra.gmra.mxu2 %v3689_v3 }
0x2b8f   :  { %2784 = vmatpush.msra.mxu2 %v4321_v16 }
0x2b91   :  { %2785 = vmatpush.msra.mxu2 %v4323_v38 }
0x2b93   :  { %2786 = vmatpush.msra.mxu2 %v4327_v39 }
0x2b95   :  { %2787 = vmatpush.msra.mxu2 %v4333_v40 }
0x2c09   :  { %v2181_v47 = vpop.f32.mrf.mxu2 }
0x2c0a   :  { %v2182_v37 = vadd.f32 %v4232_v45, %v2181_v47  ;;  %v2434_v47 = vld [vmem:[#allocation3 + $0xc] sm:$0x3] }
0x2c0c   :  { %2205 = vrot.lane.b32.xlu1 %v2182_v37, %s3690_s30  ;;  %v2184_v55 = vadd.f32 %v2182_v37, %v4310_v14 }
0x2c0e   :  { %v3121_v56 = vmul.f32 -1.442695, %v2184_v55 }
0x2c11   :  { %v2387_v49 = vpop.f32.mrf.mxu2 }
0x2c12   :  { %v2388_v3 = vadd.f32 %v4361_v42, %v2387_v49 }
0x2c14   :  { %2411 = vrot.lane.b32.xlu2 %v2388_v3, %s3690_s30  ;;  %v2390_v51 = vadd.f32 %v2388_v3, %v2366_v43 }
0x2c16   :  { %v3128_v46 = vmul.f32 -1.442695, %v2390_v51 }
0x2c18   :  { %3311 = vpow2.f32 %v3128_v46 }
0x2c1e   :  { %v3312_v53 = vpop.eup %3311 }
0x2c1f   :  { %v2394_v45 = vadd.f32 1.0, %v3312_v53 }
0x2c21   :  { %3313 = vrcp.f32 %v2394_v45  ;;  %v2406_v63 = vand.u32 2147483648, %v2394_v45  ;;  %vm2400_vm1 = vweird.f32 %v2394_v45  ;;  %v2404_v0 = vand.u32 2147483647, %v2394_v45 }
0x2c22   :  { %3315 = vpow2.f32 %v3121_v56 }
0x2c23   :  { %v2407_v6 = vor.u32 1.1754944e-38, %v2406_v63  ;;  %vm2405_vm4 = vcmp.eq.f32.partialorder %v2404_v0, 8.507059e+37 }
0x2c27   :  { %v3314_v57 = vpop.eup %3313 }
0x2c28   :  { %v3316_v58 = vpop.eup %3315  ;;  %v2396_v59 = vmul.f32 %v3314_v57, %v2394_v45  ;;  %vm2401_vm5 = vweird.f32 %v3314_v57 }
0x2c29   :  { %v2188_v60 = vadd.f32 1.0, %v3316_v58  ;;  %vm2402_vm3 = vmor %vm2400_vm1, %vm2401_vm5 }
0x2c2a   :  { %v2397_v18 = vsub.f32 1.0, %v2396_v59 }
0x2c2b   :  { %3317 = vrcp.f32 %v2188_v60  ;;  %v2200_v13 = vand.u32 2147483648, %v2188_v60  ;;  %vm2194_vm7 = vweird.f32 %v2188_v60  ;;  %v2198_v52 = vand.u32 2147483647, %v2188_v60 }
0x2c2c   :  { %v2398_v4 = vmul.f32 %v3314_v57, %v2397_v18 }
0x2c2d   :  { %v2201_v1 = vor.u32 1.1754944e-38, %v2200_v13  ;;  %vm2199_vm9 = vcmp.eq.f32.partialorder %v2198_v52, 8.507059e+37 }
0x2c2e   :  { %v2399_v61 = vadd.f32 %v3314_v57, %v2398_v4 }
0x2c30   :  { %v2403_v2 = vsel %vm2402_vm3, %v3314_v57, %v2399_v61 }
0x2c31   :  { %v3318_v62 = vpop.eup %3317  ;;  %v2408_v8 = vsel %vm2405_vm4, %v2407_v6, %v2403_v2 }
0x2c32   :  { %v2190_v5 = vmul.f32 %v3318_v62, %v2188_v60  ;;  %vm2195_vm6 = vweird.f32 %v3318_v62  ;;  %v2421_v54 = vsub.f32 1.0, %v2408_v8  ;;  %v2427_v31 = vmul.f32 0.0, %v2408_v8 }
0x2c33   :  { %vm2196_vm8 = vmor %vm2194_vm7, %vm2195_vm6 }
0x2c34   :  { %v2191_v11 = vsub.f32 1.0, %v2190_v5 }
0x2c36   :  { %v2192_v44 = vmul.f32 %v3318_v62, %v2191_v11 }
0x2c38   :  { %v2193_v12 = vadd.f32 %v3318_v62, %v2192_v44 }
0x2c3a   :  { %v2197_v17 = vsel %vm2196_vm8, %v3318_v62, %v2193_v12 }
0x2c3b   :  { %v2202_v20 = vsel %vm2199_vm9, %v2201_v1, %v2197_v17 }
0x2c3c   :  { %v2215_v26 = vsub.f32 1.0, %v2202_v20  ;;  %v2221_v28 = vmul.f32 %v2202_v20, %v4317_v35 }
0x2c6e   :  { %v2412_v7 = vpop.permute.xlu2 %2411 }
0x2c6f   :  { %v2414_v9 = vmul.f32 %v2412_v7, %v2408_v8  ;;  %v2501_v7 = vld [vmem:[#allocation3 + $0xa] sm:$0x3] }
0x2c71   :  { %2416 = vrot.lane.b32.xlu1 %v2414_v9, %s3690_s30 }
0x2c7e   :  { %v2206_v10 = vpop.permute.xlu1 %2205 }
0x2c7f   :  { %v2208_v36 = vmul.f32 %v2206_v10, %v2202_v20 }
0x2c81   :  { %2210 = vrot.lane.b32.xlu0 %v2208_v36, %s3690_s30 }
0x2ce3   :  { %v2417_v21 = vpop.permute.xlu1 %2416 }
0x2ce4   :  { %v2419_v22 = vadd.f32 %v2417_v21, %v2366_v43 }
0x2ce6   :  { %3319 = vtanh.f32 %v2419_v22 }
0x2cec   :  { %v3320_v23 = vpop.eup %3319 }
0x2ced   :  { %2423 = vrot.lane.b32.xlu0 %v3320_v23, %s3691_s6 }
0x2cf3   :  { %v2211_v24 = vpop.permute.xlu0 %2210 }
0x2cf4   :  { %v2213_v25 = vadd.f32 %v2211_v24, %v4310_v14 }
0x2cf6   :  { %3321 = vtanh.f32 %v2213_v25 }
0x2cfc   :  { %v3322_v50 = vpop.eup %3321 }
0x2cfd   :  { %2217 = vrot.lane.b32.xlu2 %v3322_v50, %s3691_s6 }
0x2d57   :  { %v2218_v27 = vpop.permute.xlu2 %2217 }
0x2d58   :  { %v2220_v41 = vmul.f32 %v2218_v27, %v2215_v26 }
0x2d5a   :  { %v4372_v29 = vadd.f32 %v2221_v28, %v2220_v41 }
0x2d5c   :  { %2224 = vrot.lane.b32.xlu1 %v4372_v29, %s3691_s6 }
0x2d5f   :  { %v2424_v30 = vpop.permute.xlu0 %2423 }
0x2d60   :  { %v2426_v32 = vmul.f32 %v2424_v30, %v2421_v54 }
0x2d62   :  { %v2428_v33 = vadd.f32 %v2427_v31, %v2426_v32 }
0x2d64   :  { %2430 = vrot.lane.b32.xlu2 %v2428_v33, %s3691_s6 }
0x2dbe   :  { %v2431_v14 = vpop.permute.xlu2 %2430 }
0x2dbf   :  { %2433 = vst.msk [vmem:[#allocation7 + $0xe] sm:$0x3] %vm625_vm10, %v2431_v14 }
0x2dce   :  { %v2225_v34 = vpop.permute.xlu1 %2224 }
0x2dcf   :  { %2227 = vst.msk [vmem:[#allocation6 + $0xc] sm:$0x3] %vm625_vm10, %v2225_v34  ;;  %3122 = vmatmul.msk.f32.vlgmr.msrb.gmra.mxu3 %vm308_vm2, %v2225_v34 }
0x2dd0   :  { %2583 = vmatpush.msrb.mxu3 %v4321_v16 }
0x2dd2   :  { %2584 = vmatpush.msrb.mxu3 %v4323_v38 }
0x2dd4   :  { %2585 = vmatpush.msrb.mxu3 %v4327_v39 }
0x2dd6   :  { %2586 = vmatpush.msrb.mxu3 %v4333_v40 }
0x2dd7   :  { %3129 = vmatmul.msk.f32.vlgmr.msra.gmra.mxu3 %vm308_vm2, %v2431_v14  ;;  %v2568_v14 = vld [vmem:[#allocation3 + $0x8] sm:$0x3] }
0x2dd8   :  { %2851 = vmatpush.msra.mxu3 %v4321_v16 }
0x2dda   :  { %2852 = vmatpush.msra.mxu3 %v4323_v38 }
0x2ddc   :  { %2853 = vmatpush.msra.mxu3 %v4327_v39 }
0x2dde   :  { %2854 = vmatpush.msra.mxu3 %v4333_v40 }
0x2e52   :  { %v4389_v19 = vpop.f32.mrf.mxu3 }
0x2e5a   :  { %v2454_v35 = vpop.f32.mrf.mxu3 }
0x2e5b   :  { %v2455_v48 = vadd.f32 %v4361_v42, %v2454_v35 }
0x2e5d   :  { %2478 = vrot.lane.b32.xlu0 %v2455_v48, %s3690_s30  ;;  %v2457_v37 = vadd.f32 %v2455_v48, %v2434_v47 }
0x2e5f   :  { %v3130_v49 = vmul.f32 -1.442695, %v2457_v37 }
0x2e61   :  { %3323 = vpow2.f32 %v3130_v49 }
0x2e67   :  { %v3324_v3 = vpop.eup %3323 }
0x2e68   :  { %v2461_v43 = vadd.f32 1.0, %v3324_v3 }
0x2e6a   :  { %3325 = vrcp.f32 %v2461_v43  ;;  %v2473_v40 = vand.u32 2147483648, %v2461_v43  ;;  %vm2467_vm12 = vweird.f32 %v2461_v43  ;;  %v2471_v53 = vand.u32 2147483647, %v2461_v43 }
0x2e6c   :  { %v2474_v45 = vor.u32 1.1754944e-38, %v2473_v40  ;;  %vm2472_vm14 = vcmp.eq.f32.partialorder %v2471_v53, 8.507059e+37 }
0x2e70   :  { %v3326_v16 = vpop.eup %3325 }
0x2e71   :  { %v2463_v38 = vmul.f32 %v3326_v16, %v2461_v43  ;;  %vm2468_vm11 = vweird.f32 %v3326_v16 }
0x2e72   :  { %vm2469_vm13 = vmor %vm2467_vm12, %vm2468_vm11 }
0x2e73   :  { %v2464_v51 = vsub.f32 1.0, %v2463_v38 }
0x2e75   :  { %v2465_v39 = vmul.f32 %v3326_v16, %v2464_v51 }
0x2e77   :  { %v2466_v46 = vadd.f32 %v3326_v16, %v2465_v39 }
0x2e79   :  { %v2470_v55 = vsel %vm2469_vm13, %v3326_v16, %v2466_v46 }
0x2e7a   :  { %v2475_v57 = vsel %vm2472_vm14, %v2474_v45, %v2470_v55 }
0x2e7b   :  { %v2488_v4 = vsub.f32 1.0, %v2475_v57  ;;  %v2494_v62 = vmul.f32 %v2475_v57, %v2428_v33 }
0x2ecf   :  { %v2479_v56 = vpop.permute.xlu0 %2478 }
0x2ed0   :  { %v2481_v58 = vmul.f32 %v2479_v56, %v2475_v57 }
0x2ed2   :  { %2483 = vrot.lane.b32.xlu1 %v2481_v58, %s3690_s30 }
0x2f44   :  { %v2484_v59 = vpop.permute.xlu1 %2483 }
0x2f45   :  { %v2486_v60 = vadd.f32 %v2484_v59, %v2434_v47 }
0x2f47   :  { %3327 = vtanh.f32 %v2486_v60 }
0x2f4d   :  { %v3328_v18 = vpop.eup %3327 }
0x2f4e   :  { %2490 = vrot.lane.b32.xlu2 %v3328_v18, %s3691_s6 }
0x2fa8   :  { %v2491_v61 = vpop.permute.xlu2 %2490 }
0x2fa9   :  { %v2493_v63 = vmul.f32 %v2491_v61, %v2488_v4  ;;  %v2908_v61 = vld [vmem:[%s4524_s23 + $0x18] sm:$0xff] }
0x2faa   :  { %2932 = vmatpush.msra.mxu0 %v2908_v61 }
0x2fab   :  { %v2495_v0 = vadd.f32 %v2494_v62, %v2493_v63  ;;  %v2907_v62 = vld [vmem:[%s4524_s23 + $0x10] sm:$0xff]  ;;  %v2906_v63 = vld [vmem:[%s4524_s23 + $0x8] sm:$0xff] }
0x2fac   :  { %2933 = vmatpush.msra.mxu0 %v2907_v62 }
0x2fad   :  { %2497 = vrot.lane.b32.xlu0 %v2495_v0, %s3691_s6 }
0x2fae   :  { %2934 = vmatpush.msra.mxu0 %v2906_v63 }
0x301f   :  { %v2498_v2 = vpop.permute.xlu0 %2497 }
0x3020   :  { %2500 = vst.msk [vmem:[#allocation7 + $0xc] sm:$0x3] %vm625_vm10, %v2498_v2  ;;  %3131 = vmatmul.msk.f32.vlgmr.msrb.gmra.mxu2 %vm308_vm2, %v2498_v2 }
0x30a3   :  { %v2521_v5 = vpop.f32.mrf.mxu2 }
0x30a4   :  { %v2522_v6 = vadd.f32 %v4361_v42, %v2521_v5  ;;  %v2295_v5 = vld [vmem:[#allocation6] sm:$0xff] }
0x30a6   :  { %2545 = vrot.lane.b32.xlu1 %v2522_v6, %s3690_s30  ;;  %v2524_v8 = vadd.f32 %v2522_v6, %v2501_v7 }
0x30a8   :  { %v3132_v9 = vmul.f32 -1.442695, %v2524_v8  ;;  %v2635_v8 = vld [vmem:[#allocation3 + $0x6] sm:$0x3] }
0x30aa   :  { %3329 = vpow2.f32 %v3132_v9 }
0x30b0   :  { %v3330_v11 = vpop.eup %3329 }
0x30b1   :  { %v2528_v44 = vadd.f32 1.0, %v3330_v11 }
0x30b3   :  { %3331 = vrcp.f32 %v2528_v44  ;;  %v2540_v10 = vand.u32 2147483648, %v2528_v44  ;;  %vm2534_vm0 = vweird.f32 %v2528_v44  ;;  %v2538_v20 = vand.u32 2147483647, %v2528_v44 }
0x30b5   :  { %v2541_v21 = vor.u32 1.1754944e-38, %v2540_v10  ;;  %vm2539_vm1 = vcmp.eq.f32.partialorder %v2538_v20, 8.507059e+37 }
0x30b9   :  { %v3332_v12 = vpop.eup %3331 }
0x30ba   :  { %v2530_v13 = vmul.f32 %v3332_v12, %v2528_v44  ;;  %vm2535_vm15 = vweird.f32 %v3332_v12 }
0x30bb   :  { %vm2536_vm5 = vmor %vm2534_vm0, %vm2535_vm15 }
0x30bc   :  { %v2531_v52 = vsub.f32 1.0, %v2530_v13 }
0x30be   :  { %v2532_v17 = vmul.f32 %v3332_v12, %v2531_v52 }
0x30c0   :  { %v2533_v1 = vadd.f32 %v3332_v12, %v2532_v17 }
0x30c2   :  { %v2537_v36 = vsel %vm2536_vm5, %v3332_v12, %v2533_v1 }
0x30c3   :  { %v2542_v23 = vsel %vm2539_vm1, %v2541_v21, %v2537_v36 }
0x30c4   :  { %v2555_v27 = vsub.f32 1.0, %v2542_v23  ;;  %v2561_v41 = vmul.f32 %v2542_v23, %v2495_v0  ;;  %v2905_v0 = vld [vmem:[%s4524_s23] sm:$0xff] }
0x30c5   :  { %2935 = vmatpush.msra.mxu0 %v2905_v0 }
0x3118   :  { %v2546_v22 = vpop.permute.xlu1 %2545 }
0x3119   :  { %v2548_v24 = vmul.f32 %v2546_v22, %v2542_v23 }
0x311b   :  { %2550 = vrot.lane.b32.xlu2 %v2548_v24, %s3690_s30 }
0x3175   :  { %v2551_v25 = vpop.permute.xlu2 %2550 }
0x3176   :  { %v2553_v50 = vadd.f32 %v2551_v25, %v2501_v7 }
0x3178   :  { %3333 = vtanh.f32 %v2553_v50 }
0x317e   :  { %v3334_v26 = vpop.eup %3333 }
0x317f   :  { %2557 = vrot.lane.b32.xlu0 %v3334_v26, %s3691_s6 }
0x31f1   :  { %v2558_v28 = vpop.permute.xlu0 %2557 }
0x31f2   :  { %v2560_v54 = vmul.f32 %v2558_v28, %v2555_v27 }
0x31f4   :  { %v2562_v30 = vadd.f32 %v2561_v41, %v2560_v54 }
0x31f6   :  { %2564 = vrot.lane.b32.xlu1 %v2562_v30, %s3691_s6 }
0x3268   :  { %v2565_v31 = vpop.permute.xlu1 %2564 }
0x3269   :  { %2567 = vst.msk [vmem:[#allocation7 + $0xa] sm:$0x3] %vm625_vm10, %v2565_v31  ;;  %3133 = vmatmul.msk.f32.vlgmr.msrb.gmra.mxu3 %vm308_vm2, %v2565_v31 }
0x32ec   :  { %v2588_v32 = vpop.f32.mrf.mxu3 }
0x32ed   :  { %v2589_v33 = vadd.f32 %v4361_v42, %v2588_v32 }
0x32ef   :  { %2612 = vrot.lane.b32.xlu2 %v2589_v33, %s3690_s30  ;;  %v2591_v34 = vadd.f32 %v2589_v33, %v2568_v14 }
0x32f1   :  { %v3134_v35 = vmul.f32 -1.442695, %v2591_v34  ;;  %v2702_v34 = vld [vmem:[#allocation3 + $0x4] sm:$0x3] }
0x32f3   :  { %3335 = vpow2.f32 %v3134_v35 }
0x32f9   :  { %v3336_v48 = vpop.eup %3335 }
0x32fa   :  { %v2595_v47 = vadd.f32 1.0, %v3336_v48 }
0x32fc   :  { %3337 = vrcp.f32 %v2595_v47  ;;  %v2607_v38 = vand.u32 2147483648, %v2595_v47  ;;  %vm2601_vm4 = vweird.f32 %v2595_v47  ;;  %v2605_v51 = vand.u32 2147483647, %v2595_v47 }
0x32fe   :  { %v2608_v46 = vor.u32 1.1754944e-38, %v2607_v38  ;;  %vm2606_vm7 = vcmp.eq.f32.partialorder %v2605_v51, 8.507059e+37 }
0x3302   :  { %v3338_v37 = vpop.eup %3337 }
0x3303   :  { %v2597_v49 = vmul.f32 %v3338_v37, %v2595_v47  ;;  %vm2602_vm3 = vweird.f32 %v3338_v37 }
0x3304   :  { %vm2603_vm6 = vmor %vm2601_vm4, %vm2602_vm3 }
0x3305   :  { %v2598_v3 = vsub.f32 1.0, %v2597_v49 }
0x3307   :  { %v2599_v43 = vmul.f32 %v3338_v37, %v2598_v3 }
0x3309   :  { %v2600_v16 = vadd.f32 %v3338_v37, %v2599_v43 }
0x330b   :  { %v2604_v39 = vsel %vm2603_vm6, %v3338_v37, %v2600_v16 }
0x330c   :  { %v2609_v53 = vsel %vm2606_vm7, %v2608_v46, %v2604_v39 }
0x330d   :  { %v2622_v58 = vsub.f32 1.0, %v2609_v53  ;;  %v2628_v60 = vmul.f32 %v2609_v53, %v2562_v30 }
0x3349   :  { %v2613_v40 = vpop.permute.xlu2 %2612 }
0x334a   :  { %v2615_v55 = vmul.f32 %v2613_v40, %v2609_v53 }
0x334c   :  { %2617 = vrot.lane.b32.xlu0 %v2615_v55, %s3690_s30 }
0x33be   :  { %v2618_v45 = vpop.permute.xlu0 %2617 }
0x33bf   :  { %v2620_v56 = vadd.f32 %v2618_v45, %v2568_v14 }
0x33c1   :  { %3339 = vtanh.f32 %v2620_v56 }
0x33c7   :  { %v3340_v57 = vpop.eup %3339 }
0x33c8   :  { %2624 = vrot.lane.b32.xlu1 %v3340_v57, %s3691_s6 }
0x343a   :  { %v2625_v59 = vpop.permute.xlu1 %2624 }
0x343b   :  { %v2627_v18 = vmul.f32 %v2625_v59, %v2622_v58 }
0x343d   :  { %v2629_v4 = vadd.f32 %v2628_v60, %v2627_v18 }
0x343f   :  { %2631 = vrot.lane.b32.xlu2 %v2629_v4, %s3691_s6 }
0x3499   :  { %v2632_v2 = vpop.permute.xlu2 %2631 }
0x349a   :  { %2634 = vst.msk [vmem:[#allocation7 + $0x8] sm:$0x3] %vm625_vm10, %v2632_v2  ;;  %3135 = vmatmul.msk.f32.vlgmr.msrb.gmra.mxu0 %vm308_vm2, %v2632_v2  ;;  %v2769_v2 = vld [vmem:[#allocation3 + $0x2] sm:$0x3] }
0x34a2   :  { %3143 = vmatmul.msk.f32.vlgmr.msra.gmra.mxu0 %vm308_vm2, %v2295_v5 }
0x3517   :  { %v2655_v6 = vpop.f32.mrf.mxu0 }
0x3518   :  { %v2656_v7 = vadd.f32 %v4361_v42, %v2655_v6 }
0x351a   :  { %2679 = vrot.lane.b32.xlu0 %v2656_v7, %s3690_s30  ;;  %v2658_v9 = vadd.f32 %v2656_v7, %v2635_v8 }
0x351c   :  { %v3136_v11 = vmul.f32 -1.442695, %v2658_v9 }
0x351e   :  { %3341 = vpow2.f32 %v3136_v11 }
0x3524   :  { %v3342_v44 = vpop.eup %3341 }
0x3525   :  { %v2662_v12 = vadd.f32 1.0, %v3342_v44 }
0x3527   :  { %3343 = vrcp.f32 %v2662_v12  ;;  %v2674_v20 = vand.u32 2147483648, %v2662_v12  ;;  %vm2668_vm9 = vweird.f32 %v2662_v12  ;;  %v2672_v36 = vand.u32 2147483647, %v2662_v12 }
0x3529   :  { %v2675_v22 = vor.u32 1.1754944e-38, %v2674_v20  ;;  %vm2673_vm12 = vcmp.eq.f32.partialorder %v2672_v36, 8.507059e+37 }
0x352d   :  { %v3344_v13 = vpop.eup %3343 }
0x352e   :  { %v2664_v52 = vmul.f32 %v3344_v13, %v2662_v12  ;;  %vm2669_vm8 = vweird.f32 %v3344_v13 }
0x352f   :  { %vm2670_vm11 = vmor %vm2668_vm9, %vm2669_vm8 }
0x3530   :  { %v2665_v17 = vsub.f32 1.0, %v2664_v52 }
0x3532   :  { %v2666_v1 = vmul.f32 %v3344_v13, %v2665_v17 }
0x3534   :  { %v2667_v10 = vadd.f32 %v3344_v13, %v2666_v1 }
0x3536   :  { %v2671_v21 = vsel %vm2670_vm11, %v3344_v13, %v2667_v10 }
0x3537   :  { %v2676_v24 = vsel %vm2673_vm12, %v2675_v22, %v2671_v21 }
0x3538   :  { %v2689_v28 = vsub.f32 1.0, %v2676_v24  ;;  %v2695_v54 = vmul.f32 %v2676_v24, %v2629_v4 }
0x358c   :  { %v2680_v23 = vpop.permute.xlu0 %2679 }
0x358d   :  { %v2682_v25 = vmul.f32 %v2680_v23, %v2676_v24 }
0x358f   :  { %2684 = vrot.lane.b32.xlu1 %v2682_v25, %s3690_s30  ;;  %v3372_v25 = vld [vmem:[%s4519_s18] ss:$0 sm:$0xff] }
0x3601   :  { %v2685_v50 = vpop.permute.xlu1 %2684 }
0x3602   :  { %v2687_v26 = vadd.f32 %v2685_v50, %v2635_v8  ;;  %v2249_v50 = vadd.f32 %v3372_v25, %v4389_v19  ;;  %v2909_v25 = vld [vmem:[%s4524_s23 + $0x20] sm:$0xff] }
0x3604   :  { %3345 = vtanh.f32 %v2687_v26 }
0x360a   :  { %v3346_v27 = vpop.eup %3345 }
0x360b   :  { %2691 = vrot.lane.b32.xlu2 %v3346_v27, %s3691_s6 }
0x3665   :  { %v2692_v41 = vpop.permute.xlu2 %2691 }
0x3666   :  { %v2694_v30 = vmul.f32 %v2692_v41, %v2689_v28 }
0x3668   :  { %v2696_v31 = vadd.f32 %v2695_v54, %v2694_v30 }
0x366a   :  { %2698 = vrot.lane.b32.xlu0 %v2696_v31, %s3691_s6 }
0x36dc   :  { %v2699_v32 = vpop.permute.xlu0 %2698 }
0x36dd   :  { %2701 = vst.msk [vmem:[#allocation7 + $0x6] sm:$0x3] %vm625_vm10, %v2699_v32  ;;  %3137 = vmatmul.msk.f32.vlgmr.msrb.gmra.mxu1 %vm308_vm2, %v2699_v32 }
0x375a   :  { %v2722_v33 = vpop.f32.mrf.mxu1 }
0x375b   :  { %v2723_v14 = vadd.f32 %v4361_v42, %v2722_v33 }
0x375d   :  { %2746 = vrot.lane.b32.xlu1 %v2723_v14, %s3690_s30  ;;  %v2725_v35 = vadd.f32 %v2723_v14, %v2702_v34 }
0x375f   :  { %v3138_v48 = vmul.f32 -1.442695, %v2725_v35 }
0x3761   :  { %3347 = vpow2.f32 %v3138_v48 }
0x3767   :  { %v3348_v47 = vpop.eup %3347 }
0x3768   :  { %v2729_v37 = vadd.f32 1.0, %v3348_v47 }
0x376a   :  { %3349 = vrcp.f32 %v2729_v37  ;;  %v2741_v51 = vand.u32 2147483648, %v2729_v37  ;;  %vm2735_vm14 = vweird.f32 %v2729_v37  ;;  %v2739_v39 = vand.u32 2147483647, %v2729_v37 }
0x376c   :  { %v2742_v40 = vor.u32 1.1754944e-38, %v2741_v51  ;;  %vm2740_vm0 = vcmp.eq.f32.partialorder %v2739_v39, 8.507059e+37 }
0x3770   :  { %v3350_v49 = vpop.eup %3349 }
0x3771   :  { %v2731_v3 = vmul.f32 %v3350_v49, %v2729_v37  ;;  %vm2736_vm13 = vweird.f32 %v3350_v49 }
0x3772   :  { %vm2737_vm15 = vmor %vm2735_vm14, %vm2736_vm13 }
0x3773   :  { %v2732_v43 = vsub.f32 1.0, %v2731_v3 }
0x3775   :  { %v2733_v16 = vmul.f32 %v3350_v49, %v2732_v43 }
0x3777   :  { %v2734_v38 = vadd.f32 %v3350_v49, %v2733_v16 }
0x3779   :  { %v2738_v46 = vsel %vm2737_vm15, %v3350_v49, %v2734_v38 }
0x377a   :  { %v2743_v55 = vsel %vm2740_vm0, %v2742_v40, %v2738_v46  ;;  %v2836_v40 = vld [vmem:[#allocation3] sm:$0x3]  ;;  %vm3045_vm0 = vcmask 11264  }
0x377b   :  { %v2756_v59 = vsub.f32 1.0, %v2743_v55  ;;  %v2762_v18 = vmul.f32 %v2743_v55, %v2696_v31  ;;  %v2251_v31 = vadd.f32 %v2249_v50, %v4312_v15 }
0x377d   :  { %v3123_v32 = vmul.f32 -1.442695, %v2251_v31 }
0x37cf   :  { %v2747_v53 = vpop.permute.xlu1 %2746 }
0x37d0   :  { %v2749_v45 = vmul.f32 %v2747_v53, %v2743_v55 }
0x37d2   :  { %2751 = vrot.lane.b32.xlu2 %v2749_v45, %s3690_s30 }
0x382c   :  { %v2752_v56 = vpop.permute.xlu2 %2751 }
0x382d   :  { %v2754_v57 = vadd.f32 %v2752_v56, %v2702_v34 }
0x382f   :  { %3351 = vtanh.f32 %v2754_v57 }
0x3835   :  { %v3352_v58 = vpop.eup %3351 }
0x3836   :  { %2758 = vrot.lane.b32.xlu0 %v3352_v58, %s3691_s6 }
0x38a8   :  { %v2759_v60 = vpop.permute.xlu0 %2758 }
0x38a9   :  { %v2761_v4 = vmul.f32 %v2759_v60, %v2756_v59 }
0x38ab   :  { %v2763_v61 = vadd.f32 %v2762_v18, %v2761_v4 }
0x38ad   :  { %2765 = vrot.lane.b32.xlu1 %v2763_v61, %s3691_s6 }
0x391f   :  { %v2766_v62 = vpop.permute.xlu1 %2765 }
0x3920   :  { %2768 = vst.msk [vmem:[#allocation7 + $0x4] sm:$0x3] %vm625_vm10, %v2766_v62  ;;  %3139 = vmatmul.msk.f32.vlgmr.msra.gmra.mxu2 %vm308_vm2, %v2766_v62 }
0x39a3   :  { %v2789_v63 = vpop.f32.mrf.mxu2 }
0x39a4   :  { %v2790_v0 = vadd.f32 %v4361_v42, %v2789_v63 }
0x39a6   :  { %2813 = vrot.lane.b32.xlu2 %v2790_v0, %s3690_s30  ;;  %v2792_v5 = vadd.f32 %v2790_v0, %v2769_v2 }
0x39a8   :  { %v3140_v6 = vmul.f32 -1.442695, %v2792_v5 }
0x39aa   :  { %3353 = vpow2.f32 %v3140_v6 }
0x39b0   :  { %v3354_v7 = vpop.eup %3353 }
0x39b1   :  { %v2796_v8 = vadd.f32 1.0, %v3354_v7 }
0x39b3   :  { %3355 = vrcp.f32 %v2796_v8  ;;  %v2808_v52 = vand.u32 2147483648, %v2796_v8  ;;  %vm2802_vm1 = vweird.f32 %v2796_v8  ;;  %v2806_v17 = vand.u32 2147483647, %v2796_v8 }
0x39b5   :  { %v2809_v10 = vor.u32 1.1754944e-38, %v2808_v52  ;;  %vm2807_vm4 = vcmp.eq.f32.partialorder %v2806_v17, 8.507059e+37 }
0x39b9   :  { %v3356_v9 = vpop.eup %3355 }
0x39ba   :  { %v2798_v11 = vmul.f32 %v3356_v9, %v2796_v8  ;;  %vm2803_vm5 = vweird.f32 %v3356_v9 }
0x39bb   :  { %vm2804_vm3 = vmor %vm2802_vm1, %vm2803_vm5 }
0x39bc   :  { %v2799_v44 = vsub.f32 1.0, %v2798_v11 }
0x39be   :  { %v2800_v12 = vmul.f32 %v3356_v9, %v2799_v44 }
0x39c0   :  { %v2801_v13 = vadd.f32 %v3356_v9, %v2800_v12 }
0x39c2   :  { %v2805_v1 = vsel %vm2804_vm3, %v3356_v9, %v2801_v13 }
0x39c3   :  { %v2810_v36 = vsel %vm2807_vm4, %v2809_v10, %v2805_v1 }
0x39c4   :  { %v2823_v26 = vsub.f32 1.0, %v2810_v36  ;;  %v2829_v28 = vmul.f32 %v2810_v36, %v2763_v61 }
0x3a00   :  { %v2814_v20 = vpop.permute.xlu2 %2813 }
0x3a01   :  { %v2816_v21 = vmul.f32 %v2814_v20, %v2810_v36 }
0x3a03   :  { %2818 = vrot.lane.b32.xlu0 %v2816_v21, %s3690_s30 }
0x3a75   :  { %v2819_v22 = vpop.permute.xlu0 %2818 }
0x3a76   :  { %v2821_v23 = vadd.f32 %v2819_v22, %v2769_v2 }
0x3a78   :  { %3357 = vtanh.f32 %v2821_v23  ;;  %v2911_v23 = vld [vmem:[%s4524_s23 + $0x30] sm:$0xff] }
0x3a79   :  { %3359 = vpow2.f32 %v3123_v32 }
0x3a7e   :  { %v3358_v24 = vpop.eup %3357 }
0x3a7f   :  { %2825 = vrot.lane.b32.xlu1 %v3358_v24, %s3691_s6  ;;  %v3360_v19 = vpop.eup %3359  ;;  %v2910_v24 = vld [vmem:[%s4524_s23 + $0x28] sm:$0xff] }
0x3a80   :  { %v2255_v33 = vadd.f32 1.0, %v3360_v19 }
0x3a82   :  { %3361 = vrcp.f32 %v2255_v33  ;;  %v2267_v3 = vand.u32 2147483648, %v2255_v33  ;;  %vm2261_vm7 = vweird.f32 %v2255_v33  ;;  %v2265_v43 = vand.u32 2147483647, %v2255_v33 }
0x3a84   :  { %v2268_v38 = vor.u32 1.1754944e-38, %v2267_v3  ;;  %vm2266_vm9 = vcmp.eq.f32.partialorder %v2265_v43, 8.507059e+37  ;;  %v3178_v43 = vld [vmem:[%s4527_s26] ss:$0 sm:$0xff] }
0x3a87   :  { %2272 = vrot.lane.b32.xlu1 %v2249_v50, %s3690_s30 }
0x3a88   :  { %v3362_v14 = vpop.eup %3361 }
0x3a89   :  { %v2257_v34 = vmul.f32 %v3362_v14, %v2255_v33  ;;  %vm2262_vm6 = vweird.f32 %v3362_v14 }
0x3a8a   :  { %vm2263_vm8 = vmor %vm2261_vm7, %vm2262_vm6 }
0x3a8b   :  { %v2258_v35 = vsub.f32 1.0, %v2257_v34 }
0x3a8d   :  { %v2259_v48 = vmul.f32 %v3362_v14, %v2258_v35 }
0x3a8f   :  { %v2260_v37 = vadd.f32 %v3362_v14, %v2259_v48 }
0x3a91   :  { %v2264_v16 = vsel %vm2263_vm8, %v3362_v14, %v2260_v37 }
0x3a92   :  { %v2269_v39 = vsel %vm2266_vm9, %v2268_v38, %v2264_v16 }
0x3a93   :  { %v2282_v44 = vsub.f32 1.0, %v2269_v39  ;;  %v2288_v13 = vmul.f32 %v2269_v39, %v4372_v29  ;;  %v2912_v29 = vld [vmem:[%s4524_s23 + $0x38] sm:$0xff] }
0x3a94   :  { %2966 = vmatpush.msra.mxu1 %v2912_v29 }
0x3a96   :  { %2967 = vmatpush.msra.mxu1 %v2911_v23 }
0x3a98   :  { %2968 = vmatpush.msra.mxu1 %v2910_v24 }
0x3a9a   :  { %2969 = vmatpush.msra.mxu1 %v2909_v25 }
0x3af1   :  { %v2826_v27 = vpop.permute.xlu1 %2825 }
0x3af2   :  { %v2828_v41 = vmul.f32 %v2826_v27, %v2823_v26  ;;  %v2904_v27 = vld [vmem:[#allocation7 + $0x8] sm:$0xff] }
0x3af4   :  { %v4448_v54 = vadd.f32 %v2829_v28, %v2828_v41  ;;  %v2986_v28 = vld [vmem:[%s4526_s25 + $0x8] sm:$0xff]  ;;  %v2985_v41 = vld [vmem:[%s4526_s25] sm:$0xff] }
0x3af5   :  { %3012 = vmatpush.msrb.mxu2 %v2986_v28 }
0x3af6   :  { %2832 = vrot.lane.b32.xlu2 %v4448_v54, %s3691_s6 }
0x3af7   :  { %3013 = vmatpush.msrb.mxu2 %v2985_v41 }
0x3af9   :  { %v2273_v51 = vpop.permute.xlu1 %2272 }
0x3afa   :  { %v2275_v46 = vmul.f32 %v2273_v51, %v2269_v39  ;;  %v3021_v39 = vld [vmem:[#allocation8] sm:$0xf] }
0x3b50   :  { %v2833_v30 = vpop.permute.xlu2 %2832 }
0x3b51   :  { %2835 = vst.msk [vmem:[#allocation7 + $0x2] sm:$0x3] %vm625_vm10, %v2833_v30  ;;  %3141 = vmatmul.msk.f32.vlgmr.msra.gmra.mxu3 %vm308_vm2, %v2833_v30  ;;  %v2937_v30 = vpop.f32.mrf.mxu0 }
0x3bd4   :  { %v2856_v47 = vpop.f32.mrf.mxu3 }
0x3bd5   :  { %v2857_v49 = vadd.f32 %v4361_v42, %v2856_v47 }
0x3bd7   :  { %2880 = vrot.lane.b32.xlu0 %v2857_v49, %s3690_s30  ;;  %v2859_v53 = vadd.f32 %v2857_v49, %v2836_v40 }
0x3bd9   :  { %v3142_v55 = vmul.f32 -1.442695, %v2859_v53 }
0x3bdb   :  { %3363 = vpow2.f32 %v3142_v55 }
0x3bdf   :  { %2277 = vrot.lane.b32.xlu0 %v2275_v46, %s3690_s30 }
0x3be1   :  { %v3364_v45 = vpop.eup %3363 }
0x3be2   :  { %v2863_v42 = vadd.f32 1.0, %v3364_v45 }
0x3be4   :  { %3365 = vrcp.f32 %v2863_v42  ;;  %v2875_v18 = vand.u32 2147483648, %v2863_v42  ;;  %vm2869_vm12 = vweird.f32 %v2863_v42  ;;  %v2873_v4 = vand.u32 2147483647, %v2863_v42 }
0x3be6   :  { %v2876_v62 = vor.u32 1.1754944e-38, %v2875_v18  ;;  %vm2874_vm14 = vcmp.eq.f32.partialorder %v2873_v4, 8.507059e+37 }
0x3bea   :  { %v3366_v56 = vpop.eup %3365 }
0x3beb   :  { %v2865_v57 = vmul.f32 %v3366_v56, %v2863_v42  ;;  %vm2870_vm11 = vweird.f32 %v3366_v56 }
0x3bec   :  { %vm2871_vm13 = vmor %vm2869_vm12, %vm2870_vm11 }
0x3bed   :  { %v2866_v58 = vsub.f32 1.0, %v2865_v57 }
0x3bef   :  { %v2867_v59 = vmul.f32 %v3366_v56, %v2866_v58 }
0x3bf1   :  { %v2868_v60 = vadd.f32 %v3366_v56, %v2867_v59 }
0x3bf3   :  { %v2872_v61 = vsel %vm2871_vm13, %v3366_v56, %v2868_v60 }
0x3bf4   :  { %v2877_v0 = vsel %vm2874_vm14, %v2876_v62, %v2872_v61 }
0x3bf5   :  { %v2890_v1 = vsub.f32 1.0, %v2877_v0  ;;  %v2896_v10 = vmul.f32 %v2877_v0, %v4448_v54  ;;  %v3177_v54 = vld [vmem:[%s4525_s24] ss:$0 sm:$0xff] }
0x3bf6   :  { %v2946_v31 = vadd.f32 %v3177_v54, %v2937_v30 }
0x3c49   :  { %v2881_v63 = vpop.permute.xlu0 %2880 }
0x3c4a   :  { %v2883_v2 = vmul.f32 %v2881_v63, %v2877_v0 }
0x3c4c   :  { %2885 = vrot.lane.b32.xlu2 %v2883_v2, %s3690_s30 }
0x3c51   :  { %v2278_v5 = vpop.permute.xlu0 %2277 }
0x3c52   :  { %v2280_v6 = vadd.f32 %v2278_v5, %v4312_v15 }
0x3c54   :  { %3367 = vtanh.f32 %v2280_v6 }
0x3c5a   :  { %v3368_v7 = vpop.eup %3367 }
0x3c5b   :  { %2284 = vrot.lane.b32.xlu2 %v3368_v7, %s3691_s6 }
0x3ca6   :  { %v2886_v8 = vpop.permute.xlu2 %2885 }
0x3ca7   :  { %v2888_v9 = vadd.f32 %v2886_v8, %v2836_v40 }
0x3ca9   :  { %3369 = vtanh.f32 %v2888_v9 }
0x3caf   :  { %v3370_v11 = vpop.eup %3369 }
0x3cb0   :  { %2892 = vrot.lane.b32.xlu1 %v3370_v11, %s3691_s6 }
0x3cb5   :  { %v2285_v12 = vpop.permute.xlu2 %2284 }
0x3cb6   :  { %v2287_v52 = vmul.f32 %v2285_v12, %v2282_v44 }
0x3cb8   :  { %v2289_v17 = vadd.f32 %v2288_v13, %v2287_v52 }
0x3cba   :  { %2291 = vrot.lane.b32.xlu1 %v2289_v17, %s3691_s6 }
0x3d22   :  { %v2893_v15 = vpop.permute.xlu1 %2892 }
0x3d23   :  { %v2895_v20 = vmul.f32 %v2893_v15, %v2890_v1 }
0x3d25   :  { %v2897_v36 = vadd.f32 %v2896_v10, %v2895_v20 }
0x3d27   :  { %2899 = vrot.lane.b32.xlu0 %v2897_v36, %s3691_s6 }
0x3d2c   :  { %v2292_v21 = vpop.permute.xlu1 %2291 }
0x3d2d   :  { %2294 = vst.msk [vmem:[#allocation6 + $0xe] sm:$0x3] %vm625_vm10, %v2292_v21 }
0x3d34   :  { %v2296_v22 = vld [vmem:[#allocation6 + $0x8] sm:$0xff] }
0x3d35   :  { %3144 = vmatmul.msk.f32.gmra.mxu0 %vm308_vm2, %v2296_v22 }
0x3d99   :  { %v2900_v50 = vpop.permute.xlu0 %2899 }
0x3d9a   :  { %2902 = vst.msk [vmem:[#allocation7] sm:$0x3] %vm625_vm10, %v2900_v50 }
0x3da1   :  { %v2903_v26 = vld [vmem:[#allocation7] sm:$0xff] }
0x3da2   :  { %3145 = vmatmul.msk.f32.vlgmr.msra.gmra.mxu1 %vm308_vm2, %v2903_v26 }
0x3daa   :  { %3146 = vmatmul.msk.f32.gmra.mxu1 %vm308_vm2, %v2904_v27  ;;  %vm2991_vm2 = vcmask 130048  }
0x3db2   :  { %v2940_v14 = vpop.f32.mrf.mxu0 }
0x3db3   :  { %v2947_v35 = vadd.f32 %v3177_v54, %v2940_v14 }
0x3e1f   :  { %v2971_v32 = vpop.f32.mrf.mxu1 }
0x3e20   :  { %v2977_v19 = vadd.f32 %v2971_v32, %v2946_v31 }
0x3e22   :  { %vm2979_vm10 = vcmp.gt.f32.partialorder %v2977_v19, 0.0  ;;  %v2981_v33 = vmul.f32 0.01, %v2977_v19 }
0x3e24   :  { %v2983_v34 = vsel %vm2979_vm10, %v2977_v19, %v2981_v33 }
0x3e25   :  { %3147 = vmatmul.msk.f32.vlgmr.msrb.gmra.mxu2 %vm2991_vm2, %v2983_v34 }
0x3e27   :  { %v2974_v48 = vpop.f32.mrf.mxu1 }
0x3e28   :  { %v2978_v47 = vadd.f32 %v2974_v48, %v2947_v35 }
0x3e2a   :  { %v2982_v37 = vmul.f32 0.01, %v2978_v47  ;;  %vm2980_vm15 = vcmp.gt.f32.partialorder %v2978_v47, 0.0 }
0x3e2c   :  { %v2984_v49 = vsel %vm2980_vm15, %v2978_v47, %v2982_v37 }
0x3e2d   :  { %3148 = vmatmul.msk.f32.gmra.mxu2 %vm2991_vm2, %v2984_v49 }
0x3ea8   :  { %v3015_v3 = vpop.f32.mrf.mxu2 }
0x3ea9   :  { %v3016_v51 = vadd.f32 %v3178_v43, %v3015_v3 }
0x3eb0   :  { %v3018_v16 = vpop.f32.mrf.mxu2 }
0x3eb1   :  { %v3019_v38 = vadd.f32 %v3178_v43, %v3018_v16 }
0x3eb3   :  { %3039 = vmatpush.msrb.mxu3 %v3019_v38 }
0x3eb5   :  { %3040 = vmatpush.msrb.mxu3 %v3016_v51 }
0x3eb6   :  { %3149 = vmatmul.msk.f32.vlgmr.msrb.gmra.mxu3 %vm2991_vm2, %v3021_v39 }
0x3f39   :  { %v3042_v46 = vpop.f32.mrf.mxu3 }
0x3f3a   :  { %3046 = vst.msk [vmem:[%s4560_s21] sm:$0xf] %vm3045_vm0, %v3042_v46 }
0x3f3b   :  { %3051 = vsyncpa [#allocation9], 1 }
0x3f3c   :  { %3052 = vsyncpa [#allocation11], 1 }
0x3f3d   :  { %3053 = vsyncpa [#allocation14], 1 }
0x3f3e   :  { %3054 = vsyncpa [#allocation17], 1 }
0x3f3f   :  { %3055 = vsyncpa [#allocation20], 1 }
0x3f40   :  { %3056 = vsyncpa [#allocation23], 1 }
0x3f41   :  { %3057 = vsyncpa [#allocation26], 1 }

</bundles_post_ra>
